<compile_context>
chip_gen: v6e
topology: v6e:2x2x1
jax: 0.10.0
libtpu: 0.0.40
codegen_flags: <defaults>
</compile_context>

<pallas_src>
import functools

import jax
import jax.numpy as jnp
from jax.experimental import pallas as pl
from jax.experimental.pallas import tpu as pltpu

# ----------------------------- synthetic config ------------------------------
# (stands in for torch.load('config_GPU.pth'))
MODEL_CONFIG = dict(
    dropout=0.0,      # inference: dropout == identity
    n_embd=32,
    block_size=16,
    n_head=4,
    n_layer=2,
    vocab_size=65,
)

LN_EPS = 1e-5
LANE = 128


def _round_up(x, m):
    return (x + m - 1) // m * m


# ------------------------------ Pallas kernel ---------------------------------
def _layernorm(x, gamma, beta):
    mu = jnp.mean(x, axis=-1, keepdims=True)
    xc = x - mu
    var = jnp.mean(xc * xc, axis=-1, keepdims=True)
    return xc * jax.lax.rsqrt(var + LN_EPS) * gamma + beta


def fused_forward_kernel(x_ref, vec_ref, qkv_ref, proj_ref, w1_ref, w2_ref,
                         head_ref, out_ref, *, n_layer, n_head):
    """Entire BigramLanguageModel forward; everything stays VMEM-resident.

    Slabs:
      x_ref    : (B, T, C)           tok_emb + pos_emb (computed in jitted glue)
      vec_ref  : (L, 8, 4C)          rows: ln1_g, ln1_b, ln2_g, ln2_b, b_proj, b2, b1, 0
      qkv_ref  : (L*3*H, C, hd)      per-head [K | Q*scale | V] weights
      proj_ref : (L*H, hd, C)        per-head output-projection rows
      w1_ref   : (L, C, 4C)          FF in
      w2_ref   : (L, 4C, C)          FF out
      head_ref : (C+8, Vp)           rows 0..C-1 = W_head, C = lnf_g, C+1 = lnf_b, C+2 = b_head
    """
    B, T, C = x_ref.shape
    N = B * T
    H = n_head
    hd = C // H

    # x is born in VMEM and only leaves as logits.
    x = x_ref[...].astype(jnp.float32).reshape(N, C)

    # Additive causal mask, built once and shared by every layer / head.
    row = jax.lax.broadcasted_iota(jnp.int32, (T, T), 0)
    col = jax.lax.broadcasted_iota(jnp.int32, (T, T), 1)
    add_mask = jnp.where(row >= col, 0.0, -1e30).astype(jnp.float32)

    for l in range(n_layer):                # static unroll over layers
        vecs = vec_ref[l]                   # (8, 4C) slab of all per-layer vectors
        ln1_g = vecs[0:1, :C]
        ln1_b = vecs[1:2, :C]
        ln2_g = vecs[2:3, :C]
        ln2_b = vecs[3:4, :C]
        b_proj = vecs[4:5, :C]
        b2 = vecs[5:6, :C]
        b1 = vecs[6:7, :]                   # (1, 4C)

        # ---- multi-head causal self-attention on ln1(x) ----
        y1 = _layernorm(x, ln1_g, ln1_b)                               # (N, C)
        sa = jnp.zeros((N, C), jnp.float32)
        for h in range(H):                  # static unroll; weights pre-split per head,
            base = l * 3 * H                # so no lane slicing / concat in the kernel
            k = jnp.dot(y1, qkv_ref[base + 0 * H + h],
                        preferred_element_type=jnp.float32).reshape(B, T, hd)
            q = jnp.dot(y1, qkv_ref[base + 1 * H + h],                 # scale folded in W_q
                        preferred_element_type=jnp.float32).reshape(B, T, hd)
            v = jnp.dot(y1, qkv_ref[base + 2 * H + h],
                        preferred_element_type=jnp.float32).reshape(B, T, hd)

            s = jnp.einsum('btd,bsd->bts', q, k,
                           preferred_element_type=jnp.float32)         # (B, T, T)
            s = s + add_mask
            s = s - jnp.max(s, axis=-1, keepdims=True)
            p = jnp.exp(s)
            p = p / jnp.sum(p, axis=-1, keepdims=True)                 # exact softmax
            # TODO(synk): a (T, B*H*T) lane-dense score layout would raise softmax
            # lane occupancy further, but needs dot_general forms Mosaic may reject.
            o = jnp.einsum('bts,bsd->btd', p, v,
                           preferred_element_type=jnp.float32)         # (B, T, hd)
            # concat(head_outs) @ W_proj  ==  sum_h  o_h @ W_proj_h  (no concat relayout)
            sa = sa + jnp.dot(o.reshape(N, hd), proj_ref[l * H + h],
                              preferred_element_type=jnp.float32)
        x = x + sa + b_proj

        # ---- feed-forward on ln2(x) ----
        y2 = _layernorm(x, ln2_g, ln2_b)
        h1 = jnp.dot(y2, w1_ref[l], preferred_element_type=jnp.float32) + b1
        h1 = jnp.maximum(h1, 0.0)
        ff = jnp.dot(h1, w2_ref[l], preferred_element_type=jnp.float32) + b2
        x = x + ff

    # ---- final LayerNorm + lm_head (vocab padded to a lane-dense 128) ----
    hm = head_ref[...]
    w_head = hm[0:C, :]
    lnf_g = hm[C:C + 1, :C]
    lnf_b = hm[C + 1:C + 2, :C]
    b_head = hm[C + 2:C + 3, :]

    y = _layernorm(x, lnf_g, lnf_b)
    logits = jnp.dot(y, w_head, preferred_element_type=jnp.float32) + b_head
    out_ref[...] = logits.astype(out_ref.dtype)


# ------------------------------- JAX wrappers ---------------------------------
def pack_params(params, cfg):
    """One-time layout plumbing: per-head weight split, scale folding, slab packing,
    vocab padding.  Called ONCE at model-load time (never in the forward path)."""
    C = cfg['n_embd']
    H = cfg['n_head']
    V = cfg['vocab_size']
    Vp = _round_up(V, LANE)
    scale = float(C) ** (-0.5)   # PyTorch Head scales by C**-0.5 (C == n_embd)

    def pad_row(v, width):
        v = v.reshape(-1)
        return jnp.pad(v, (0, width - v.shape[0]))

    vec_layers, qkv_mats, proj_mats, w1_l, w2_l = [], [], [], [], []
    for bp in params['blocks']:
        vec_layers.append(jnp.stack([
            pad_row(bp['ln1_g'], 4 * C), pad_row(bp['ln1_b'], 4 * C),
            pad_row(bp['ln2_g'], 4 * C), pad_row(bp['ln2_b'], 4 * C),
            pad_row(bp['bproj'], 4 * C), pad_row(bp['b2'], 4 * C),
            pad_row(bp['b1'], 4 * C),
            jnp.zeros((4 * C,), jnp.float32)]))
        for h in range(H):
            qkv_mats.append(bp['wk'][h])
        for h in range(H):
            qkv_mats.append(bp['wq'][h] * scale)   # softmax scale folded into Q weights
        for h in range(H):
            qkv_mats.append(bp['wv'][h])
        for h in range(H):
            proj_mats.append(bp['wproj'][h])
        w1_l.append(bp['w1'])
        w2_l.append(bp['w2'])

    head_slab = jnp.zeros((C + 8, Vp), jnp.float32)   # vocab padded 65 -> 128 (lane dense)
    head_slab = head_slab.at[0:C, 0:V].set(params['w_head'])
    head_slab = head_slab.at[C, 0:C].set(params['lnf_g'].reshape(-1))
    head_slab = head_slab.at[C + 1, 0:C].set(params['lnf_b'].reshape(-1))
    head_slab = head_slab.at[C + 2, 0:V].set(params['b_head'].reshape(-1))

    return dict(
        tok_table=params['tok_table'],
        pos_table=params['pos_table'],
        vec_slab=jnp.stack(vec_layers),          # (L, 8, 4C)
        qkv_slab=jnp.stack(qkv_mats),            # (L*3*H, C, hd)
        proj_slab=jnp.stack(proj_mats),          # (L*H, hd, C)
        w1_slab=jnp.stack(w1_l),                 # (L, C, 4C)
        w2_slab=jnp.stack(w2_l),                 # (L, 4C, C)
        head_slab=head_slab,                     # (C+8, Vp)
    )


def bigram_forward(idx, packed, cfg):
    """Forward pass of BigramLanguageModel (targets=None path): returns (logits, None)."""
    B, T = idx.shape
    V = cfg['vocab_size']
    Vp = packed['head_slab'].shape[-1]

    # TODO(synk): token/position embedding lookups are data-dependent gathers,
    # kept in (jitted) XLA glue; everything downstream runs in the fused kernel.
    x_emb = packed['tok_table'][idx] + packed['pos_table'][:T][None, :, :]

    ins = [x_emb, packed['vec_slab'], packed['qkv_slab'], packed['proj_slab'],
           packed['w1_slab'], packed['w2_slab'], packed['head_slab']]

    # Gridless single-TC call: whole model + activations (<0.5 MiB) is VMEM-resident.
    # TODO(synk): on v7x (2 TCs), a grid=(B,) with dimension_semantics=("parallel",)
    # would use the second TensorCore, but at B=2/T=16 the per-step grid overhead dominates.
    logits_padded = pl.pallas_call(
        functools.partial(fused_forward_kernel,
                          n_layer=cfg['n_layer'], n_head=cfg['n_head']),
        out_shape=jax.ShapeDtypeStruct((B * T, Vp), jnp.float32),
        in_specs=[pl.BlockSpec(memory_space=pltpu.MemorySpace.VMEM)] * len(ins),
        out_specs=pl.BlockSpec(memory_space=pltpu.MemorySpace.VMEM),
    )(*ins)

    logits = logits_padded.reshape(B, T, Vp)[:, :, :V]
    return logits, None


# --------------------------- pure-JAX reference -------------------------------
def reference_forward(idx, params, cfg):
    C = cfg['n_embd']
    tok_emb = params['tok_table'][idx]
    pos_emb = params['pos_table'][jnp.arange(idx.shape[1])]
    x = tok_emb + pos_emb[None, :, :]

    def ln(x, g, b):
        mu = jnp.mean(x, -1, keepdims=True)
        var = jnp.mean((x - mu) ** 2, -1, keepdims=True)
        return (x - mu) / jnp.sqrt(var + LN_EPS) * g + b

    T = idx.shape[1]
    causal = jnp.tril(jnp.ones((T, T), dtype=bool))[None]
    for bp in params['blocks']:
        y1 = ln(x, bp['ln1_g'], bp['ln1_b'])
        sa = jnp.zeros_like(x)
        for h in range(cfg['n_head']):
            k = y1 @ bp['wk'][h]
            q = y1 @ bp['wq'][h]
            v = y1 @ bp['wv'][h]
            wei = jnp.einsum('btd,bsd->bts', q, k) * C ** (-0.5)
            wei = jnp.where(causal, wei, -jnp.inf)
            wei = jax.nn.softmax(wei, axis=-1)
            sa = sa + jnp.einsum('bts,bsd->btd', wei, v) @ bp['wproj'][h]
        x = x + sa + bp['bproj']
        y2 = ln(x, bp['ln2_g'], bp['ln2_b'])
        x = x + jnp.maximum(y2 @ bp['w1'] + bp['b1'], 0.0) @ bp['w2'] + bp['b2']
    y = ln(x, params['lnf_g'], params['lnf_b'])
    return y @ params['w_head'] + params['b_head']


# ------------------------------ parameter init --------------------------------
def init_params(key, cfg):
    C, V, BS = cfg['n_embd'], cfg['vocab_size'], cfg['block_size']
    H = cfg['n_head']
    hd = C // H

    def nrm(k, shape, s=0.02):
        return (s * jax.random.normal(k, shape)).astype(jnp.float32)

    keys = iter(jax.random.split(key, 8 + 16 * cfg['n_layer']))
    params = dict(
        tok_table=nrm(next(keys), (V, C)),
        pos_table=nrm(next(keys), (BS, C)),
        lnf_g=jnp.ones((1, 1, C), jnp.float32),
        lnf_b=jnp.zeros((1, 1, C), jnp.float32),
        w_head=nrm(next(keys), (C, V)),
        b_head=nrm(next(keys), (1, 1, V)),
        blocks=[],
    )
    for _ in range(cfg['n_layer']):
        params['blocks'].append(dict(
            ln1_g=jnp.ones((1, 1, C), jnp.float32),
            ln1_b=jnp.zeros((1, 1, C), jnp.float32),
            ln2_g=jnp.ones((1, 1, C), jnp.float32),
            ln2_b=jnp.zeros((1, 1, C), jnp.float32),
            wk=nrm(next(keys), (H, C, hd)),
            wq=nrm(next(keys), (H, C, hd)),
            wv=nrm(next(keys), (H, C, hd)),
            wproj=nrm(next(keys), (H, hd, C)),
            bproj=nrm(next(keys), (1, 1, C)),
            w1=nrm(next(keys), (C, 4 * C)),
            b1=nrm(next(keys), (1, 1, 4 * C)),
            w2=nrm(next(keys), (4 * C, C)),
            b2=nrm(next(keys), (1, 1, C)),
        ))
    return params


# ----------------------------------- main --------------------------------------
if __name__ == "__main__":
    cfg = MODEL_CONFIG
    key = jax.random.PRNGKey(0)
    pkey, ikey = jax.random.split(key)
    params = init_params(pkey, cfg)

    # Pack weights ONCE at model-load time (hoisted out of the per-call path).
    packed = pack_params(params, cfg)

    # Jitted forward: embedding gathers + fused kernel dispatch in one XLA program.
    forward_jit = jax.jit(lambda idx, p: bigram_forward(idx, p, cfg))

    B, T = 2, cfg['block_size']          # small batch, full context window
    idx = jax.random.randint(ikey, (B, T), 0, cfg['vocab_size'], dtype=jnp.int32)

    logits, loss = forward_jit(idx, packed)
    logits = jax.block_until_ready(logits)

    assert logits.shape == (B, T, cfg['vocab_size'])
    assert loss is None

    ref = reference_forward(idx, params, cfg)
    max_err = float(jnp.max(jnp.abs(logits - ref)))
    assert max_err < 1e-2, f"mismatch vs reference: {max_err}"

    print("KERNEL_OK")
</pallas_src>

<mosaic_0001>
module attributes {stable_mosaic.version = 11 : i64} {
  func.func @fused_forward_kernel(%arg0: memref<2x16x32xf32, #tpu.memory_space<vmem>>, %arg1: memref<2x8x128xf32, #tpu.memory_space<vmem>>, %arg2: memref<24x32x8xf32, #tpu.memory_space<vmem>>, %arg3: memref<8x8x32xf32, #tpu.memory_space<vmem>>, %arg4: memref<2x32x128xf32, #tpu.memory_space<vmem>>, %arg5: memref<2x128x32xf32, #tpu.memory_space<vmem>>, %arg6: memref<40x128xf32, #tpu.memory_space<vmem>>, %arg7: memref<32x128xf32, #tpu.memory_space<vmem>>) attributes {dimension_semantics = [], scalar_prefetch = 0 : i64, scratch_operands = 0 : i64, tpu.core_type = #tpu.core_type<tc>} {
    %c0 = arith.constant 0 : index
    %c0_0 = arith.constant 0 : index
    %c0_1 = arith.constant 0 : index
    %0 = vector.load %arg0[%c0, %c0_0, %c0_1] : memref<2x16x32xf32, #tpu.memory_space<vmem>>, vector<2x16x32xf32>
    %1 = vector.shape_cast %0 : vector<2x16x32xf32> to vector<32x32xf32>
    %2 = tpu.iota {dimensions = array<i32: 0>} : vector<16x16xi32>
    %3 = tpu.iota {dimensions = array<i32: 1>} : vector<16x16xi32>
    %4 = arith.cmpi sge, %2, %3 : vector<16x16xi32>
    %cst = arith.constant 0.000000e+00 : f32
    %cst_2 = arith.constant -1.000000e+30 : f32
    %5 = vector.broadcast %cst : f32 to vector<16x16xf32>
    %6 = vector.broadcast %cst_2 : f32 to vector<16x16xf32>
    %7 = arith.select %4, %5, %6 : vector<16x16xi1>, vector<16x16xf32>
    %c0_3 = arith.constant 0 : index
    %c0_4 = arith.constant 0 : index
    %c0_5 = arith.constant 0 : index
    %8 = vector.load %arg1[%c0_3, %c0_4, %c0_5] : memref<2x8x128xf32, #tpu.memory_space<vmem>>, vector<1x8x128xf32>
    %9 = vector.shape_cast %8 : vector<1x8x128xf32> to vector<8x128xf32>
    %10 = vector.extract_strided_slice %9 {offsets = [0, 0], sizes = [1, 32], strides = [1, 1]} : vector<8x128xf32> to vector<1x32xf32>
    %11 = vector.extract_strided_slice %9 {offsets = [1, 0], sizes = [1, 32], strides = [1, 1]} : vector<8x128xf32> to vector<1x32xf32>
    %12 = vector.extract_strided_slice %9 {offsets = [2, 0], sizes = [1, 32], strides = [1, 1]} : vector<8x128xf32> to vector<1x32xf32>
    %13 = vector.extract_strided_slice %9 {offsets = [3, 0], sizes = [1, 32], strides = [1, 1]} : vector<8x128xf32> to vector<1x32xf32>
    %14 = vector.extract_strided_slice %9 {offsets = [4, 0], sizes = [1, 32], strides = [1, 1]} : vector<8x128xf32> to vector<1x32xf32>
    %15 = vector.extract_strided_slice %9 {offsets = [5, 0], sizes = [1, 32], strides = [1, 1]} : vector<8x128xf32> to vector<1x32xf32>
    %16 = vector.extract_strided_slice %9 {offsets = [6, 0], sizes = [1, 128], strides = [1, 1]} : vector<8x128xf32> to vector<1x128xf32>
    %cst_6 = arith.constant dense<0.000000e+00> : vector<32xf32>
    %17 = vector.multi_reduction <add>, %1, %cst_6 [1] : vector<32x32xf32> to vector<32xf32>
    %18 = vector.shape_cast %17 : vector<32xf32> to vector<32x1xf32>
    %cst_7 = arith.constant 3.200000e+01 : f32
    %19 = vector.broadcast %cst_7 : f32 to vector<32x1xf32>
    %20 = arith.divf %18, %19 : vector<32x1xf32>
    %21 = vector.broadcast %20 : vector<32x1xf32> to vector<32x32xf32>
    %22 = arith.subf %1, %21 : vector<32x32xf32>
    %23 = arith.mulf %22, %22 : vector<32x32xf32>
    %cst_8 = arith.constant dense<0.000000e+00> : vector<32xf32>
    %24 = vector.multi_reduction <add>, %23, %cst_8 [1] : vector<32x32xf32> to vector<32xf32>
    %25 = vector.shape_cast %24 : vector<32xf32> to vector<32x1xf32>
    %cst_9 = arith.constant 3.200000e+01 : f32
    %26 = vector.broadcast %cst_9 : f32 to vector<32x1xf32>
    %27 = arith.divf %25, %26 : vector<32x1xf32>
    %cst_10 = arith.constant 9.99999974E-6 : f32
    %28 = vector.broadcast %cst_10 : f32 to vector<32x1xf32>
    %29 = arith.addf %27, %28 : vector<32x1xf32>
    %30 = math.rsqrt %29 : vector<32x1xf32>
    %31 = vector.broadcast %30 : vector<32x1xf32> to vector<32x32xf32>
    %32 = arith.mulf %22, %31 : vector<32x32xf32>
    %33 = vector.broadcast %10 : vector<1x32xf32> to vector<32x32xf32>
    %34 = arith.mulf %32, %33 : vector<32x32xf32>
    %35 = vector.broadcast %11 : vector<1x32xf32> to vector<32x32xf32>
    %36 = arith.addf %34, %35 : vector<32x32xf32>
    %cst_11 = arith.constant 0.000000e+00 : f32
    %37 = vector.broadcast %cst_11 : f32 to vector<32x32xf32>
    %c0_12 = arith.constant 0 : index
    %c0_13 = arith.constant 0 : index
    %c0_14 = arith.constant 0 : index
    %38 = vector.load %arg2[%c0_12, %c0_13, %c0_14] : memref<24x32x8xf32, #tpu.memory_space<vmem>>, vector<1x32x8xf32>
    %39 = vector.shape_cast %38 : vector<1x32x8xf32> to vector<32x8xf32>
    %cst_15 = arith.constant dense<0.000000e+00> : vector<32x8xf32>
    %40 = tpu.matmul %36, %39, %cst_15 {dimension_numbers = #tpu.dot_dimension_numbers<[1], [0], [0], [1], [0, 0, 1, 1], [], []>} : vector<32x32xf32>, vector<32x8xf32>, vector<32x8xf32> -> vector<32x8xf32>
    %41 = vector.shape_cast %40 : vector<32x8xf32> to vector<2x16x8xf32>
    %c4 = arith.constant 4 : index
    %c0_16 = arith.constant 0 : index
    %c0_17 = arith.constant 0 : index
    %42 = vector.load %arg2[%c4, %c0_16, %c0_17] : memref<24x32x8xf32, #tpu.memory_space<vmem>>, vector<1x32x8xf32>
    %43 = vector.shape_cast %42 : vector<1x32x8xf32> to vector<32x8xf32>
    %cst_18 = arith.constant dense<0.000000e+00> : vector<32x8xf32>
    %44 = tpu.matmul %36, %43, %cst_18 {dimension_numbers = #tpu.dot_dimension_numbers<[1], [0], [0], [1], [0, 0, 1, 1], [], []>} : vector<32x32xf32>, vector<32x8xf32>, vector<32x8xf32> -> vector<32x8xf32>
    %45 = vector.shape_cast %44 : vector<32x8xf32> to vector<2x16x8xf32>
    %c8 = arith.constant 8 : index
    %c0_19 = arith.constant 0 : index
    %c0_20 = arith.constant 0 : index
    %46 = vector.load %arg2[%c8, %c0_19, %c0_20] : memref<24x32x8xf32, #tpu.memory_space<vmem>>, vector<1x32x8xf32>
    %47 = vector.shape_cast %46 : vector<1x32x8xf32> to vector<32x8xf32>
    %cst_21 = arith.constant dense<0.000000e+00> : vector<32x8xf32>
    %48 = tpu.matmul %36, %47, %cst_21 {dimension_numbers = #tpu.dot_dimension_numbers<[1], [0], [0], [1], [0, 0, 1, 1], [], []>} : vector<32x32xf32>, vector<32x8xf32>, vector<32x8xf32> -> vector<32x8xf32>
    %49 = vector.shape_cast %48 : vector<32x8xf32> to vector<2x16x8xf32>
    "tpu.trace_start"() <{level = 10 : i32, message = "btd,bsd->bts"}> : () -> ()
    %cst_22 = arith.constant dense<0.000000e+00> : vector<2x16x16xf32>
    %50 = tpu.matmul %45, %41, %cst_22 {dimension_numbers = #tpu.dot_dimension_numbers<[2], [2], [1], [1], [0, 0, 0, 1, 1, 1], [0], [0]>} : vector<2x16x8xf32>, vector<2x16x8xf32>, vector<2x16x16xf32> -> vector<2x16x16xf32>
    "tpu.trace_stop"() : () -> ()
    %51 = vector.shape_cast %7 : vector<16x16xf32> to vector<1x16x16xf32>
    %52 = vector.broadcast %51 : vector<1x16x16xf32> to vector<2x16x16xf32>
    %53 = arith.addf %50, %52 : vector<2x16x16xf32>
    %cst_23 = arith.constant dense<0xFF800000> : vector<2x16xf32>
    %54 = vector.multi_reduction <maximumf>, %53, %cst_23 [2] : vector<2x16x16xf32> to vector<2x16xf32>
    %55 = vector.shape_cast %54 : vector<2x16xf32> to vector<2x16x1xf32>
    %56 = vector.broadcast %55 : vector<2x16x1xf32> to vector<2x16x16xf32>
    %57 = arith.subf %53, %56 : vector<2x16x16xf32>
    %58 = math.exp %57 : vector<2x16x16xf32>
    %cst_24 = arith.constant dense<0.000000e+00> : vector<2x16xf32>
    %59 = vector.multi_reduction <add>, %58, %cst_24 [2] : vector<2x16x16xf32> to vector<2x16xf32>
    %60 = vector.shape_cast %59 : vector<2x16xf32> to vector<2x16x1xf32>
    %61 = vector.broadcast %60 : vector<2x16x1xf32> to vector<2x16x16xf32>
    %62 = arith.divf %58, %61 : vector<2x16x16xf32>
    "tpu.trace_start"() <{level = 10 : i32, message = "bts,bsd->btd"}> : () -> ()
    %cst_25 = arith.constant dense<0.000000e+00> : vector<2x16x8xf32>
    %63 = tpu.matmul %62, %49, %cst_25 {dimension_numbers = #tpu.dot_dimension_numbers<[2], [1], [1], [2], [0, 0, 0, 1, 1, 2], [0], [0]>} : vector<2x16x16xf32>, vector<2x16x8xf32>, vector<2x16x8xf32> -> vector<2x16x8xf32>
    "tpu.trace_stop"() : () -> ()
    %64 = vector.shape_cast %63 : vector<2x16x8xf32> to vector<32x8xf32>
    %c0_26 = arith.constant 0 : index
    %c0_27 = arith.constant 0 : index
    %c0_28 = arith.constant 0 : index
    %65 = vector.load %arg3[%c0_26, %c0_27, %c0_28] : memref<8x8x32xf32, #tpu.memory_space<vmem>>, vector<1x8x32xf32>
    %66 = vector.shape_cast %65 : vector<1x8x32xf32> to vector<8x32xf32>
    %cst_29 = arith.constant dense<0.000000e+00> : vector<32x32xf32>
    %67 = tpu.matmul %64, %66, %cst_29 {dimension_numbers = #tpu.dot_dimension_numbers<[1], [0], [0], [1], [0, 0, 1, 1], [], []>} : vector<32x8xf32>, vector<8x32xf32>, vector<32x32xf32> -> vector<32x32xf32>
    %68 = arith.addf %37, %67 : vector<32x32xf32>
    %c1 = arith.constant 1 : index
    %c0_30 = arith.constant 0 : index
    %c0_31 = arith.constant 0 : index
    %69 = vector.load %arg2[%c1, %c0_30, %c0_31] : memref<24x32x8xf32, #tpu.memory_space<vmem>>, vector<1x32x8xf32>
    %70 = vector.shape_cast %69 : vector<1x32x8xf32> to vector<32x8xf32>
    %cst_32 = arith.constant dense<0.000000e+00> : vector<32x8xf32>
    %71 = tpu.matmul %36, %70, %cst_32 {dimension_numbers = #tpu.dot_dimension_numbers<[1], [0], [0], [1], [0, 0, 1, 1], [], []>} : vector<32x32xf32>, vector<32x8xf32>, vector<32x8xf32> -> vector<32x8xf32>
    %72 = vector.shape_cast %71 : vector<32x8xf32> to vector<2x16x8xf32>
    %c5 = arith.constant 5 : index
    %c0_33 = arith.constant 0 : index
    %c0_34 = arith.constant 0 : index
    %73 = vector.load %arg2[%c5, %c0_33, %c0_34] : memref<24x32x8xf32, #tpu.memory_space<vmem>>, vector<1x32x8xf32>
    %74 = vector.shape_cast %73 : vector<1x32x8xf32> to vector<32x8xf32>
    %cst_35 = arith.constant dense<0.000000e+00> : vector<32x8xf32>
    %75 = tpu.matmul %36, %74, %cst_35 {dimension_numbers = #tpu.dot_dimension_numbers<[1], [0], [0], [1], [0, 0, 1, 1], [], []>} : vector<32x32xf32>, vector<32x8xf32>, vector<32x8xf32> -> vector<32x8xf32>
    %76 = vector.shape_cast %75 : vector<32x8xf32> to vector<2x16x8xf32>
    %c9 = arith.constant 9 : index
    %c0_36 = arith.constant 0 : index
    %c0_37 = arith.constant 0 : index
    %77 = vector.load %arg2[%c9, %c0_36, %c0_37] : memref<24x32x8xf32, #tpu.memory_space<vmem>>, vector<1x32x8xf32>
    %78 = vector.shape_cast %77 : vector<1x32x8xf32> to vector<32x8xf32>
    %cst_38 = arith.constant dense<0.000000e+00> : vector<32x8xf32>
    %79 = tpu.matmul %36, %78, %cst_38 {dimension_numbers = #tpu.dot_dimension_numbers<[1], [0], [0], [1], [0, 0, 1, 1], [], []>} : vector<32x32xf32>, vector<32x8xf32>, vector<32x8xf32> -> vector<32x8xf32>
    %80 = vector.shape_cast %79 : vector<32x8xf32> to vector<2x16x8xf32>
    "tpu.trace_start"() <{level = 10 : i32, message = "btd,bsd->bts"}> : () -> ()
    %cst_39 = arith.constant dense<0.000000e+00> : vector<2x16x16xf32>
    %81 = tpu.matmul %76, %72, %cst_39 {dimension_numbers = #tpu.dot_dimension_numbers<[2], [2], [1], [1], [0, 0, 0, 1, 1, 1], [0], [0]>} : vector<2x16x8xf32>, vector<2x16x8xf32>, vector<2x16x16xf32> -> vector<2x16x16xf32>
    "tpu.trace_stop"() : () -> ()
    %82 = vector.shape_cast %7 : vector<16x16xf32> to vector<1x16x16xf32>
    %83 = vector.broadcast %82 : vector<1x16x16xf32> to vector<2x16x16xf32>
    %84 = arith.addf %81, %83 : vector<2x16x16xf32>
    %cst_40 = arith.constant dense<0xFF800000> : vector<2x16xf32>
    %85 = vector.multi_reduction <maximumf>, %84, %cst_40 [2] : vector<2x16x16xf32> to vector<2x16xf32>
    %86 = vector.shape_cast %85 : vector<2x16xf32> to vector<2x16x1xf32>
    %87 = vector.broadcast %86 : vector<2x16x1xf32> to vector<2x16x16xf32>
    %88 = arith.subf %84, %87 : vector<2x16x16xf32>
    %89 = math.exp %88 : vector<2x16x16xf32>
    %cst_41 = arith.constant dense<0.000000e+00> : vector<2x16xf32>
    %90 = vector.multi_reduction <add>, %89, %cst_41 [2] : vector<2x16x16xf32> to vector<2x16xf32>
    %91 = vector.shape_cast %90 : vector<2x16xf32> to vector<2x16x1xf32>
    %92 = vector.broadcast %91 : vector<2x16x1xf32> to vector<2x16x16xf32>
    %93 = arith.divf %89, %92 : vector<2x16x16xf32>
    "tpu.trace_start"() <{level = 10 : i32, message = "bts,bsd->btd"}> : () -> ()
    %cst_42 = arith.constant dense<0.000000e+00> : vector<2x16x8xf32>
    %94 = tpu.matmul %93, %80, %cst_42 {dimension_numbers = #tpu.dot_dimension_numbers<[2], [1], [1], [2], [0, 0, 0, 1, 1, 2], [0], [0]>} : vector<2x16x16xf32>, vector<2x16x8xf32>, vector<2x16x8xf32> -> vector<2x16x8xf32>
    "tpu.trace_stop"() : () -> ()
    %95 = vector.shape_cast %94 : vector<2x16x8xf32> to vector<32x8xf32>
    %c1_43 = arith.constant 1 : index
    %c0_44 = arith.constant 0 : index
    %c0_45 = arith.constant 0 : index
    %96 = vector.load %arg3[%c1_43, %c0_44, %c0_45] : memref<8x8x32xf32, #tpu.memory_space<vmem>>, vector<1x8x32xf32>
    %97 = vector.shape_cast %96 : vector<1x8x32xf32> to vector<8x32xf32>
    %cst_46 = arith.constant dense<0.000000e+00> : vector<32x32xf32>
    %98 = tpu.matmul %95, %97, %cst_46 {dimension_numbers = #tpu.dot_dimension_numbers<[1], [0], [0], [1], [0, 0, 1, 1], [], []>} : vector<32x8xf32>, vector<8x32xf32>, vector<32x32xf32> -> vector<32x32xf32>
    %99 = arith.addf %68, %98 : vector<32x32xf32>
    %c2 = arith.constant 2 : index
    %c0_47 = arith.constant 0 : index
    %c0_48 = arith.constant 0 : index
    %100 = vector.load %arg2[%c2, %c0_47, %c0_48] : memref<24x32x8xf32, #tpu.memory_space<vmem>>, vector<1x32x8xf32>
    %101 = vector.shape_cast %100 : vector<1x32x8xf32> to vector<32x8xf32>
    %cst_49 = arith.constant dense<0.000000e+00> : vector<32x8xf32>
    %102 = tpu.matmul %36, %101, %cst_49 {dimension_numbers = #tpu.dot_dimension_numbers<[1], [0], [0], [1], [0, 0, 1, 1], [], []>} : vector<32x32xf32>, vector<32x8xf32>, vector<32x8xf32> -> vector<32x8xf32>
    %103 = vector.shape_cast %102 : vector<32x8xf32> to vector<2x16x8xf32>
    %c6 = arith.constant 6 : index
    %c0_50 = arith.constant 0 : index
    %c0_51 = arith.constant 0 : index
    %104 = vector.load %arg2[%c6, %c0_50, %c0_51] : memref<24x32x8xf32, #tpu.memory_space<vmem>>, vector<1x32x8xf32>
    %105 = vector.shape_cast %104 : vector<1x32x8xf32> to vector<32x8xf32>
    %cst_52 = arith.constant dense<0.000000e+00> : vector<32x8xf32>
    %106 = tpu.matmul %36, %105, %cst_52 {dimension_numbers = #tpu.dot_dimension_numbers<[1], [0], [0], [1], [0, 0, 1, 1], [], []>} : vector<32x32xf32>, vector<32x8xf32>, vector<32x8xf32> -> vector<32x8xf32>
    %107 = vector.shape_cast %106 : vector<32x8xf32> to vector<2x16x8xf32>
    %c10 = arith.constant 10 : index
    %c0_53 = arith.constant 0 : index
    %c0_54 = arith.constant 0 : index
    %108 = vector.load %arg2[%c10, %c0_53, %c0_54] : memref<24x32x8xf32, #tpu.memory_space<vmem>>, vector<1x32x8xf32>
    %109 = vector.shape_cast %108 : vector<1x32x8xf32> to vector<32x8xf32>
    %cst_55 = arith.constant dense<0.000000e+00> : vector<32x8xf32>
    %110 = tpu.matmul %36, %109, %cst_55 {dimension_numbers = #tpu.dot_dimension_numbers<[1], [0], [0], [1], [0, 0, 1, 1], [], []>} : vector<32x32xf32>, vector<32x8xf32>, vector<32x8xf32> -> vector<32x8xf32>
    %111 = vector.shape_cast %110 : vector<32x8xf32> to vector<2x16x8xf32>
    "tpu.trace_start"() <{level = 10 : i32, message = "btd,bsd->bts"}> : () -> ()
    %cst_56 = arith.constant dense<0.000000e+00> : vector<2x16x16xf32>
    %112 = tpu.matmul %107, %103, %cst_56 {dimension_numbers = #tpu.dot_dimension_numbers<[2], [2], [1], [1], [0, 0, 0, 1, 1, 1], [0], [0]>} : vector<2x16x8xf32>, vector<2x16x8xf32>, vector<2x16x16xf32> -> vector<2x16x16xf32>
    "tpu.trace_stop"() : () -> ()
    %113 = vector.shape_cast %7 : vector<16x16xf32> to vector<1x16x16xf32>
    %114 = vector.broadcast %113 : vector<1x16x16xf32> to vector<2x16x16xf32>
    %115 = arith.addf %112, %114 : vector<2x16x16xf32>
    %cst_57 = arith.constant dense<0xFF800000> : vector<2x16xf32>
    %116 = vector.multi_reduction <maximumf>, %115, %cst_57 [2] : vector<2x16x16xf32> to vector<2x16xf32>
    %117 = vector.shape_cast %116 : vector<2x16xf32> to vector<2x16x1xf32>
    %118 = vector.broadcast %117 : vector<2x16x1xf32> to vector<2x16x16xf32>
    %119 = arith.subf %115, %118 : vector<2x16x16xf32>
    %120 = math.exp %119 : vector<2x16x16xf32>
    %cst_58 = arith.constant dense<0.000000e+00> : vector<2x16xf32>
    %121 = vector.multi_reduction <add>, %120, %cst_58 [2] : vector<2x16x16xf32> to vector<2x16xf32>
    %122 = vector.shape_cast %121 : vector<2x16xf32> to vector<2x16x1xf32>
    %123 = vector.broadcast %122 : vector<2x16x1xf32> to vector<2x16x16xf32>
    %124 = arith.divf %120, %123 : vector<2x16x16xf32>
    "tpu.trace_start"() <{level = 10 : i32, message = "bts,bsd->btd"}> : () -> ()
    %cst_59 = arith.constant dense<0.000000e+00> : vector<2x16x8xf32>
    %125 = tpu.matmul %124, %111, %cst_59 {dimension_numbers = #tpu.dot_dimension_numbers<[2], [1], [1], [2], [0, 0, 0, 1, 1, 2], [0], [0]>} : vector<2x16x16xf32>, vector<2x16x8xf32>, vector<2x16x8xf32> -> vector<2x16x8xf32>
    "tpu.trace_stop"() : () -> ()
    %126 = vector.shape_cast %125 : vector<2x16x8xf32> to vector<32x8xf32>
    %c2_60 = arith.constant 2 : index
    %c0_61 = arith.constant 0 : index
    %c0_62 = arith.constant 0 : index
    %127 = vector.load %arg3[%c2_60, %c0_61, %c0_62] : memref<8x8x32xf32, #tpu.memory_space<vmem>>, vector<1x8x32xf32>
    %128 = vector.shape_cast %127 : vector<1x8x32xf32> to vector<8x32xf32>
    %cst_63 = arith.constant dense<0.000000e+00> : vector<32x32xf32>
    %129 = tpu.matmul %126, %128, %cst_63 {dimension_numbers = #tpu.dot_dimension_numbers<[1], [0], [0], [1], [0, 0, 1, 1], [], []>} : vector<32x8xf32>, vector<8x32xf32>, vector<32x32xf32> -> vector<32x32xf32>
    %130 = arith.addf %99, %129 : vector<32x32xf32>
    %c3 = arith.constant 3 : index
    %c0_64 = arith.constant 0 : index
    %c0_65 = arith.constant 0 : index
    %131 = vector.load %arg2[%c3, %c0_64, %c0_65] : memref<24x32x8xf32, #tpu.memory_space<vmem>>, vector<1x32x8xf32>
    %132 = vector.shape_cast %131 : vector<1x32x8xf32> to vector<32x8xf32>
    %cst_66 = arith.constant dense<0.000000e+00> : vector<32x8xf32>
    %133 = tpu.matmul %36, %132, %cst_66 {dimension_numbers = #tpu.dot_dimension_numbers<[1], [0], [0], [1], [0, 0, 1, 1], [], []>} : vector<32x32xf32>, vector<32x8xf32>, vector<32x8xf32> -> vector<32x8xf32>
    %134 = vector.shape_cast %133 : vector<32x8xf32> to vector<2x16x8xf32>
    %c7 = arith.constant 7 : index
    %c0_67 = arith.constant 0 : index
    %c0_68 = arith.constant 0 : index
    %135 = vector.load %arg2[%c7, %c0_67, %c0_68] : memref<24x32x8xf32, #tpu.memory_space<vmem>>, vector<1x32x8xf32>
    %136 = vector.shape_cast %135 : vector<1x32x8xf32> to vector<32x8xf32>
    %cst_69 = arith.constant dense<0.000000e+00> : vector<32x8xf32>
    %137 = tpu.matmul %36, %136, %cst_69 {dimension_numbers = #tpu.dot_dimension_numbers<[1], [0], [0], [1], [0, 0, 1, 1], [], []>} : vector<32x32xf32>, vector<32x8xf32>, vector<32x8xf32> -> vector<32x8xf32>
    %138 = vector.shape_cast %137 : vector<32x8xf32> to vector<2x16x8xf32>
    %c11 = arith.constant 11 : index
    %c0_70 = arith.constant 0 : index
    %c0_71 = arith.constant 0 : index
    %139 = vector.load %arg2[%c11, %c0_70, %c0_71] : memref<24x32x8xf32, #tpu.memory_space<vmem>>, vector<1x32x8xf32>
    %140 = vector.shape_cast %139 : vector<1x32x8xf32> to vector<32x8xf32>
    %cst_72 = arith.constant dense<0.000000e+00> : vector<32x8xf32>
    %141 = tpu.matmul %36, %140, %cst_72 {dimension_numbers = #tpu.dot_dimension_numbers<[1], [0], [0], [1], [0, 0, 1, 1], [], []>} : vector<32x32xf32>, vector<32x8xf32>, vector<32x8xf32> -> vector<32x8xf32>
    %142 = vector.shape_cast %141 : vector<32x8xf32> to vector<2x16x8xf32>
    "tpu.trace_start"() <{level = 10 : i32, message = "btd,bsd->bts"}> : () -> ()
    %cst_73 = arith.constant dense<0.000000e+00> : vector<2x16x16xf32>
    %143 = tpu.matmul %138, %134, %cst_73 {dimension_numbers = #tpu.dot_dimension_numbers<[2], [2], [1], [1], [0, 0, 0, 1, 1, 1], [0], [0]>} : vector<2x16x8xf32>, vector<2x16x8xf32>, vector<2x16x16xf32> -> vector<2x16x16xf32>
    "tpu.trace_stop"() : () -> ()
    %144 = vector.shape_cast %7 : vector<16x16xf32> to vector<1x16x16xf32>
    %145 = vector.broadcast %144 : vector<1x16x16xf32> to vector<2x16x16xf32>
    %146 = arith.addf %143, %145 : vector<2x16x16xf32>
    %cst_74 = arith.constant dense<0xFF800000> : vector<2x16xf32>
    %147 = vector.multi_reduction <maximumf>, %146, %cst_74 [2] : vector<2x16x16xf32> to vector<2x16xf32>
    %148 = vector.shape_cast %147 : vector<2x16xf32> to vector<2x16x1xf32>
    %149 = vector.broadcast %148 : vector<2x16x1xf32> to vector<2x16x16xf32>
    %150 = arith.subf %146, %149 : vector<2x16x16xf32>
    %151 = math.exp %150 : vector<2x16x16xf32>
    %cst_75 = arith.constant dense<0.000000e+00> : vector<2x16xf32>
    %152 = vector.multi_reduction <add>, %151, %cst_75 [2] : vector<2x16x16xf32> to vector<2x16xf32>
    %153 = vector.shape_cast %152 : vector<2x16xf32> to vector<2x16x1xf32>
    %154 = vector.broadcast %153 : vector<2x16x1xf32> to vector<2x16x16xf32>
    %155 = arith.divf %151, %154 : vector<2x16x16xf32>
    "tpu.trace_start"() <{level = 10 : i32, message = "bts,bsd->btd"}> : () -> ()
    %cst_76 = arith.constant dense<0.000000e+00> : vector<2x16x8xf32>
    %156 = tpu.matmul %155, %142, %cst_76 {dimension_numbers = #tpu.dot_dimension_numbers<[2], [1], [1], [2], [0, 0, 0, 1, 1, 2], [0], [0]>} : vector<2x16x16xf32>, vector<2x16x8xf32>, vector<2x16x8xf32> -> vector<2x16x8xf32>
    "tpu.trace_stop"() : () -> ()
    %157 = vector.shape_cast %156 : vector<2x16x8xf32> to vector<32x8xf32>
    %c3_77 = arith.constant 3 : index
    %c0_78 = arith.constant 0 : index
    %c0_79 = arith.constant 0 : index
    %158 = vector.load %arg3[%c3_77, %c0_78, %c0_79] : memref<8x8x32xf32, #tpu.memory_space<vmem>>, vector<1x8x32xf32>
    %159 = vector.shape_cast %158 : vector<1x8x32xf32> to vector<8x32xf32>
    %cst_80 = arith.constant dense<0.000000e+00> : vector<32x32xf32>
    %160 = tpu.matmul %157, %159, %cst_80 {dimension_numbers = #tpu.dot_dimension_numbers<[1], [0], [0], [1], [0, 0, 1, 1], [], []>} : vector<32x8xf32>, vector<8x32xf32>, vector<32x32xf32> -> vector<32x32xf32>
    %161 = arith.addf %130, %160 : vector<32x32xf32>
    %162 = arith.addf %1, %161 : vector<32x32xf32>
    %163 = vector.broadcast %14 : vector<1x32xf32> to vector<32x32xf32>
    %164 = arith.addf %162, %163 : vector<32x32xf32>
    %cst_81 = arith.constant dense<0.000000e+00> : vector<32xf32>
    %165 = vector.multi_reduction <add>, %164, %cst_81 [1] : vector<32x32xf32> to vector<32xf32>
    %166 = vector.shape_cast %165 : vector<32xf32> to vector<32x1xf32>
    %cst_82 = arith.constant 3.200000e+01 : f32
    %167 = vector.broadcast %cst_82 : f32 to vector<32x1xf32>
    %168 = arith.divf %166, %167 : vector<32x1xf32>
    %169 = vector.broadcast %168 : vector<32x1xf32> to vector<32x32xf32>
    %170 = arith.subf %164, %169 : vector<32x32xf32>
    %171 = arith.mulf %170, %170 : vector<32x32xf32>
    %cst_83 = arith.constant dense<0.000000e+00> : vector<32xf32>
    %172 = vector.multi_reduction <add>, %171, %cst_83 [1] : vector<32x32xf32> to vector<32xf32>
    %173 = vector.shape_cast %172 : vector<32xf32> to vector<32x1xf32>
    %cst_84 = arith.constant 3.200000e+01 : f32
    %174 = vector.broadcast %cst_84 : f32 to vector<32x1xf32>
    %175 = arith.divf %173, %174 : vector<32x1xf32>
    %cst_85 = arith.constant 9.99999974E-6 : f32
    %176 = vector.broadcast %cst_85 : f32 to vector<32x1xf32>
    %177 = arith.addf %175, %176 : vector<32x1xf32>
    %178 = math.rsqrt %177 : vector<32x1xf32>
    %179 = vector.broadcast %178 : vector<32x1xf32> to vector<32x32xf32>
    %180 = arith.mulf %170, %179 : vector<32x32xf32>
    %181 = vector.broadcast %12 : vector<1x32xf32> to vector<32x32xf32>
    %182 = arith.mulf %180, %181 : vector<32x32xf32>
    %183 = vector.broadcast %13 : vector<1x32xf32> to vector<32x32xf32>
    %184 = arith.addf %182, %183 : vector<32x32xf32>
    %c0_86 = arith.constant 0 : index
    %c0_87 = arith.constant 0 : index
    %c0_88 = arith.constant 0 : index
    %185 = vector.load %arg4[%c0_86, %c0_87, %c0_88] : memref<2x32x128xf32, #tpu.memory_space<vmem>>, vector<1x32x128xf32>
    %186 = vector.shape_cast %185 : vector<1x32x128xf32> to vector<32x128xf32>
    %cst_89 = arith.constant dense<0.000000e+00> : vector<32x128xf32>
    %187 = tpu.matmul %184, %186, %cst_89 {dimension_numbers = #tpu.dot_dimension_numbers<[1], [0], [0], [1], [0, 0, 1, 1], [], []>} : vector<32x32xf32>, vector<32x128xf32>, vector<32x128xf32> -> vector<32x128xf32>
    %188 = vector.broadcast %16 : vector<1x128xf32> to vector<32x128xf32>
    %189 = arith.addf %187, %188 : vector<32x128xf32>
    %cst_90 = arith.constant 0.000000e+00 : f32
    %190 = vector.broadcast %cst_90 : f32 to vector<32x128xf32>
    %191 = arith.maximumf %189, %190 : vector<32x128xf32>
    %c0_91 = arith.constant 0 : index
    %c0_92 = arith.constant 0 : index
    %c0_93 = arith.constant 0 : index
    %192 = vector.load %arg5[%c0_91, %c0_92, %c0_93] : memref<2x128x32xf32, #tpu.memory_space<vmem>>, vector<1x128x32xf32>
    %193 = vector.shape_cast %192 : vector<1x128x32xf32> to vector<128x32xf32>
    %cst_94 = arith.constant dense<0.000000e+00> : vector<32x32xf32>
    %194 = tpu.matmul %191, %193, %cst_94 {dimension_numbers = #tpu.dot_dimension_numbers<[1], [0], [0], [1], [0, 0, 1, 1], [], []>} : vector<32x128xf32>, vector<128x32xf32>, vector<32x32xf32> -> vector<32x32xf32>
    %195 = vector.broadcast %15 : vector<1x32xf32> to vector<32x32xf32>
    %196 = arith.addf %194, %195 : vector<32x32xf32>
    %197 = arith.addf %164, %196 : vector<32x32xf32>
    %c1_95 = arith.constant 1 : index
    %c0_96 = arith.constant 0 : index
    %c0_97 = arith.constant 0 : index
    %198 = vector.load %arg1[%c1_95, %c0_96, %c0_97] : memref<2x8x128xf32, #tpu.memory_space<vmem>>, vector<1x8x128xf32>
    %199 = vector.shape_cast %198 : vector<1x8x128xf32> to vector<8x128xf32>
    %200 = vector.extract_strided_slice %199 {offsets = [0, 0], sizes = [1, 32], strides = [1, 1]} : vector<8x128xf32> to vector<1x32xf32>
    %201 = vector.extract_strided_slice %199 {offsets = [1, 0], sizes = [1, 32], strides = [1, 1]} : vector<8x128xf32> to vector<1x32xf32>
    %202 = vector.extract_strided_slice %199 {offsets = [2, 0], sizes = [1, 32], strides = [1, 1]} : vector<8x128xf32> to vector<1x32xf32>
    %203 = vector.extract_strided_slice %199 {offsets = [3, 0], sizes = [1, 32], strides = [1, 1]} : vector<8x128xf32> to vector<1x32xf32>
    %204 = vector.extract_strided_slice %199 {offsets = [4, 0], sizes = [1, 32], strides = [1, 1]} : vector<8x128xf32> to vector<1x32xf32>
    %205 = vector.extract_strided_slice %199 {offsets = [5, 0], sizes = [1, 32], strides = [1, 1]} : vector<8x128xf32> to vector<1x32xf32>
    %206 = vector.extract_strided_slice %199 {offsets = [6, 0], sizes = [1, 128], strides = [1, 1]} : vector<8x128xf32> to vector<1x128xf32>
    %cst_98 = arith.constant dense<0.000000e+00> : vector<32xf32>
    %207 = vector.multi_reduction <add>, %197, %cst_98 [1] : vector<32x32xf32> to vector<32xf32>
    %208 = vector.shape_cast %207 : vector<32xf32> to vector<32x1xf32>
    %cst_99 = arith.constant 3.200000e+01 : f32
    %209 = vector.broadcast %cst_99 : f32 to vector<32x1xf32>
    %210 = arith.divf %208, %209 : vector<32x1xf32>
    %211 = vector.broadcast %210 : vector<32x1xf32> to vector<32x32xf32>
    %212 = arith.subf %197, %211 : vector<32x32xf32>
    %213 = arith.mulf %212, %212 : vector<32x32xf32>
    %cst_100 = arith.constant dense<0.000000e+00> : vector<32xf32>
    %214 = vector.multi_reduction <add>, %213, %cst_100 [1] : vector<32x32xf32> to vector<32xf32>
    %215 = vector.shape_cast %214 : vector<32xf32> to vector<32x1xf32>
    %cst_101 = arith.constant 3.200000e+01 : f32
    %216 = vector.broadcast %cst_101 : f32 to vector<32x1xf32>
    %217 = arith.divf %215, %216 : vector<32x1xf32>
    %cst_102 = arith.constant 9.99999974E-6 : f32
    %218 = vector.broadcast %cst_102 : f32 to vector<32x1xf32>
    %219 = arith.addf %217, %218 : vector<32x1xf32>
    %220 = math.rsqrt %219 : vector<32x1xf32>
    %221 = vector.broadcast %220 : vector<32x1xf32> to vector<32x32xf32>
    %222 = arith.mulf %212, %221 : vector<32x32xf32>
    %223 = vector.broadcast %200 : vector<1x32xf32> to vector<32x32xf32>
    %224 = arith.mulf %222, %223 : vector<32x32xf32>
    %225 = vector.broadcast %201 : vector<1x32xf32> to vector<32x32xf32>
    %226 = arith.addf %224, %225 : vector<32x32xf32>
    %cst_103 = arith.constant 0.000000e+00 : f32
    %227 = vector.broadcast %cst_103 : f32 to vector<32x32xf32>
    %c12 = arith.constant 12 : index
    %c0_104 = arith.constant 0 : index
    %c0_105 = arith.constant 0 : index
    %228 = vector.load %arg2[%c12, %c0_104, %c0_105] : memref<24x32x8xf32, #tpu.memory_space<vmem>>, vector<1x32x8xf32>
    %229 = vector.shape_cast %228 : vector<1x32x8xf32> to vector<32x8xf32>
    %cst_106 = arith.constant dense<0.000000e+00> : vector<32x8xf32>
    %230 = tpu.matmul %226, %229, %cst_106 {dimension_numbers = #tpu.dot_dimension_numbers<[1], [0], [0], [1], [0, 0, 1, 1], [], []>} : vector<32x32xf32>, vector<32x8xf32>, vector<32x8xf32> -> vector<32x8xf32>
    %231 = vector.shape_cast %230 : vector<32x8xf32> to vector<2x16x8xf32>
    %c16 = arith.constant 16 : index
    %c0_107 = arith.constant 0 : index
    %c0_108 = arith.constant 0 : index
    %232 = vector.load %arg2[%c16, %c0_107, %c0_108] : memref<24x32x8xf32, #tpu.memory_space<vmem>>, vector<1x32x8xf32>
    %233 = vector.shape_cast %232 : vector<1x32x8xf32> to vector<32x8xf32>
    %cst_109 = arith.constant dense<0.000000e+00> : vector<32x8xf32>
    %234 = tpu.matmul %226, %233, %cst_109 {dimension_numbers = #tpu.dot_dimension_numbers<[1], [0], [0], [1], [0, 0, 1, 1], [], []>} : vector<32x32xf32>, vector<32x8xf32>, vector<32x8xf32> -> vector<32x8xf32>
    %235 = vector.shape_cast %234 : vector<32x8xf32> to vector<2x16x8xf32>
    %c20 = arith.constant 20 : index
    %c0_110 = arith.constant 0 : index
    %c0_111 = arith.constant 0 : index
    %236 = vector.load %arg2[%c20, %c0_110, %c0_111] : memref<24x32x8xf32, #tpu.memory_space<vmem>>, vector<1x32x8xf32>
    %237 = vector.shape_cast %236 : vector<1x32x8xf32> to vector<32x8xf32>
    %cst_112 = arith.constant dense<0.000000e+00> : vector<32x8xf32>
    %238 = tpu.matmul %226, %237, %cst_112 {dimension_numbers = #tpu.dot_dimension_numbers<[1], [0], [0], [1], [0, 0, 1, 1], [], []>} : vector<32x32xf32>, vector<32x8xf32>, vector<32x8xf32> -> vector<32x8xf32>
    %239 = vector.shape_cast %238 : vector<32x8xf32> to vector<2x16x8xf32>
    "tpu.trace_start"() <{level = 10 : i32, message = "btd,bsd->bts"}> : () -> ()
    %cst_113 = arith.constant dense<0.000000e+00> : vector<2x16x16xf32>
    %240 = tpu.matmul %235, %231, %cst_113 {dimension_numbers = #tpu.dot_dimension_numbers<[2], [2], [1], [1], [0, 0, 0, 1, 1, 1], [0], [0]>} : vector<2x16x8xf32>, vector<2x16x8xf32>, vector<2x16x16xf32> -> vector<2x16x16xf32>
    "tpu.trace_stop"() : () -> ()
    %241 = vector.shape_cast %7 : vector<16x16xf32> to vector<1x16x16xf32>
    %242 = vector.broadcast %241 : vector<1x16x16xf32> to vector<2x16x16xf32>
    %243 = arith.addf %240, %242 : vector<2x16x16xf32>
    %cst_114 = arith.constant dense<0xFF800000> : vector<2x16xf32>
    %244 = vector.multi_reduction <maximumf>, %243, %cst_114 [2] : vector<2x16x16xf32> to vector<2x16xf32>
    %245 = vector.shape_cast %244 : vector<2x16xf32> to vector<2x16x1xf32>
    %246 = vector.broadcast %245 : vector<2x16x1xf32> to vector<2x16x16xf32>
    %247 = arith.subf %243, %246 : vector<2x16x16xf32>
    %248 = math.exp %247 : vector<2x16x16xf32>
    %cst_115 = arith.constant dense<0.000000e+00> : vector<2x16xf32>
    %249 = vector.multi_reduction <add>, %248, %cst_115 [2] : vector<2x16x16xf32> to vector<2x16xf32>
    %250 = vector.shape_cast %249 : vector<2x16xf32> to vector<2x16x1xf32>
    %251 = vector.broadcast %250 : vector<2x16x1xf32> to vector<2x16x16xf32>
    %252 = arith.divf %248, %251 : vector<2x16x16xf32>
    "tpu.trace_start"() <{level = 10 : i32, message = "bts,bsd->btd"}> : () -> ()
    %cst_116 = arith.constant dense<0.000000e+00> : vector<2x16x8xf32>
    %253 = tpu.matmul %252, %239, %cst_116 {dimension_numbers = #tpu.dot_dimension_numbers<[2], [1], [1], [2], [0, 0, 0, 1, 1, 2], [0], [0]>} : vector<2x16x16xf32>, vector<2x16x8xf32>, vector<2x16x8xf32> -> vector<2x16x8xf32>
    "tpu.trace_stop"() : () -> ()
    %254 = vector.shape_cast %253 : vector<2x16x8xf32> to vector<32x8xf32>
    %c4_117 = arith.constant 4 : index
    %c0_118 = arith.constant 0 : index
    %c0_119 = arith.constant 0 : index
    %255 = vector.load %arg3[%c4_117, %c0_118, %c0_119] : memref<8x8x32xf32, #tpu.memory_space<vmem>>, vector<1x8x32xf32>
    %256 = vector.shape_cast %255 : vector<1x8x32xf32> to vector<8x32xf32>
    %cst_120 = arith.constant dense<0.000000e+00> : vector<32x32xf32>
    %257 = tpu.matmul %254, %256, %cst_120 {dimension_numbers = #tpu.dot_dimension_numbers<[1], [0], [0], [1], [0, 0, 1, 1], [], []>} : vector<32x8xf32>, vector<8x32xf32>, vector<32x32xf32> -> vector<32x32xf32>
    %258 = arith.addf %227, %257 : vector<32x32xf32>
    %c13 = arith.constant 13 : index
    %c0_121 = arith.constant 0 : index
    %c0_122 = arith.constant 0 : index
    %259 = vector.load %arg2[%c13, %c0_121, %c0_122] : memref<24x32x8xf32, #tpu.memory_space<vmem>>, vector<1x32x8xf32>
    %260 = vector.shape_cast %259 : vector<1x32x8xf32> to vector<32x8xf32>
    %cst_123 = arith.constant dense<0.000000e+00> : vector<32x8xf32>
    %261 = tpu.matmul %226, %260, %cst_123 {dimension_numbers = #tpu.dot_dimension_numbers<[1], [0], [0], [1], [0, 0, 1, 1], [], []>} : vector<32x32xf32>, vector<32x8xf32>, vector<32x8xf32> -> vector<32x8xf32>
    %262 = vector.shape_cast %261 : vector<32x8xf32> to vector<2x16x8xf32>
    %c17 = arith.constant 17 : index
    %c0_124 = arith.constant 0 : index
    %c0_125 = arith.constant 0 : index
    %263 = vector.load %arg2[%c17, %c0_124, %c0_125] : memref<24x32x8xf32, #tpu.memory_space<vmem>>, vector<1x32x8xf32>
    %264 = vector.shape_cast %263 : vector<1x32x8xf32> to vector<32x8xf32>
    %cst_126 = arith.constant dense<0.000000e+00> : vector<32x8xf32>
    %265 = tpu.matmul %226, %264, %cst_126 {dimension_numbers = #tpu.dot_dimension_numbers<[1], [0], [0], [1], [0, 0, 1, 1], [], []>} : vector<32x32xf32>, vector<32x8xf32>, vector<32x8xf32> -> vector<32x8xf32>
    %266 = vector.shape_cast %265 : vector<32x8xf32> to vector<2x16x8xf32>
    %c21 = arith.constant 21 : index
    %c0_127 = arith.constant 0 : index
    %c0_128 = arith.constant 0 : index
    %267 = vector.load %arg2[%c21, %c0_127, %c0_128] : memref<24x32x8xf32, #tpu.memory_space<vmem>>, vector<1x32x8xf32>
    %268 = vector.shape_cast %267 : vector<1x32x8xf32> to vector<32x8xf32>
    %cst_129 = arith.constant dense<0.000000e+00> : vector<32x8xf32>
    %269 = tpu.matmul %226, %268, %cst_129 {dimension_numbers = #tpu.dot_dimension_numbers<[1], [0], [0], [1], [0, 0, 1, 1], [], []>} : vector<32x32xf32>, vector<32x8xf32>, vector<32x8xf32> -> vector<32x8xf32>
    %270 = vector.shape_cast %269 : vector<32x8xf32> to vector<2x16x8xf32>
    "tpu.trace_start"() <{level = 10 : i32, message = "btd,bsd->bts"}> : () -> ()
    %cst_130 = arith.constant dense<0.000000e+00> : vector<2x16x16xf32>
    %271 = tpu.matmul %266, %262, %cst_130 {dimension_numbers = #tpu.dot_dimension_numbers<[2], [2], [1], [1], [0, 0, 0, 1, 1, 1], [0], [0]>} : vector<2x16x8xf32>, vector<2x16x8xf32>, vector<2x16x16xf32> -> vector<2x16x16xf32>
    "tpu.trace_stop"() : () -> ()
    %272 = vector.shape_cast %7 : vector<16x16xf32> to vector<1x16x16xf32>
    %273 = vector.broadcast %272 : vector<1x16x16xf32> to vector<2x16x16xf32>
    %274 = arith.addf %271, %273 : vector<2x16x16xf32>
    %cst_131 = arith.constant dense<0xFF800000> : vector<2x16xf32>
    %275 = vector.multi_reduction <maximumf>, %274, %cst_131 [2] : vector<2x16x16xf32> to vector<2x16xf32>
    %276 = vector.shape_cast %275 : vector<2x16xf32> to vector<2x16x1xf32>
    %277 = vector.broadcast %276 : vector<2x16x1xf32> to vector<2x16x16xf32>
    %278 = arith.subf %274, %277 : vector<2x16x16xf32>
    %279 = math.exp %278 : vector<2x16x16xf32>
    %cst_132 = arith.constant dense<0.000000e+00> : vector<2x16xf32>
    %280 = vector.multi_reduction <add>, %279, %cst_132 [2] : vector<2x16x16xf32> to vector<2x16xf32>
    %281 = vector.shape_cast %280 : vector<2x16xf32> to vector<2x16x1xf32>
    %282 = vector.broadcast %281 : vector<2x16x1xf32> to vector<2x16x16xf32>
    %283 = arith.divf %279, %282 : vector<2x16x16xf32>
    "tpu.trace_start"() <{level = 10 : i32, message = "bts,bsd->btd"}> : () -> ()
    %cst_133 = arith.constant dense<0.000000e+00> : vector<2x16x8xf32>
    %284 = tpu.matmul %283, %270, %cst_133 {dimension_numbers = #tpu.dot_dimension_numbers<[2], [1], [1], [2], [0, 0, 0, 1, 1, 2], [0], [0]>} : vector<2x16x16xf32>, vector<2x16x8xf32>, vector<2x16x8xf32> -> vector<2x16x8xf32>
    "tpu.trace_stop"() : () -> ()
    %285 = vector.shape_cast %284 : vector<2x16x8xf32> to vector<32x8xf32>
    %c5_134 = arith.constant 5 : index
    %c0_135 = arith.constant 0 : index
    %c0_136 = arith.constant 0 : index
    %286 = vector.load %arg3[%c5_134, %c0_135, %c0_136] : memref<8x8x32xf32, #tpu.memory_space<vmem>>, vector<1x8x32xf32>
    %287 = vector.shape_cast %286 : vector<1x8x32xf32> to vector<8x32xf32>
    %cst_137 = arith.constant dense<0.000000e+00> : vector<32x32xf32>
    %288 = tpu.matmul %285, %287, %cst_137 {dimension_numbers = #tpu.dot_dimension_numbers<[1], [0], [0], [1], [0, 0, 1, 1], [], []>} : vector<32x8xf32>, vector<8x32xf32>, vector<32x32xf32> -> vector<32x32xf32>
    %289 = arith.addf %258, %288 : vector<32x32xf32>
    %c14 = arith.constant 14 : index
    %c0_138 = arith.constant 0 : index
    %c0_139 = arith.constant 0 : index
    %290 = vector.load %arg2[%c14, %c0_138, %c0_139] : memref<24x32x8xf32, #tpu.memory_space<vmem>>, vector<1x32x8xf32>
    %291 = vector.shape_cast %290 : vector<1x32x8xf32> to vector<32x8xf32>
    %cst_140 = arith.constant dense<0.000000e+00> : vector<32x8xf32>
    %292 = tpu.matmul %226, %291, %cst_140 {dimension_numbers = #tpu.dot_dimension_numbers<[1], [0], [0], [1], [0, 0, 1, 1], [], []>} : vector<32x32xf32>, vector<32x8xf32>, vector<32x8xf32> -> vector<32x8xf32>
    %293 = vector.shape_cast %292 : vector<32x8xf32> to vector<2x16x8xf32>
    %c18 = arith.constant 18 : index
    %c0_141 = arith.constant 0 : index
    %c0_142 = arith.constant 0 : index
    %294 = vector.load %arg2[%c18, %c0_141, %c0_142] : memref<24x32x8xf32, #tpu.memory_space<vmem>>, vector<1x32x8xf32>
    %295 = vector.shape_cast %294 : vector<1x32x8xf32> to vector<32x8xf32>
    %cst_143 = arith.constant dense<0.000000e+00> : vector<32x8xf32>
    %296 = tpu.matmul %226, %295, %cst_143 {dimension_numbers = #tpu.dot_dimension_numbers<[1], [0], [0], [1], [0, 0, 1, 1], [], []>} : vector<32x32xf32>, vector<32x8xf32>, vector<32x8xf32> -> vector<32x8xf32>
    %297 = vector.shape_cast %296 : vector<32x8xf32> to vector<2x16x8xf32>
    %c22 = arith.constant 22 : index
    %c0_144 = arith.constant 0 : index
    %c0_145 = arith.constant 0 : index
    %298 = vector.load %arg2[%c22, %c0_144, %c0_145] : memref<24x32x8xf32, #tpu.memory_space<vmem>>, vector<1x32x8xf32>
    %299 = vector.shape_cast %298 : vector<1x32x8xf32> to vector<32x8xf32>
    %cst_146 = arith.constant dense<0.000000e+00> : vector<32x8xf32>
    %300 = tpu.matmul %226, %299, %cst_146 {dimension_numbers = #tpu.dot_dimension_numbers<[1], [0], [0], [1], [0, 0, 1, 1], [], []>} : vector<32x32xf32>, vector<32x8xf32>, vector<32x8xf32> -> vector<32x8xf32>
    %301 = vector.shape_cast %300 : vector<32x8xf32> to vector<2x16x8xf32>
    "tpu.trace_start"() <{level = 10 : i32, message = "btd,bsd->bts"}> : () -> ()
    %cst_147 = arith.constant dense<0.000000e+00> : vector<2x16x16xf32>
    %302 = tpu.matmul %297, %293, %cst_147 {dimension_numbers = #tpu.dot_dimension_numbers<[2], [2], [1], [1], [0, 0, 0, 1, 1, 1], [0], [0]>} : vector<2x16x8xf32>, vector<2x16x8xf32>, vector<2x16x16xf32> -> vector<2x16x16xf32>
    "tpu.trace_stop"() : () -> ()
    %303 = vector.shape_cast %7 : vector<16x16xf32> to vector<1x16x16xf32>
    %304 = vector.broadcast %303 : vector<1x16x16xf32> to vector<2x16x16xf32>
    %305 = arith.addf %302, %304 : vector<2x16x16xf32>
    %cst_148 = arith.constant dense<0xFF800000> : vector<2x16xf32>
    %306 = vector.multi_reduction <maximumf>, %305, %cst_148 [2] : vector<2x16x16xf32> to vector<2x16xf32>
    %307 = vector.shape_cast %306 : vector<2x16xf32> to vector<2x16x1xf32>
    %308 = vector.broadcast %307 : vector<2x16x1xf32> to vector<2x16x16xf32>
    %309 = arith.subf %305, %308 : vector<2x16x16xf32>
    %310 = math.exp %309 : vector<2x16x16xf32>
    %cst_149 = arith.constant dense<0.000000e+00> : vector<2x16xf32>
    %311 = vector.multi_reduction <add>, %310, %cst_149 [2] : vector<2x16x16xf32> to vector<2x16xf32>
    %312 = vector.shape_cast %311 : vector<2x16xf32> to vector<2x16x1xf32>
    %313 = vector.broadcast %312 : vector<2x16x1xf32> to vector<2x16x16xf32>
    %314 = arith.divf %310, %313 : vector<2x16x16xf32>
    "tpu.trace_start"() <{level = 10 : i32, message = "bts,bsd->btd"}> : () -> ()
    %cst_150 = arith.constant dense<0.000000e+00> : vector<2x16x8xf32>
    %315 = tpu.matmul %314, %301, %cst_150 {dimension_numbers = #tpu.dot_dimension_numbers<[2], [1], [1], [2], [0, 0, 0, 1, 1, 2], [0], [0]>} : vector<2x16x16xf32>, vector<2x16x8xf32>, vector<2x16x8xf32> -> vector<2x16x8xf32>
    "tpu.trace_stop"() : () -> ()
    %316 = vector.shape_cast %315 : vector<2x16x8xf32> to vector<32x8xf32>
    %c6_151 = arith.constant 6 : index
    %c0_152 = arith.constant 0 : index
    %c0_153 = arith.constant 0 : index
    %317 = vector.load %arg3[%c6_151, %c0_152, %c0_153] : memref<8x8x32xf32, #tpu.memory_space<vmem>>, vector<1x8x32xf32>
    %318 = vector.shape_cast %317 : vector<1x8x32xf32> to vector<8x32xf32>
    %cst_154 = arith.constant dense<0.000000e+00> : vector<32x32xf32>
    %319 = tpu.matmul %316, %318, %cst_154 {dimension_numbers = #tpu.dot_dimension_numbers<[1], [0], [0], [1], [0, 0, 1, 1], [], []>} : vector<32x8xf32>, vector<8x32xf32>, vector<32x32xf32> -> vector<32x32xf32>
    %320 = arith.addf %289, %319 : vector<32x32xf32>
    %c15 = arith.constant 15 : index
    %c0_155 = arith.constant 0 : index
    %c0_156 = arith.constant 0 : index
    %321 = vector.load %arg2[%c15, %c0_155, %c0_156] : memref<24x32x8xf32, #tpu.memory_space<vmem>>, vector<1x32x8xf32>
    %322 = vector.shape_cast %321 : vector<1x32x8xf32> to vector<32x8xf32>
    %cst_157 = arith.constant dense<0.000000e+00> : vector<32x8xf32>
    %323 = tpu.matmul %226, %322, %cst_157 {dimension_numbers = #tpu.dot_dimension_numbers<[1], [0], [0], [1], [0, 0, 1, 1], [], []>} : vector<32x32xf32>, vector<32x8xf32>, vector<32x8xf32> -> vector<32x8xf32>
    %324 = vector.shape_cast %323 : vector<32x8xf32> to vector<2x16x8xf32>
    %c19 = arith.constant 19 : index
    %c0_158 = arith.constant 0 : index
    %c0_159 = arith.constant 0 : index
    %325 = vector.load %arg2[%c19, %c0_158, %c0_159] : memref<24x32x8xf32, #tpu.memory_space<vmem>>, vector<1x32x8xf32>
    %326 = vector.shape_cast %325 : vector<1x32x8xf32> to vector<32x8xf32>
    %cst_160 = arith.constant dense<0.000000e+00> : vector<32x8xf32>
    %327 = tpu.matmul %226, %326, %cst_160 {dimension_numbers = #tpu.dot_dimension_numbers<[1], [0], [0], [1], [0, 0, 1, 1], [], []>} : vector<32x32xf32>, vector<32x8xf32>, vector<32x8xf32> -> vector<32x8xf32>
    %328 = vector.shape_cast %327 : vector<32x8xf32> to vector<2x16x8xf32>
    %c23 = arith.constant 23 : index
    %c0_161 = arith.constant 0 : index
    %c0_162 = arith.constant 0 : index
    %329 = vector.load %arg2[%c23, %c0_161, %c0_162] : memref<24x32x8xf32, #tpu.memory_space<vmem>>, vector<1x32x8xf32>
    %330 = vector.shape_cast %329 : vector<1x32x8xf32> to vector<32x8xf32>
    %cst_163 = arith.constant dense<0.000000e+00> : vector<32x8xf32>
    %331 = tpu.matmul %226, %330, %cst_163 {dimension_numbers = #tpu.dot_dimension_numbers<[1], [0], [0], [1], [0, 0, 1, 1], [], []>} : vector<32x32xf32>, vector<32x8xf32>, vector<32x8xf32> -> vector<32x8xf32>
    %332 = vector.shape_cast %331 : vector<32x8xf32> to vector<2x16x8xf32>
    "tpu.trace_start"() <{level = 10 : i32, message = "btd,bsd->bts"}> : () -> ()
    %cst_164 = arith.constant dense<0.000000e+00> : vector<2x16x16xf32>
    %333 = tpu.matmul %328, %324, %cst_164 {dimension_numbers = #tpu.dot_dimension_numbers<[2], [2], [1], [1], [0, 0, 0, 1, 1, 1], [0], [0]>} : vector<2x16x8xf32>, vector<2x16x8xf32>, vector<2x16x16xf32> -> vector<2x16x16xf32>
    "tpu.trace_stop"() : () -> ()
    %334 = vector.shape_cast %7 : vector<16x16xf32> to vector<1x16x16xf32>
    %335 = vector.broadcast %334 : vector<1x16x16xf32> to vector<2x16x16xf32>
    %336 = arith.addf %333, %335 : vector<2x16x16xf32>
    %cst_165 = arith.constant dense<0xFF800000> : vector<2x16xf32>
    %337 = vector.multi_reduction <maximumf>, %336, %cst_165 [2] : vector<2x16x16xf32> to vector<2x16xf32>
    %338 = vector.shape_cast %337 : vector<2x16xf32> to vector<2x16x1xf32>
    %339 = vector.broadcast %338 : vector<2x16x1xf32> to vector<2x16x16xf32>
    %340 = arith.subf %336, %339 : vector<2x16x16xf32>
    %341 = math.exp %340 : vector<2x16x16xf32>
    %cst_166 = arith.constant dense<0.000000e+00> : vector<2x16xf32>
    %342 = vector.multi_reduction <add>, %341, %cst_166 [2] : vector<2x16x16xf32> to vector<2x16xf32>
    %343 = vector.shape_cast %342 : vector<2x16xf32> to vector<2x16x1xf32>
    %344 = vector.broadcast %343 : vector<2x16x1xf32> to vector<2x16x16xf32>
    %345 = arith.divf %341, %344 : vector<2x16x16xf32>
    "tpu.trace_start"() <{level = 10 : i32, message = "bts,bsd->btd"}> : () -> ()
    %cst_167 = arith.constant dense<0.000000e+00> : vector<2x16x8xf32>
    %346 = tpu.matmul %345, %332, %cst_167 {dimension_numbers = #tpu.dot_dimension_numbers<[2], [1], [1], [2], [0, 0, 0, 1, 1, 2], [0], [0]>} : vector<2x16x16xf32>, vector<2x16x8xf32>, vector<2x16x8xf32> -> vector<2x16x8xf32>
    "tpu.trace_stop"() : () -> ()
    %347 = vector.shape_cast %346 : vector<2x16x8xf32> to vector<32x8xf32>
    %c7_168 = arith.constant 7 : index
    %c0_169 = arith.constant 0 : index
    %c0_170 = arith.constant 0 : index
    %348 = vector.load %arg3[%c7_168, %c0_169, %c0_170] : memref<8x8x32xf32, #tpu.memory_space<vmem>>, vector<1x8x32xf32>
    %349 = vector.shape_cast %348 : vector<1x8x32xf32> to vector<8x32xf32>
    %cst_171 = arith.constant dense<0.000000e+00> : vector<32x32xf32>
    %350 = tpu.matmul %347, %349, %cst_171 {dimension_numbers = #tpu.dot_dimension_numbers<[1], [0], [0], [1], [0, 0, 1, 1], [], []>} : vector<32x8xf32>, vector<8x32xf32>, vector<32x32xf32> -> vector<32x32xf32>
    %351 = arith.addf %320, %350 : vector<32x32xf32>
    %352 = arith.addf %197, %351 : vector<32x32xf32>
    %353 = vector.broadcast %204 : vector<1x32xf32> to vector<32x32xf32>
    %354 = arith.addf %352, %353 : vector<32x32xf32>
    %cst_172 = arith.constant dense<0.000000e+00> : vector<32xf32>
    %355 = vector.multi_reduction <add>, %354, %cst_172 [1] : vector<32x32xf32> to vector<32xf32>
    %356 = vector.shape_cast %355 : vector<32xf32> to vector<32x1xf32>
    %cst_173 = arith.constant 3.200000e+01 : f32
    %357 = vector.broadcast %cst_173 : f32 to vector<32x1xf32>
    %358 = arith.divf %356, %357 : vector<32x1xf32>
    %359 = vector.broadcast %358 : vector<32x1xf32> to vector<32x32xf32>
    %360 = arith.subf %354, %359 : vector<32x32xf32>
    %361 = arith.mulf %360, %360 : vector<32x32xf32>
    %cst_174 = arith.constant dense<0.000000e+00> : vector<32xf32>
    %362 = vector.multi_reduction <add>, %361, %cst_174 [1] : vector<32x32xf32> to vector<32xf32>
    %363 = vector.shape_cast %362 : vector<32xf32> to vector<32x1xf32>
    %cst_175 = arith.constant 3.200000e+01 : f32
    %364 = vector.broadcast %cst_175 : f32 to vector<32x1xf32>
    %365 = arith.divf %363, %364 : vector<32x1xf32>
    %cst_176 = arith.constant 9.99999974E-6 : f32
    %366 = vector.broadcast %cst_176 : f32 to vector<32x1xf32>
    %367 = arith.addf %365, %366 : vector<32x1xf32>
    %368 = math.rsqrt %367 : vector<32x1xf32>
    %369 = vector.broadcast %368 : vector<32x1xf32> to vector<32x32xf32>
    %370 = arith.mulf %360, %369 : vector<32x32xf32>
    %371 = vector.broadcast %202 : vector<1x32xf32> to vector<32x32xf32>
    %372 = arith.mulf %370, %371 : vector<32x32xf32>
    %373 = vector.broadcast %203 : vector<1x32xf32> to vector<32x32xf32>
    %374 = arith.addf %372, %373 : vector<32x32xf32>
    %c1_177 = arith.constant 1 : index
    %c0_178 = arith.constant 0 : index
    %c0_179 = arith.constant 0 : index
    %375 = vector.load %arg4[%c1_177, %c0_178, %c0_179] : memref<2x32x128xf32, #tpu.memory_space<vmem>>, vector<1x32x128xf32>
    %376 = vector.shape_cast %375 : vector<1x32x128xf32> to vector<32x128xf32>
    %cst_180 = arith.constant dense<0.000000e+00> : vector<32x128xf32>
    %377 = tpu.matmul %374, %376, %cst_180 {dimension_numbers = #tpu.dot_dimension_numbers<[1], [0], [0], [1], [0, 0, 1, 1], [], []>} : vector<32x32xf32>, vector<32x128xf32>, vector<32x128xf32> -> vector<32x128xf32>
    %378 = vector.broadcast %206 : vector<1x128xf32> to vector<32x128xf32>
    %379 = arith.addf %377, %378 : vector<32x128xf32>
    %cst_181 = arith.constant 0.000000e+00 : f32
    %380 = vector.broadcast %cst_181 : f32 to vector<32x128xf32>
    %381 = arith.maximumf %379, %380 : vector<32x128xf32>
    %c1_182 = arith.constant 1 : index
    %c0_183 = arith.constant 0 : index
    %c0_184 = arith.constant 0 : index
    %382 = vector.load %arg5[%c1_182, %c0_183, %c0_184] : memref<2x128x32xf32, #tpu.memory_space<vmem>>, vector<1x128x32xf32>
    %383 = vector.shape_cast %382 : vector<1x128x32xf32> to vector<128x32xf32>
    %cst_185 = arith.constant dense<0.000000e+00> : vector<32x32xf32>
    %384 = tpu.matmul %381, %383, %cst_185 {dimension_numbers = #tpu.dot_dimension_numbers<[1], [0], [0], [1], [0, 0, 1, 1], [], []>} : vector<32x128xf32>, vector<128x32xf32>, vector<32x32xf32> -> vector<32x32xf32>
    %385 = vector.broadcast %205 : vector<1x32xf32> to vector<32x32xf32>
    %386 = arith.addf %384, %385 : vector<32x32xf32>
    %387 = arith.addf %354, %386 : vector<32x32xf32>
    %c0_186 = arith.constant 0 : index
    %c0_187 = arith.constant 0 : index
    %388 = vector.load %arg6[%c0_186, %c0_187] : memref<40x128xf32, #tpu.memory_space<vmem>>, vector<40x128xf32>
    %389 = vector.extract_strided_slice %388 {offsets = [0, 0], sizes = [32, 128], strides = [1, 1]} : vector<40x128xf32> to vector<32x128xf32>
    %390 = vector.extract_strided_slice %388 {offsets = [32, 0], sizes = [1, 32], strides = [1, 1]} : vector<40x128xf32> to vector<1x32xf32>
    %391 = vector.extract_strided_slice %388 {offsets = [33, 0], sizes = [1, 32], strides = [1, 1]} : vector<40x128xf32> to vector<1x32xf32>
    %392 = vector.extract_strided_slice %388 {offsets = [34, 0], sizes = [1, 128], strides = [1, 1]} : vector<40x128xf32> to vector<1x128xf32>
    %cst_188 = arith.constant dense<0.000000e+00> : vector<32xf32>
    %393 = vector.multi_reduction <add>, %387, %cst_188 [1] : vector<32x32xf32> to vector<32xf32>
    %394 = vector.shape_cast %393 : vector<32xf32> to vector<32x1xf32>
    %cst_189 = arith.constant 3.200000e+01 : f32
    %395 = vector.broadcast %cst_189 : f32 to vector<32x1xf32>
    %396 = arith.divf %394, %395 : vector<32x1xf32>
    %397 = vector.broadcast %396 : vector<32x1xf32> to vector<32x32xf32>
    %398 = arith.subf %387, %397 : vector<32x32xf32>
    %399 = arith.mulf %398, %398 : vector<32x32xf32>
    %cst_190 = arith.constant dense<0.000000e+00> : vector<32xf32>
    %400 = vector.multi_reduction <add>, %399, %cst_190 [1] : vector<32x32xf32> to vector<32xf32>
    %401 = vector.shape_cast %400 : vector<32xf32> to vector<32x1xf32>
    %cst_191 = arith.constant 3.200000e+01 : f32
    %402 = vector.broadcast %cst_191 : f32 to vector<32x1xf32>
    %403 = arith.divf %401, %402 : vector<32x1xf32>
    %cst_192 = arith.constant 9.99999974E-6 : f32
    %404 = vector.broadcast %cst_192 : f32 to vector<32x1xf32>
    %405 = arith.addf %403, %404 : vector<32x1xf32>
    %406 = math.rsqrt %405 : vector<32x1xf32>
    %407 = vector.broadcast %406 : vector<32x1xf32> to vector<32x32xf32>
    %408 = arith.mulf %398, %407 : vector<32x32xf32>
    %409 = vector.broadcast %390 : vector<1x32xf32> to vector<32x32xf32>
    %410 = arith.mulf %408, %409 : vector<32x32xf32>
    %411 = vector.broadcast %391 : vector<1x32xf32> to vector<32x32xf32>
    %412 = arith.addf %410, %411 : vector<32x32xf32>
    %cst_193 = arith.constant dense<0.000000e+00> : vector<32x128xf32>
    %413 = tpu.matmul %412, %389, %cst_193 {dimension_numbers = #tpu.dot_dimension_numbers<[1], [0], [0], [1], [0, 0, 1, 1], [], []>} : vector<32x32xf32>, vector<32x128xf32>, vector<32x128xf32> -> vector<32x128xf32>
    %414 = vector.broadcast %392 : vector<1x128xf32> to vector<32x128xf32>
    %415 = arith.addf %413, %414 : vector<32x128xf32>
    %c0_194 = arith.constant 0 : index
    %c0_195 = arith.constant 0 : index
    %416 = vector.load %arg7[%c0_194, %c0_195] : memref<32x128xf32, #tpu.memory_space<vmem>>, vector<32x128xf32>
    tpu.vector_store %arg7[%c0_194, %c0_195], %415 {strides = array<i32>} : memref<32x128xf32, #tpu.memory_space<vmem>>, vector<32x128xf32>,
    return
  }
}

</mosaic_0001>

<bundles_post_ra>
// kernel: _lambda_.1
= control target key start
LH: loop header
LB: loop body
LE: loop exit
PB: predicated region body
PF: predicated region fallthrough
CT: control target
= control target key end

     0   :  { %vm41_vm0 = vcmask 261120   ;;  %s10096_s0 = inlined_call_operand.vmem [shape: f32[2,16,32], index: 0, kind: input, shape index: {}]   ;;  %s10097_s1 = inlined_call_operand.vmem [shape: f32[2,8,128], index: 1, kind: input, shape index: {}]   ;;  %s10098_s2 = inlined_call_operand.vmem [shape: f32[24,32,8], index: 2, kind: input, shape index: {}]   ;;  %s10099_s3 = inlined_call_operand.vmem [shape: f32[8,8,32], index: 3, kind: input, shape index: {}]   ;;  %s10100_s4 = inlined_call_operand.vmem [shape: f32[2,32,128], index: 4, kind: input, shape index: {}]   ;;  %s10101_s5 = inlined_call_operand.vmem [shape: f32[2,128,32], index: 5, kind: input, shape index: {}]   ;;  %s10102_s6 = inlined_call_operand.vmem [shape: f32[40,128], index: 6, kind: input, shape index: {}]   ;;  %s10103_s7 = inlined_call_operand.hbm [shape: f32[32,128], index: 7, kind: output, shape index: {}]  }
   0x1   :  { %v27_v0 = vld [vmem:[%s10096_s0] sm:$0xff]  ;;  %v29_v1 = vld [vmem:[%s10096_s0 + $0x10] sm:$0xff]  ;;  %v28_v2 = vld [vmem:[%s10096_s0 + $0x8] sm:$0xff] }
   0x2   :  { %v42_v3 = vsel %vm41_vm0, %v27_v0, 0.0  ;;  %v48_v4 = vsel %vm41_vm0, %v29_v1, 0.0  ;;  %v30_v5 = vld [vmem:[%s10096_s0 + $0x18] sm:$0xff] }
   0x3   :  { %12 = vsyncpa [#allocation3], 0  ;;  %43 = vadd.xlane.f32.xlu0 %v42_v3  ;;  %49 = vadd.xlane.f32.xlu1 %v48_v4  ;;  %v45_v6 = vsel %vm41_vm0, %v28_v2, 0.0  ;;  %v51_v7 = vsel %vm41_vm0, %v30_v5, 0.0  ;;  %v114_v28 = vld [vmem:[%s10098_s2 + $0x18] sm:$0xff]  ;;  %v113_v29 = vld [vmem:[%s10098_s2 + $0x10] sm:$0xff]  ;;  %v31_v38 = vlaneseq }
   0x4   :  { %7785 = vmatprep.subr.mxu0 %v114_v28  ;;  %v112_v30 = vld [vmem:[%s10098_s2 + $0x8] sm:$0xff]  ;;  %v111_v31 = vld [vmem:[%s10098_s2] sm:$0xff]  ;;  %v7012_v32 = vld [vmem:[%s10098_s2 + $0x98] sm:$0xff]  ;;  %vm392_vm1 = vcmask 64512   ;;  %vm567_vm4 = vcmask 130048  }
   0x5   :  { %7786 = vmatpush3.msra.mxu0 %v114_v28  ;;  %v8811_v44 = vshrl.u32 %v31_v38, 7  ;;  %v40_v48 = vld [vmem:[%s10097_s1] sm:$0xff]  ;;  %v7010_v4 = vld [vmem:[%s10098_s2 + $0x88] sm:$0xff] }
   0x6   :  { %7787 = vmatprep.subr.mxu0 %v113_v29  ;;  %v7054_v28 = vld [vmem:[%s10098_s2 + $0x128] sm:$0xff] }
   0x7   :  { %46 = vadd.xlane.f32.xlu0 %v45_v6  ;;  %52 = vadd.xlane.f32.xlu1 %v51_v7  ;;  %v8814_v47 = vsub.s32 0, %v8811_v44  ;;  %v8820_v49 = vsub.s32 1, %v8811_v44  ;;  %v7009_v6 = vld [vmem:[%s10098_s2 + $0x80] sm:$0xff]  ;;  %v7020_v7 = vld [vmem:[%s10098_s2 + $0x118] sm:$0xff] }
   0x8   :  { %7788 = vmatpush3.msra.mxu0 %v113_v29  ;;  %v7053_v29 = vld [vmem:[%s10098_s2 + $0x120] sm:$0xff] }
   0x9   :  { %7789 = vmatprep.subr.mxu0 %v112_v30  ;;  %v98_v50 = vrot.slane %v40_v48, %v8814_v47  ;;  %v106_v52 = vrot.slane %v40_v48, %v8820_v49 }
   0xa   :  { %7790 = vmatpush3.msra.mxu0 %v112_v30  ;;  %v33_v30 = vadd.s32 8, %v8811_v44 }
   0xb   :  { %7791 = vmatprep.subr.mxu0 %v111_v31 }
   0xc   :  { %7792 = vmatpush3.msra.mxu0 %v111_v31  ;;  %v35_v31 = vand.u32 127, %v31_v38 }
   0xd   :  { %7799 = vmatprep.subr.mxu0 %v7012_v32 }
   0xe   :  { %vm37_vm2 = vcmp.ge.s32.totalorder %v33_v30, %v35_v31  ;;  %vm36_vm3 = vcmp.ge.s32.totalorder %v8811_v44, %v35_v31  ;;  %v7045_v30 = vld [vmem:[%s10098_s2 + $0xa0] sm:$0xff] }
  0x8c   :  { %v44_v8 = vpop.xlane.xlu0 %43  ;;  %v50_v9 = vpop.xlane.xlu1 %49 }
  0x8d   :  { %v55_v10 = vmul.f32 0.03125, %v44_v8  ;;  %v57_v11 = vmul.f32 0.03125, %v50_v9  ;;  %v7019_v8 = vld [vmem:[%s10098_s2 + $0x110] sm:$0xff]  ;;  %v7018_v9 = vld [vmem:[%s10098_s2 + $0x108] sm:$0xff] }
  0x8f   :  { %v59_v12 = vsub.f32 %v27_v0, %v55_v10  ;;  %v8787_v13 = vsub.f32 %v29_v1, %v57_v11  ;;  %v7017_v10 = vld [vmem:[%s10098_s2 + $0x100] sm:$0xff] }
  0x90   :  { %v47_v14 = vpop.xlane.xlu0 %46  ;;  %v53_v15 = vpop.xlane.xlu1 %52 }
  0x91   :  { %v56_v16 = vmul.f32 0.03125, %v47_v14  ;;  %v58_v17 = vmul.f32 0.03125, %v53_v15  ;;  %v63_v18 = vmul.f32 %v59_v12, %v59_v12  ;;  %v65_v19 = vmul.f32 %v8787_v13, %v8787_v13 }
  0x93   :  { %v60_v20 = vsub.f32 %v28_v2, %v56_v16  ;;  %v62_v21 = vsub.f32 %v30_v5, %v58_v17  ;;  %v67_v22 = vsel %vm41_vm0, %v63_v18, 0.0  ;;  %v73_v23 = vsel %vm41_vm0, %v65_v19, 0.0  ;;  %v7011_v2 = vld [vmem:[%s10098_s2 + $0x90] sm:$0xff]  ;;  %v7040_v16 = vld [vmem:[%s10098_s2 + $0x38] sm:$0xff] }
  0x94   :  { %68 = vadd.xlane.f32.xlu0 %v67_v22  ;;  %v7038_v22 = vld [vmem:[%s10098_s2 + $0x28] sm:$0xff] }
  0x95   :  { %v64_v24 = vmul.f32 %v60_v20, %v60_v20  ;;  %v66_v25 = vmul.f32 %v62_v21, %v62_v21 }
  0x97   :  { %v70_v26 = vsel %vm41_vm0, %v64_v24, 0.0  ;;  %v76_v27 = vsel %vm41_vm0, %v66_v25, 0.0  ;;  %v7037_v24 = vld [vmem:[%s10098_s2 + $0x20] sm:$0xff] }
  0x98   :  { %74 = vadd.xlane.f32.xlu0 %v73_v23  ;;  %71 = vadd.xlane.f32.xlu1 %v70_v26  ;;  %v7056_v26 = vld [vmem:[%s10098_s2 + $0x138] sm:$0xff] }
  0x9c   :  { %77 = vadd.xlane.f32.xlu1 %v76_v27  ;;  %v7055_v27 = vld [vmem:[%s10098_s2 + $0x130] sm:$0xff] }
 0x11d   :  { %v69_v33 = vpop.xlane.xlu0 %68 }
 0x11e   :  { %v79_v34 = vmul.f32 0.03125, %v69_v33 }
 0x120   :  { %v83_v35 = vadd.f32 1e-05, %v79_v34 }
 0x121   :  { %v72_v36 = vpop.xlane.xlu1 %71  ;;  %v75_v37 = vpop.xlane.xlu0 %74 }
 0x122   :  { %8531 = vrsqrt.f32 %v83_v35  ;;  %v80_v39 = vmul.f32 0.03125, %v72_v36  ;;  %v81_v40 = vmul.f32 0.03125, %v75_v37 }
 0x124   :  { %v84_v41 = vadd.f32 1e-05, %v80_v39  ;;  %v85_v42 = vadd.f32 1e-05, %v81_v40 }
 0x125   :  { %v78_v43 = vpop.xlane.xlu1 %77 }
 0x126   :  { %8533 = vrsqrt.f32 %v84_v41  ;;  %v82_v45 = vmul.f32 0.03125, %v78_v43 }
 0x127   :  { %8535 = vrsqrt.f32 %v85_v42 }
 0x128   :  { %v86_v46 = vadd.f32 1e-05, %v82_v45 }
 0x12a   :  { %8537 = vrsqrt.f32 %v86_v46 }
 0x12f   :  { %v8532_v51 = vpop.eup %8531 }
 0x130   :  { %v91_v53 = vmul.f32 %v8532_v51, %v59_v12 }
 0x132   :  { %v99_v54 = vmul.f32 %v98_v50, %v91_v53 }
 0x133   :  { %v8534_v55 = vpop.eup %8533 }
 0x134   :  { %v8536_v56 = vpop.eup %8535  ;;  %v8824_v57 = vadd.f32 %v106_v52, %v99_v54  ;;  %v92_v58 = vmul.f32 %v8534_v55, %v60_v20  ;;  %v7039_v20 = vld [vmem:[%s10098_s2 + $0x30] sm:$0xff] }
 0x135   :  { %v93_v59 = vmul.f32 %v8536_v56, %v8787_v13 }
 0x136   :  { %v100_v60 = vmul.f32 %v98_v50, %v92_v58  ;;  %7793 = vmatprep.mubr.msk.f32.mxu0 %vm41_vm0, %v8824_v57 }
 0x137   :  { %v8538_v61 = vpop.eup %8537  ;;  %v101_v62 = vmul.f32 %v98_v50, %v93_v59 }
 0x138   :  { %v8829_v63 = vadd.f32 %v106_v52, %v100_v60  ;;  %v94_v0 = vmul.f32 %v8538_v61, %v62_v21 }
 0x139   :  { %v8831_v1 = vadd.f32 %v106_v52, %v101_v62 }
 0x13a   :  { %v102_v3 = vmul.f32 %v98_v50, %v94_v0  ;;  %7794 = vmatmul.mubr.msk.f32.vlgmr.msra.gmra.mxu0 %vm41_vm0, %v8829_v63 }
 0x13b   :  { %7796 = vmatprep.mubr.msk.f32.mxu0 %vm41_vm0, %v8831_v1  ;;  %7800 = vmatpush3.msra.mxu0 %v7012_v32  ;;  %v8727_v32 = vmov -1e+30  }
 0x13c   :  { %v8843_v5 = vadd.f32 %v106_v52, %v102_v3  ;;  %7801 = vmatprep.subr.mxu0 %v7011_v2  ;;  %v8936_v33 = vsel %vm37_vm2, 0.0, %v8727_v32  ;;  %v8938_v35 = vsel %vm36_vm3, 0.0, %v8727_v32 }
 0x13d   :  { %7802 = vmatpush3.msra.mxu0 %v7011_v2 }
 0x13e   :  { %7797 = vmatmul.mubr.msk.f32.gmra.mxu0 %vm41_vm0, %v8843_v5  ;;  %7803 = vmatprep.subr.mxu0 %v7010_v4 }
 0x13f   :  { %7804 = vmatpush3.msra.mxu0 %v7010_v4  ;;  %7807 = vmatprep.mubr.msk.f32.mxu0 %vm41_vm0, %v8824_v57 }
 0x140   :  { %7805 = vmatprep.subr.mxu0 %v7009_v6 }
 0x141   :  { %7806 = vmatpush3.msra.mxu0 %v7009_v6 }
 0x142   :  { %7808 = vmatmul.mubr.msk.f32.vlgmr.msra.gmra.mxu0 %vm41_vm0, %v8829_v63  ;;  %7813 = vmatprep.subr.mxu0 %v7020_v7 }
 0x143   :  { %7810 = vmatprep.mubr.msk.f32.mxu0 %vm41_vm0, %v8831_v1  ;;  %7814 = vmatpush3.msra.mxu0 %v7020_v7 }
 0x144   :  { %7815 = vmatprep.subr.mxu0 %v7019_v8 }
 0x145   :  { %7816 = vmatpush3.msra.mxu0 %v7019_v8 }
 0x146   :  { %7811 = vmatmul.mubr.msk.f32.gmra.mxu0 %vm41_vm0, %v8843_v5  ;;  %7817 = vmatprep.subr.mxu0 %v7018_v9 }
 0x147   :  { %7818 = vmatpush3.msra.mxu0 %v7018_v9  ;;  %7821 = vmatprep.mubr.msk.f32.mxu0 %vm41_vm0, %v8824_v57 }
 0x148   :  { %7819 = vmatprep.subr.mxu0 %v7017_v10 }
 0x149   :  { %7820 = vmatpush3.msra.mxu0 %v7017_v10 }
 0x14a   :  { %7822 = vmatmul.mubr.msk.f32.vlgmr.msra.gmra.mxu0 %vm41_vm0, %v8829_v63 }
 0x14b   :  { %7824 = vmatprep.mubr.msk.f32.mxu0 %vm41_vm0, %v8831_v1 }
 0x14e   :  { %7825 = vmatmul.mubr.msk.f32.gmra.mxu0 %vm41_vm0, %v8843_v5 }
 0x1fa   :  { %v7795_v11 = vpop.f32.mrf.mxu0 }
 0x1fb   :  { %7827 = vmatprep.subr.msk.mxu1 %vm392_vm1, %v7795_v11 }
 0x1fc   :  { %v193_v12 = vpop.f32.mrf.mxu0  ;;  %7828 = vmatpush3.xpose.msk.msra.mxu1 %vm392_vm1, %v7795_v11 }
 0x1fd   :  { %7829 = vmatprep.subr.msk.mxu1 %vm392_vm1, %v193_v12 }
 0x1fe   :  { %v7798_v13 = vpop.f32.mrf.mxu0 }
 0x1ff   :  { %7834 = vmatprep.subr.msk.mxu0 %vm392_vm1, %v7798_v13 }
 0x200   :  { %v203_v14 = vpop.f32.mrf.mxu0  ;;  %7830 = vmatpush3.xpose.msk.msra.mxu1 %vm392_vm1, %v193_v12  ;;  %7835 = vmatpush3.xpose.msk.msra.mxu0 %vm392_vm1, %v7798_v13 }
 0x201   :  { %7836 = vmatprep.subr.msk.mxu0 %vm392_vm1, %v203_v14 }
 0x202   :  { %v7809_v15 = vpop.f32.mrf.mxu0 }
 0x204   :  { %v283_v17 = vpop.f32.mrf.mxu0  ;;  %7837 = vmatpush3.xpose.msk.msra.mxu0 %vm392_vm1, %v203_v14 }
 0x205   :  { %7831 = vmatprep.mubr.msk.f32.mxu1 %vm392_vm1, %v283_v17  ;;  %7855 = vmatprep.subr.mxu0 %v7040_v16 }
 0x206   :  { %v7812_v18 = vpop.f32.mrf.mxu0  ;;  %7832 = vmatmul.mubr.msk.f32.vlgmr.msra.gmra.mxu1 %vm392_vm1, %v7809_v15 }
 0x208   :  { %v293_v19 = vpop.f32.mrf.mxu0 }
 0x209   :  { %7838 = vmatprep.mubr.msk.f32.mxu0 %vm392_vm1, %v293_v19 }
 0x20a   :  { %v7823_v21 = vpop.f32.mrf.mxu0  ;;  %7839 = vmatmul.mubr.msk.f32.vlgmr.msra.gmra.mxu0 %vm392_vm1, %v7812_v18 }
 0x20b   :  { %7856 = vmatpush3.msra.mxu0 %v7040_v16  ;;  %7841 = vmatprep.subr.mxu1 %v7823_v21 }
 0x20c   :  { %7857 = vmatprep.subr.mxu0 %v7039_v20  ;;  %7863 = vmatprep.mubr.msk.f32.mxu0 %vm41_vm0, %v8824_v57  ;;  %v373_v23 = vpop.f32.mrf.mxu0 }
 0x20d   :  { %7842 = vmatpush3.msra.mxu1 %v7823_v21  ;;  %7858 = vmatpush3.msra.mxu0 %v7039_v20 }
 0x20e   :  { %7843 = vmatprep.subr.mxu1 %v373_v23  ;;  %7859 = vmatprep.subr.mxu0 %v7038_v22  ;;  %v8904_v25 = vpop.f32.mrf.mxu0 }
 0x20f   :  { %7844 = vmatpush3.msra.mxu1 %v373_v23  ;;  %7860 = vmatpush3.msra.mxu0 %v7038_v22 }
 0x210   :  { %7848 = vmatprep.subr.mxu1 %v8904_v25  ;;  %7861 = vmatprep.subr.mxu0 %v7037_v24  ;;  %v8941_v37 = vpop.f32.mrf.mxu0 }
 0x211   :  { %7862 = vmatpush3.msra.mxu0 %v7037_v24 }
 0x212   :  { %7864 = vmatmul.mubr.msk.f32.vlgmr.msra.gmra.mxu0 %vm41_vm0, %v8829_v63  ;;  %7883 = vmatprep.subr.mxu0 %v7056_v26 }
 0x213   :  { %7866 = vmatprep.mubr.msk.f32.mxu0 %vm41_vm0, %v8831_v1  ;;  %7884 = vmatpush3.msra.mxu0 %v7056_v26 }
 0x214   :  { %7885 = vmatprep.subr.mxu0 %v7055_v27 }
 0x215   :  { %7886 = vmatpush3.msra.mxu0 %v7055_v27  ;;  %v7048_v27 = vld [vmem:[%s10098_s2 + $0xb8] sm:$0xff] }
 0x216   :  { %7867 = vmatmul.mubr.msk.f32.gmra.mxu0 %vm41_vm0, %v8843_v5  ;;  %7887 = vmatprep.subr.mxu0 %v7054_v28 }
 0x217   :  { %7888 = vmatpush3.msra.mxu0 %v7054_v28  ;;  %7891 = vmatprep.mubr.msk.f32.mxu0 %vm41_vm0, %v8824_v57 }
 0x218   :  { %7889 = vmatprep.subr.mxu0 %v7053_v29 }
 0x219   :  { %7890 = vmatpush3.msra.mxu0 %v7053_v29  ;;  %v7047_v29 = vld [vmem:[%s10098_s2 + $0xb0] sm:$0xff] }
 0x21a   :  { %7892 = vmatmul.mubr.msk.f32.vlgmr.msra.gmra.mxu0 %vm41_vm0, %v8829_v63 }
 0x21b   :  { %7894 = vmatprep.mubr.msk.f32.mxu0 %vm41_vm0, %v8831_v1 }
 0x21e   :  { %7895 = vmatmul.mubr.msk.f32.gmra.mxu0 %vm41_vm0, %v8843_v5 }
 0x2c6   :  { %v7833_v34 = vpop.f32.mrf.mxu1 }
 0x2c7   :  { %v477_v36 = vadd.f32 %v7833_v34, %v8936_v33 }
 0x2c8   :  { %v471_v39 = vpop.f32.mrf.mxu1 }
 0x2c9   :  { %v472_v40 = vadd.f32 %v471_v39, %v8938_v35  ;;  %v571_v41 = vsel %vm567_vm4, %v477_v36, -inf }
 0x2ca   :  { %572 = vmax.xlane.f32.xlu1 %v571_v41  ;;  %v7840_v38 = vpop.f32.mrf.mxu0 }
 0x2cb   :  { %v564_v42 = vadd.f32 %v7840_v38, %v8936_v33  ;;  %v568_v43 = vsel %vm567_vm4, %v472_v40, -inf }
 0x2cc   :  { %569 = vmax.xlane.f32.xlu0 %v568_v43  ;;  %v558_v45 = vpop.f32.mrf.mxu0 }
 0x2cd   :  { %v559_v46 = vadd.f32 %v558_v45, %v8938_v35  ;;  %v577_v48 = vsel %vm567_vm4, %v564_v42, -inf }
 0x2ce   :  { %578 = vmax.xlane.f32.xlu1 %v577_v48 }
 0x2cf   :  { %v574_v50 = vsel %vm567_vm4, %v559_v46, -inf }
 0x2d0   :  { %575 = vmax.xlane.f32.xlu0 %v574_v50 }
 0x2d2   :  { %v8950_v51 = vpop.f32.mrf.mxu0 }
 0x2d4   :  { %v8952_v52 = vpop.f32.mrf.mxu0 }
 0x2d6   :  { %v7868_v53 = vpop.f32.mrf.mxu0 }
 0x2d7   :  { %7904 = vmatprep.subr.msk.mxu0 %vm392_vm1, %v7868_v53 }
 0x2d8   :  { %v856_v54 = vpop.f32.mrf.mxu0  ;;  %7905 = vmatpush3.xpose.msk.msra.mxu0 %vm392_vm1, %v7868_v53 }
 0x2d9   :  { %7906 = vmatprep.subr.msk.mxu0 %vm392_vm1, %v856_v54 }
 0x2da   :  { %v7893_v31 = vpop.f32.mrf.mxu0 }
 0x2dc   :  { %7907 = vmatpush3.xpose.msk.msra.mxu0 %vm392_vm1, %v856_v54  ;;  %v1026_v41 = vpop.f32.mrf.mxu0 }
 0x2de   :  { %v9007_v43 = vpop.f32.mrf.mxu0 }
 0x2e0   :  { %v9013_v48 = vpop.f32.mrf.mxu0 }
 0x353   :  { %v573_v55 = vpop.xlane.xlu1 %572 }
 0x354   :  { %v581_v56 = vsub.f32 %v477_v36, %v573_v55 }
 0x355   :  { %v570_v58 = vpop.xlane.xlu0 %569 }
 0x356   :  { %v586_v59 = vmul.f32 1.442695, %v581_v56  ;;  %v580_v60 = vsub.f32 %v472_v40, %v570_v58 }
 0x357   :  { %v579_v61 = vpop.xlane.xlu1 %578 }
 0x358   :  { %8539 = vpow2.f32 %v586_v59  ;;  %v584_v62 = vmul.f32 1.442695, %v580_v60  ;;  %v583_v0 = vsub.f32 %v564_v42, %v579_v61 }
 0x359   :  { %v576_v2 = vpop.xlane.xlu0 %575 }
 0x35a   :  { %8541 = vpow2.f32 %v584_v62  ;;  %v590_v3 = vmul.f32 1.442695, %v583_v0  ;;  %v582_v4 = vsub.f32 %v559_v46, %v576_v2 }
 0x35c   :  { %8543 = vpow2.f32 %v590_v3  ;;  %v588_v6 = vmul.f32 1.442695, %v582_v4 }
 0x35e   :  { %8545 = vpow2.f32 %v588_v6 }
 0x365   :  { %v8540_v7 = vpop.eup %8539 }
 0x366   :  { %v595_v8 = vsel %vm567_vm4, %v8540_v7, 0.0 }
 0x367   :  { %v8542_v9 = vpop.eup %8541  ;;  %596 = vadd.xlane.f32.xlu1 %v595_v8 }
 0x368   :  { %v592_v10 = vsel %vm567_vm4, %v8542_v9, 0.0 }
 0x369   :  { %v8544_v11 = vpop.eup %8543  ;;  %593 = vadd.xlane.f32.xlu0 %v592_v10 }
 0x36a   :  { %v601_v12 = vsel %vm567_vm4, %v8544_v11, 0.0 }
 0x36b   :  { %v8546_v13 = vpop.eup %8545  ;;  %602 = vadd.xlane.f32.xlu1 %v601_v12 }
 0x36c   :  { %v598_v14 = vsel %vm567_vm4, %v8546_v13, 0.0 }
 0x36d   :  { %599 = vadd.xlane.f32.xlu0 %v598_v14 }
 0x3f0   :  { %v597_v15 = vpop.xlane.xlu1 %596 }
 0x3f1   :  { %8547 = vrcp.f32 %v597_v15 }
 0x3f2   :  { %v594_v16 = vpop.xlane.xlu0 %593 }
 0x3f3   :  { %8549 = vrcp.f32 %v594_v16 }
 0x3f4   :  { %v603_v17 = vpop.xlane.xlu1 %602 }
 0x3f5   :  { %8551 = vrcp.f32 %v603_v17 }
 0x3f6   :  { %v600_v18 = vpop.xlane.xlu0 %599 }
 0x3f7   :  { %8553 = vrcp.f32 %v600_v18 }
 0x3fe   :  { %v8548_v19 = vpop.eup %8547 }
 0x3ff   :  { %v607_v22 = vmul.f32 %v8548_v19, %v8540_v7 }
 0x400   :  { %v8550_v20 = vpop.eup %8549 }
 0x401   :  { %v605_v21 = vmul.f32 %v8550_v20, %v8542_v9 }
 0x402   :  { %v8552_v23 = vpop.eup %8551 }
 0x403   :  { %7845 = vmatprep.mubr.msk.f32.mxu1 %vm567_vm4, %v605_v21  ;;  %v611_v28 = vmul.f32 %v8552_v23, %v8544_v11 }
 0x404   :  { %v8554_v24 = vpop.eup %8553  ;;  %7846 = vmatmul.mubr.msk.f32.vlgmr.msra.gmra.mxu1 %vm567_vm4, %v607_v22 }
 0x405   :  { %7849 = vmatpush3.msra.mxu1 %v8904_v25  ;;  %v609_v26 = vmul.f32 %v8554_v24, %v8546_v13  ;;  %v7046_v25 = vld [vmem:[%s10098_s2 + $0xa8] sm:$0xff] }
 0x406   :  { %7850 = vmatprep.subr.mxu1 %v8941_v37 }
 0x407   :  { %7851 = vmatpush3.msra.mxu1 %v8941_v37  ;;  %7852 = vmatprep.mubr.msk.f32.mxu1 %vm567_vm4, %v609_v26 }
 0x408   :  { %7869 = vmatprep.subr.mxu1 %v7048_v27  ;;  %7853 = vmatmul.mubr.msk.f32.vlgmr.msra.gmra.mxu1 %vm567_vm4, %v611_v28 }
 0x409   :  { %7870 = vmatpush3.msra.mxu1 %v7048_v27  ;;  %7877 = vmatprep.mubr.msk.f32.mxu1 %vm41_vm0, %v8824_v57 }
 0x40a   :  { %7871 = vmatprep.subr.mxu1 %v7047_v29 }
 0x40b   :  { %7872 = vmatpush3.msra.mxu1 %v7047_v29 }
 0x40c   :  { %7873 = vmatprep.subr.mxu1 %v7046_v25 }
 0x40d   :  { %7874 = vmatpush3.msra.mxu1 %v7046_v25 }
 0x40e   :  { %7875 = vmatprep.subr.mxu1 %v7045_v30 }
 0x40f   :  { %7876 = vmatpush3.msra.mxu1 %v7045_v30 }
 0x410   :  { %7878 = vmatmul.mubr.msk.f32.vlgmr.msra.gmra.mxu1 %vm41_vm0, %v8829_v63  ;;  %7897 = vmatprep.subr.msk.mxu1 %vm392_vm1, %v8950_v51 }
 0x411   :  { %7880 = vmatprep.mubr.msk.f32.mxu1 %vm41_vm0, %v8831_v1  ;;  %7898 = vmatpush3.xpose.msk.msra.mxu1 %vm392_vm1, %v8950_v51 }
 0x412   :  { %7899 = vmatprep.subr.msk.mxu1 %vm392_vm1, %v8952_v52 }
 0x414   :  { %7881 = vmatmul.mubr.msk.f32.gmra.mxu1 %vm41_vm0, %v8843_v5 }
 0x415   :  { %7900 = vmatpush3.xpose.msk.msra.mxu1 %vm392_vm1, %v8952_v52 }
 0x416   :  { %7911 = vmatprep.subr.mxu1 %v7893_v31 }
 0x4c4   :  { %v8997_v32 = vpop.f32.mrf.mxu1 }
 0x4c6   :  { %v8999_v34 = vpop.f32.mrf.mxu1 }
 0x4c8   :  { %v9001_v36 = vpop.f32.mrf.mxu1 }
 0x4ca   :  { %v9003_v37 = vpop.f32.mrf.mxu1 }
 0x4d0   :  { %v7879_v39 = vpop.f32.mrf.mxu1 }
 0x4d2   :  { %v936_v40 = vpop.f32.mrf.mxu1 }
 0x4d3   :  { %7901 = vmatprep.mubr.msk.f32.mxu1 %vm392_vm1, %v936_v40  ;;  %v7093_v40 = vld [vmem:[%s10098_s2 + $0xd8] sm:$0xff] }
 0x4d4   :  { %v7882_v38 = vpop.f32.mrf.mxu1  ;;  %7902 = vmatmul.mubr.msk.f32.vlgmr.msra.gmra.mxu1 %vm392_vm1, %v7879_v39 }
 0x4d5   :  { %7912 = vmatpush3.msra.mxu1 %v7893_v31  ;;  %v774_v31 = vld [vmem:[%s10099_s3] sm:$0xff] }
 0x4d6   :  { %7913 = vmatprep.subr.mxu1 %v1026_v41  ;;  %v946_v42 = vpop.f32.mrf.mxu1 }
 0x4d7   :  { %7914 = vmatpush3.msra.mxu1 %v1026_v41  ;;  %7908 = vmatprep.mubr.msk.f32.mxu0 %vm392_vm1, %v946_v42  ;;  %v7092_v41 = vld [vmem:[%s10098_s2 + $0xd0] sm:$0xff] }
 0x4d8   :  { %7918 = vmatprep.subr.mxu1 %v9007_v43  ;;  %7909 = vmatmul.mubr.msk.f32.vlgmr.msra.gmra.mxu0 %vm392_vm1, %v7882_v38  ;;  %v7091_v38 = vld [vmem:[%s10098_s2 + $0xc8] sm:$0xff] }
 0x594   :  { %v7903_v45 = vpop.f32.mrf.mxu1 }
 0x595   :  { %v1129_v46 = vadd.f32 %v7903_v45, %v8936_v33 }
 0x596   :  { %v1123_v50 = vpop.f32.mrf.mxu1 }
 0x597   :  { %v1124_v51 = vadd.f32 %v1123_v50, %v8938_v35  ;;  %v1222_v52 = vsel %vm567_vm4, %v1129_v46, -inf  ;;  %v7082_v50 = vld [vmem:[%s10098_s2 + $0x40] sm:$0xff] }
 0x598   :  { %v7910_v53 = vpop.f32.mrf.mxu0  ;;  %1223 = vmax.xlane.f32.xlu1 %v1222_v52  ;;  %v7101_v52 = vld [vmem:[%s10098_s2 + $0x158] sm:$0xff] }
 0x599   :  { %v1216_v54 = vadd.f32 %v7910_v53, %v8936_v33  ;;  %v1219_v55 = vsel %vm567_vm4, %v1124_v51, -inf }
 0x59a   :  { %v1210_v56 = vpop.f32.mrf.mxu0  ;;  %1220 = vmax.xlane.f32.xlu0 %v1219_v55 }
 0x59b   :  { %v1211_v58 = vadd.f32 %v1210_v56, %v8938_v35  ;;  %v1228_v59 = vsel %vm567_vm4, %v1216_v54, -inf  ;;  %v7099_v56 = vld [vmem:[%s10098_s2 + $0x148] sm:$0xff] }
 0x59c   :  { %1229 = vmax.xlane.f32.xlu1 %v1228_v59  ;;  %v7098_v59 = vld [vmem:[%s10098_s2 + $0x140] sm:$0xff] }
 0x59d   :  { %v1225_v60 = vsel %vm567_vm4, %v1211_v58, -inf }
 0x59e   :  { %1226 = vmax.xlane.f32.xlu0 %v1225_v60 }
 0x621   :  { %v1224_v61 = vpop.xlane.xlu1 %1223 }
 0x622   :  { %v1232_v62 = vsub.f32 %v1129_v46, %v1224_v61  ;;  %v7083_v46 = vld [vmem:[%s10098_s2 + $0x48] sm:$0xff] }
 0x623   :  { %v1221_v0 = vpop.xlane.xlu0 %1220 }
 0x624   :  { %v1237_v2 = vmul.f32 1.442695, %v1232_v62  ;;  %v1231_v3 = vsub.f32 %v1124_v51, %v1221_v0 }
 0x625   :  { %v1230_v4 = vpop.xlane.xlu1 %1229 }
 0x626   :  { %8555 = vpow2.f32 %v1237_v2  ;;  %v1235_v6 = vmul.f32 1.442695, %v1231_v3  ;;  %v1234_v7 = vsub.f32 %v1216_v54, %v1230_v4  ;;  %v7100_v54 = vld [vmem:[%s10098_s2 + $0x150] sm:$0xff] }
 0x627   :  { %v1227_v8 = vpop.xlane.xlu0 %1226 }
 0x628   :  { %8557 = vpow2.f32 %v1235_v6  ;;  %v1241_v9 = vmul.f32 1.442695, %v1234_v7  ;;  %v1233_v10 = vsub.f32 %v1211_v58, %v1227_v8 }
 0x62a   :  { %8559 = vpow2.f32 %v1241_v9  ;;  %v1239_v11 = vmul.f32 1.442695, %v1233_v10 }
 0x62c   :  { %8561 = vpow2.f32 %v1239_v11 }
 0x633   :  { %v8556_v12 = vpop.eup %8555 }
 0x634   :  { %v1246_v13 = vsel %vm567_vm4, %v8556_v12, 0.0 }
 0x635   :  { %v8558_v14 = vpop.eup %8557  ;;  %1247 = vadd.xlane.f32.xlu1 %v1246_v13 }
 0x636   :  { %v1243_v15 = vsel %vm567_vm4, %v8558_v14, 0.0 }
 0x637   :  { %v8560_v16 = vpop.eup %8559  ;;  %1244 = vadd.xlane.f32.xlu0 %v1243_v15 }
 0x638   :  { %v1252_v17 = vsel %vm567_vm4, %v8560_v16, 0.0 }
 0x639   :  { %v8562_v18 = vpop.eup %8561  ;;  %1253 = vadd.xlane.f32.xlu1 %v1252_v17 }
 0x63a   :  { %v1249_v19 = vsel %vm567_vm4, %v8562_v18, 0.0 }
 0x63b   :  { %1250 = vadd.xlane.f32.xlu0 %v1249_v19 }
 0x6be   :  { %v1248_v20 = vpop.xlane.xlu1 %1247 }
 0x6bf   :  { %8563 = vrcp.f32 %v1248_v20 }
 0x6c0   :  { %v1245_v21 = vpop.xlane.xlu0 %1244 }
 0x6c1   :  { %8565 = vrcp.f32 %v1245_v21 }
 0x6c2   :  { %v1254_v22 = vpop.xlane.xlu1 %1253 }
 0x6c3   :  { %8567 = vrcp.f32 %v1254_v22 }
 0x6c4   :  { %v1251_v23 = vpop.xlane.xlu0 %1250 }
 0x6c5   :  { %8569 = vrcp.f32 %v1251_v23 }
 0x6cc   :  { %v8564_v24 = vpop.eup %8563 }
 0x6cd   :  { %v1258_v28 = vmul.f32 %v8564_v24, %v8556_v12 }
 0x6ce   :  { %v8566_v26 = vpop.eup %8565 }
 0x6cf   :  { %v1256_v27 = vmul.f32 %v8566_v26, %v8558_v14 }
 0x6d0   :  { %v8568_v29 = vpop.eup %8567 }
 0x6d1   :  { %7915 = vmatprep.mubr.msk.f32.mxu1 %vm567_vm4, %v1256_v27  ;;  %v1262_v39 = vmul.f32 %v8568_v29, %v8560_v16 }
 0x6d2   :  { %v8570_v25 = vpop.eup %8569  ;;  %7916 = vmatmul.mubr.msk.f32.vlgmr.msra.gmra.mxu1 %vm567_vm4, %v1258_v28 }
 0x6d3   :  { %7919 = vmatpush3.msra.mxu1 %v9007_v43  ;;  %v1260_v30 = vmul.f32 %v8570_v25, %v8562_v18  ;;  %v7084_v43 = vld [vmem:[%s10098_s2 + $0x50] sm:$0xff] }
 0x6d4   :  { %7920 = vmatprep.subr.mxu1 %v9013_v48 }
 0x6d5   :  { %7921 = vmatpush3.msra.mxu1 %v9013_v48  ;;  %7922 = vmatprep.mubr.msk.f32.mxu1 %vm567_vm4, %v1260_v30 }
 0x6d6   :  { %7923 = vmatmul.mubr.msk.f32.vlgmr.msra.gmra.mxu1 %vm567_vm4, %v1262_v39  ;;  %7933 = vmatprep.subr.mxu1 %v774_v31 }
 0x6d7   :  { %7935 = vmatprep.mubr.msk.f32.mxu1 %vm392_vm1, %v8999_v34  ;;  %7934 = vmatpush3.msra.mxu1 %v774_v31  ;;  %v7090_v34 = vld [vmem:[%s10098_s2 + $0xc0] sm:$0xff] }
 0x6d8   :  { %7955 = vmatprep.subr.mxu1 %v7093_v40 }
 0x6da   :  { %7936 = vmatmul.mubr.msk.f32.vlgmr.msra.gmra.mxu1 %vm392_vm1, %v8997_v32  ;;  %v7073_v32 = vld [vmem:[%s10099_s3 + $0x8] sm:$0xff] }
 0x6db   :  { %7938 = vmatprep.mubr.msk.f32.mxu1 %vm392_vm1, %v9003_v37  ;;  %7956 = vmatpush3.msra.mxu1 %v7093_v40 }
 0x6dc   :  { %7957 = vmatprep.subr.mxu1 %v7092_v41  ;;  %7925 = vmatprep.subr.mxu0 %v7073_v32 }
 0x6dd   :  { %7958 = vmatpush3.msra.mxu1 %v7092_v41  ;;  %7926 = vmatpush3.msra.mxu0 %v7073_v32 }
 0x6de   :  { %7939 = vmatmul.mubr.msk.f32.gmra.mxu1 %vm392_vm1, %v9001_v36  ;;  %7959 = vmatprep.subr.mxu1 %v7091_v38  ;;  %v7085_v36 = vld [vmem:[%s10098_s2 + $0x58] sm:$0xff] }
 0x6df   :  { %7960 = vmatpush3.msra.mxu1 %v7091_v38  ;;  %7963 = vmatprep.mubr.msk.f32.mxu1 %vm41_vm0, %v8824_v57 }
 0x6e0   :  { %7961 = vmatprep.subr.mxu1 %v7090_v34  ;;  %7941 = vmatprep.subr.mxu0 %v7085_v36 }
 0x6e1   :  { %7962 = vmatpush3.msra.mxu1 %v7090_v34 }
 0x6e2   :  { %7964 = vmatmul.mubr.msk.f32.vlgmr.msra.gmra.mxu1 %vm41_vm0, %v8829_v63 }
 0x6e3   :  { %7966 = vmatprep.mubr.msk.f32.mxu1 %vm41_vm0, %v8831_v1 }
 0x6e6   :  { %7967 = vmatmul.mubr.msk.f32.gmra.mxu1 %vm41_vm0, %v8843_v5 }
 0x792   :  { %v7917_v37 = vpop.f32.mrf.mxu1 }
 0x794   :  { %v1335_v42 = vpop.f32.mrf.mxu1 }
 0x795   :  { %7927 = vmatprep.mubr.msk.f32.mxu0 %vm392_vm1, %v1335_v42 }
 0x796   :  { %v7924_v45 = vpop.f32.mrf.mxu1  ;;  %7928 = vmatmul.mubr.msk.f32.vlgmr.msra.gmra.mxu0 %vm392_vm1, %v7917_v37 }
 0x797   :  { %7942 = vmatpush3.msra.mxu0 %v7085_v36 }
 0x798   :  { %v1416_v48 = vpop.f32.mrf.mxu1  ;;  %7943 = vmatprep.subr.mxu0 %v7084_v43 }
 0x799   :  { %7930 = vmatprep.mubr.msk.f32.mxu0 %vm392_vm1, %v1416_v48  ;;  %7944 = vmatpush3.msra.mxu0 %v7084_v43 }
 0x79a   :  { %7931 = vmatmul.mubr.msk.f32.gmra.mxu0 %vm392_vm1, %v7924_v45  ;;  %v9083_v51 = vpop.f32.mrf.mxu1  ;;  %7945 = vmatprep.subr.mxu0 %v7083_v46 }
 0x79b   :  { %7946 = vmatpush3.msra.mxu0 %v7083_v46  ;;  %7949 = vmatprep.mubr.msk.f32.mxu0 %vm41_vm0, %v8824_v57 }
 0x79c   :  { %v9090_v53 = vpop.f32.mrf.mxu1  ;;  %7947 = vmatprep.subr.mxu0 %v7082_v50 }
 0x79d   :  { %7948 = vmatpush3.msra.mxu0 %v7082_v50 }
 0x79e   :  { %v9095_v55 = vpop.f32.mrf.mxu1  ;;  %7950 = vmatmul.mubr.msk.f32.vlgmr.msra.gmra.mxu0 %vm41_vm0, %v8829_v63  ;;  %7969 = vmatprep.subr.mxu0 %v7101_v52 }
 0x79f   :  { %7952 = vmatprep.mubr.msk.f32.mxu0 %vm41_vm0, %v8831_v1  ;;  %7970 = vmatpush3.msra.mxu0 %v7101_v52 }
 0x7a0   :  { %v9104_v58 = vpop.f32.mrf.mxu1  ;;  %7971 = vmatprep.subr.mxu0 %v7100_v54 }
 0x7a1   :  { %7972 = vmatpush3.msra.mxu0 %v7100_v54 }
 0x7a2   :  { %7953 = vmatmul.mubr.msk.f32.gmra.mxu0 %vm41_vm0, %v8843_v5  ;;  %v7965_v60 = vpop.f32.mrf.mxu1  ;;  %7973 = vmatprep.subr.mxu0 %v7099_v56 }
 0x7a3   :  { %7974 = vmatpush3.msra.mxu0 %v7099_v56  ;;  %7977 = vmatprep.mubr.msk.f32.mxu0 %vm41_vm0, %v8824_v57 }
 0x7a4   :  { %v1782_v61 = vpop.f32.mrf.mxu1  ;;  %7975 = vmatprep.subr.mxu0 %v7098_v59 }
 0x7a5   :  { %7976 = vmatpush3.msra.mxu0 %v7098_v59  ;;  %7987 = vmatprep.mubr.msk.f32.mxu1 %vm392_vm1, %v1782_v61 }
 0x7a6   :  { %v7968_v62 = vpop.f32.mrf.mxu1  ;;  %7978 = vmatmul.mubr.msk.f32.vlgmr.msra.gmra.mxu0 %vm41_vm0, %v8829_v63 }
 0x7a7   :  { %7980 = vmatprep.mubr.msk.f32.mxu0 %vm41_vm0, %v8831_v1 }
 0x7a8   :  { %v1792_v0 = vpop.f32.mrf.mxu1 }
 0x7aa   :  { %7981 = vmatmul.mubr.msk.f32.gmra.mxu0 %vm41_vm0, %v8843_v5 }
 0x7ab   :  { %7994 = vmatprep.mubr.msk.f32.mxu0 %vm392_vm1, %v1792_v0 }
 0x856   :  { %v9121_v2 = vpop.f32.mrf.mxu0 }
 0x858   :  { %v9123_v3 = vpop.f32.mrf.mxu0 }
 0x85a   :  { %v9125_v4 = vpop.f32.mrf.mxu0 }
 0x85c   :  { %v9127_v6 = vpop.f32.mrf.mxu0 }
 0x85e   :  { %v7951_v7 = vpop.f32.mrf.mxu0 }
 0x85f   :  { %7983 = vmatprep.subr.msk.mxu1 %vm392_vm1, %v7951_v7 }
 0x860   :  { %v1692_v8 = vpop.f32.mrf.mxu0  ;;  %7984 = vmatpush3.xpose.msk.msra.mxu1 %vm392_vm1, %v7951_v7 }
 0x861   :  { %7985 = vmatprep.subr.msk.mxu1 %vm392_vm1, %v1692_v8 }
 0x862   :  { %v7954_v9 = vpop.f32.mrf.mxu0 }
 0x863   :  { %7990 = vmatprep.subr.msk.mxu0 %vm392_vm1, %v7954_v9 }
 0x864   :  { %v1702_v10 = vpop.f32.mrf.mxu0  ;;  %7986 = vmatpush3.xpose.msk.msra.mxu1 %vm392_vm1, %v1692_v8  ;;  %7991 = vmatpush3.xpose.msk.msra.mxu0 %vm392_vm1, %v7954_v9 }
 0x865   :  { %7992 = vmatprep.subr.msk.mxu0 %vm392_vm1, %v1702_v10 }
 0x866   :  { %v7979_v11 = vpop.f32.mrf.mxu0 }
 0x867   :  { %7988 = vmatmul.mubr.msk.f32.vlgmr.msra.gmra.mxu1 %vm392_vm1, %v7965_v60  ;;  %7997 = vmatprep.subr.mxu1 %v7979_v11 }
 0x868   :  { %v1872_v12 = vpop.f32.mrf.mxu0  ;;  %7993 = vmatpush3.xpose.msk.msra.mxu0 %vm392_vm1, %v1702_v10  ;;  %7998 = vmatpush3.msra.mxu1 %v7979_v11  ;;  %v7126_v11 = vld [vmem:[%s10098_s2 + $0x78] sm:$0xff] }
 0x869   :  { %7999 = vmatprep.subr.mxu1 %v1872_v12 }
 0x86a   :  { %v9138_v13 = vpop.f32.mrf.mxu0  ;;  %8000 = vmatpush3.msra.mxu1 %v1872_v12 }
 0x86b   :  { %7995 = vmatmul.mubr.msk.f32.vlgmr.msra.gmra.mxu0 %vm392_vm1, %v7968_v62  ;;  %8004 = vmatprep.subr.mxu1 %v9138_v13 }
 0x86c   :  { %v9143_v16 = vpop.f32.mrf.mxu0 }
 0x927   :  { %v7989_v14 = vpop.f32.mrf.mxu1 }
 0x928   :  { %v1975_v15 = vadd.f32 %v7989_v14, %v8936_v33  ;;  %v7125_v14 = vld [vmem:[%s10098_s2 + $0x70] sm:$0xff] }
 0x929   :  { %v1969_v17 = vpop.f32.mrf.mxu1 }
 0x92a   :  { %v1970_v18 = vadd.f32 %v1969_v17, %v8938_v35  ;;  %v2068_v19 = vsel %vm567_vm4, %v1975_v15, -inf  ;;  %v7141_v17 = vld [vmem:[%s10098_s2 + $0x170] sm:$0xff] }
 0x92b   :  { %2069 = vmax.xlane.f32.xlu1 %v2068_v19  ;;  %v7996_v20 = vpop.f32.mrf.mxu0  ;;  %v7139_v19 = vld [vmem:[%s10098_s2 + $0x160] sm:$0xff] }
 0x92c   :  { %v2062_v21 = vadd.f32 %v7996_v20, %v8936_v33  ;;  %v2065_v22 = vsel %vm567_vm4, %v1970_v18, -inf  ;;  %v7118_v20 = vld [vmem:[%s10099_s3 + $0x10] sm:$0xff] }
 0x92d   :  { %2066 = vmax.xlane.f32.xlu0 %v2065_v22  ;;  %v2056_v23 = vpop.f32.mrf.mxu0  ;;  %8011 = vmatprep.subr.mxu0 %v7118_v20 }
 0x92e   :  { %v2057_v24 = vadd.f32 %v2056_v23, %v8938_v35  ;;  %v2074_v26 = vsel %vm567_vm4, %v2062_v21, -inf  ;;  %8012 = vmatpush3.msra.mxu0 %v7118_v20 }
 0x92f   :  { %2075 = vmax.xlane.f32.xlu1 %v2074_v26 }
 0x930   :  { %v2071_v27 = vsel %vm567_vm4, %v2057_v24, -inf }
 0x931   :  { %2072 = vmax.xlane.f32.xlu0 %v2071_v27  ;;  %v7132_v27 = vld [vmem:[%s10098_s2 + $0xe8] sm:$0xff] }
 0x9b4   :  { %v2070_v28 = vpop.xlane.xlu1 %2069 }
 0x9b5   :  { %v2078_v29 = vsub.f32 %v1975_v15, %v2070_v28  ;;  %v7123_v15 = vld [vmem:[%s10098_s2 + $0x60] sm:$0xff] }
 0x9b6   :  { %v2067_v25 = vpop.xlane.xlu0 %2066 }
 0x9b7   :  { %v2083_v30 = vmul.f32 1.442695, %v2078_v29  ;;  %v2077_v31 = vsub.f32 %v1970_v18, %v2067_v25  ;;  %v7140_v18 = vld [vmem:[%s10098_s2 + $0x168] sm:$0xff]  ;;  %v7131_v29 = vld [vmem:[%s10098_s2 + $0xe0] sm:$0xff] }
 0x9b8   :  { %v2076_v39 = vpop.xlane.xlu1 %2075 }
 0x9b9   :  { %8571 = vpow2.f32 %v2083_v30  ;;  %v2081_v40 = vmul.f32 1.442695, %v2077_v31  ;;  %v2080_v41 = vsub.f32 %v2062_v21, %v2076_v39  ;;  %v7134_v21 = vld [vmem:[%s10098_s2 + $0xf8] sm:$0xff] }
 0x9ba   :  { %v2073_v38 = vpop.xlane.xlu0 %2072  ;;  %8033 = vmatprep.subr.mxu0 %v7134_v21 }
 0x9bb   :  { %8573 = vpow2.f32 %v2081_v40  ;;  %v2087_v34 = vmul.f32 1.442695, %v2080_v41  ;;  %v2079_v32 = vsub.f32 %v2057_v24, %v2073_v38  ;;  %v7133_v24 = vld [vmem:[%s10098_s2 + $0xf0] sm:$0xff]  ;;  %v1618_v38 = vadd.f32 %v9095_v55, %v9125_v4 }
 0x9bd   :  { %8575 = vpow2.f32 %v2087_v34  ;;  %v2085_v36 = vmul.f32 1.442695, %v2079_v32 }
 0x9bf   :  { %8577 = vpow2.f32 %v2085_v36  ;;  %v1613_v36 = vadd.f32 %v9104_v58, %v9127_v6 }
 0x9c6   :  { %v8572_v37 = vpop.eup %8571 }
 0x9c7   :  { %v2092_v42 = vsel %vm567_vm4, %v8572_v37, 0.0 }
 0x9c8   :  { %v8574_v43 = vpop.eup %8573  ;;  %2093 = vadd.xlane.f32.xlu1 %v2092_v42 }
 0x9c9   :  { %v2089_v45 = vsel %vm567_vm4, %v8574_v43, 0.0 }
 0x9ca   :  { %v8576_v46 = vpop.eup %8575  ;;  %2090 = vadd.xlane.f32.xlu0 %v2089_v45 }
 0x9cb   :  { %v2098_v48 = vsel %vm567_vm4, %v8576_v46, 0.0 }
 0x9cc   :  { %v8578_v50 = vpop.eup %8577  ;;  %2099 = vadd.xlane.f32.xlu1 %v2098_v48 }
 0x9cd   :  { %v2095_v52 = vsel %vm567_vm4, %v8578_v50, 0.0 }
 0x9ce   :  { %2096 = vadd.xlane.f32.xlu0 %v2095_v52 }
 0xa51   :  { %v2094_v54 = vpop.xlane.xlu1 %2093 }
 0xa52   :  { %8579 = vrcp.f32 %v2094_v54 }
 0xa53   :  { %v2091_v56 = vpop.xlane.xlu0 %2090 }
 0xa54   :  { %8581 = vrcp.f32 %v2091_v56 }
 0xa55   :  { %v2100_v59 = vpop.xlane.xlu1 %2099 }
 0xa56   :  { %8583 = vrcp.f32 %v2100_v59 }
 0xa57   :  { %v2097_v60 = vpop.xlane.xlu0 %2096 }
 0xa58   :  { %8585 = vrcp.f32 %v2097_v60 }
 0xa5f   :  { %v8580_v61 = vpop.eup %8579 }
 0xa60   :  { %v2104_v7 = vmul.f32 %v8580_v61, %v8572_v37 }
 0xa61   :  { %v8582_v62 = vpop.eup %8581 }
 0xa62   :  { %v2102_v0 = vmul.f32 %v8582_v62, %v8574_v43 }
 0xa63   :  { %v8584_v8 = vpop.eup %8583 }
 0xa64   :  { %8001 = vmatprep.mubr.msk.f32.mxu1 %vm567_vm4, %v2102_v0  ;;  %v2108_v12 = vmul.f32 %v8584_v8, %v8576_v46 }
 0xa65   :  { %v8586_v9 = vpop.eup %8585  ;;  %8002 = vmatmul.mubr.msk.f32.vlgmr.msra.gmra.mxu1 %vm567_vm4, %v2104_v7 }
 0xa66   :  { %8005 = vmatpush3.msra.mxu1 %v9138_v13  ;;  %v2106_v10 = vmul.f32 %v8586_v9, %v8578_v50  ;;  %v7124_v13 = vld [vmem:[%s10098_s2 + $0x68] sm:$0xff] }
 0xa67   :  { %8006 = vmatprep.subr.mxu1 %v9143_v16 }
 0xa68   :  { %8007 = vmatpush3.msra.mxu1 %v9143_v16  ;;  %8008 = vmatprep.mubr.msk.f32.mxu1 %vm567_vm4, %v2106_v10  ;;  %v7142_v16 = vld [vmem:[%s10098_s2 + $0x178] sm:$0xff] }
 0xa69   :  { %8019 = vmatprep.subr.mxu1 %v7126_v11  ;;  %8009 = vmatmul.mubr.msk.f32.vlgmr.msra.gmra.mxu1 %vm567_vm4, %v2108_v12 }
 0xa6a   :  { %8020 = vmatpush3.msra.mxu1 %v7126_v11  ;;  %8027 = vmatprep.mubr.msk.f32.mxu1 %vm41_vm0, %v8824_v57 }
 0xa6b   :  { %8021 = vmatprep.subr.mxu1 %v7125_v14 }
 0xa6c   :  { %8022 = vmatpush3.msra.mxu1 %v7125_v14 }
 0xa6d   :  { %8023 = vmatprep.subr.mxu1 %v7124_v13 }
 0xa6e   :  { %8024 = vmatpush3.msra.mxu1 %v7124_v13 }
 0xa6f   :  { %8025 = vmatprep.subr.mxu1 %v7123_v15 }
 0xa70   :  { %8026 = vmatpush3.msra.mxu1 %v7123_v15 }
 0xa71   :  { %8028 = vmatmul.mubr.msk.f32.vlgmr.msra.gmra.mxu1 %vm41_vm0, %v8829_v63  ;;  %8047 = vmatprep.subr.mxu1 %v7142_v16 }
 0xa72   :  { %8030 = vmatprep.mubr.msk.f32.mxu1 %vm41_vm0, %v8831_v1  ;;  %8048 = vmatpush3.msra.mxu1 %v7142_v16 }
 0xa73   :  { %8049 = vmatprep.subr.mxu1 %v7141_v17 }
 0xa74   :  { %8050 = vmatpush3.msra.mxu1 %v7141_v17 }
 0xa75   :  { %8031 = vmatmul.mubr.msk.f32.gmra.mxu1 %vm41_vm0, %v8843_v5  ;;  %8051 = vmatprep.subr.mxu1 %v7140_v18 }
 0xa76   :  { %8052 = vmatpush3.msra.mxu1 %v7140_v18  ;;  %8055 = vmatprep.mubr.msk.f32.mxu1 %vm41_vm0, %v8824_v57 }
 0xa77   :  { %8053 = vmatprep.subr.mxu1 %v7139_v19 }
 0xa78   :  { %8054 = vmatpush3.msra.mxu1 %v7139_v19 }
 0xa79   :  { %8056 = vmatmul.mubr.msk.f32.vlgmr.msra.gmra.mxu1 %vm41_vm0, %v8829_v63 }
 0xa7a   :  { %8058 = vmatprep.mubr.msk.f32.mxu1 %vm41_vm0, %v8831_v1 }
 0xa7d   :  { %8059 = vmatmul.mubr.msk.f32.gmra.mxu1 %vm41_vm0, %v8843_v5 }
 0xb25   :  { %v8003_v22 = vpop.f32.mrf.mxu1 }
 0xb27   :  { %v2181_v23 = vpop.f32.mrf.mxu1 }
 0xb28   :  { %8013 = vmatprep.mubr.msk.f32.mxu0 %vm392_vm1, %v2181_v23 }
 0xb29   :  { %v8010_v26 = vpop.f32.mrf.mxu1  ;;  %8014 = vmatmul.mubr.msk.f32.vlgmr.msra.gmra.mxu0 %vm392_vm1, %v8003_v22 }
 0xb2a   :  { %8034 = vmatpush3.msra.mxu0 %v7134_v21 }
 0xb2b   :  { %v2262_v28 = vpop.f32.mrf.mxu1  ;;  %8035 = vmatprep.subr.mxu0 %v7133_v24 }
 0xb2c   :  { %8016 = vmatprep.mubr.msk.f32.mxu0 %vm392_vm1, %v2262_v28  ;;  %8036 = vmatpush3.msra.mxu0 %v7133_v24 }
 0xb2d   :  { %8017 = vmatmul.mubr.msk.f32.gmra.mxu0 %vm392_vm1, %v8010_v26  ;;  %8037 = vmatprep.subr.mxu0 %v7132_v27 }
 0xb2e   :  { %8038 = vmatpush3.msra.mxu0 %v7132_v27  ;;  %8041 = vmatprep.mubr.msk.f32.mxu0 %vm41_vm0, %v8824_v57 }
 0xb2f   :  { %8039 = vmatprep.subr.mxu0 %v7131_v29 }
 0xb30   :  { %8040 = vmatpush3.msra.mxu0 %v7131_v29 }
 0xb31   :  { %v8029_v25 = vpop.f32.mrf.mxu1  ;;  %8042 = vmatmul.mubr.msk.f32.vlgmr.msra.gmra.mxu0 %vm41_vm0, %v8829_v63 }
 0xb32   :  { %8061 = vmatprep.subr.msk.mxu0 %vm392_vm1, %v8029_v25  ;;  %8044 = vmatprep.mubr.msk.f32.mxu0 %vm41_vm0, %v8831_v1  ;;  %v1608_v1 = vadd.f32 %v9083_v51, %v9121_v2 }
 0xb33   :  { %v2445_v30 = vpop.f32.mrf.mxu1  ;;  %8062 = vmatpush3.xpose.msk.msra.mxu0 %vm392_vm1, %v8029_v25 }
 0xb34   :  { %8063 = vmatprep.subr.msk.mxu0 %vm392_vm1, %v2445_v30 }
 0xb35   :  { %v8032_v31 = vpop.f32.mrf.mxu1  ;;  %8045 = vmatmul.mubr.msk.f32.gmra.mxu0 %vm41_vm0, %v8843_v5  ;;  %v1603_v5 = vadd.f32 %v9090_v53, %v9123_v3 }
 0xb36   :  { %8068 = vmatprep.subr.msk.mxu1 %vm392_vm1, %v8032_v31 }
 0xb37   :  { %v2455_v57 = vpop.f32.mrf.mxu1  ;;  %8064 = vmatpush3.xpose.msk.msra.mxu0 %vm392_vm1, %v2445_v30  ;;  %8069 = vmatpush3.xpose.msk.msra.mxu1 %vm392_vm1, %v8032_v31 }
 0xb38   :  { %8070 = vmatprep.subr.msk.mxu1 %vm392_vm1, %v2455_v57 }
 0xb39   :  { %v8057_v63 = vpop.f32.mrf.mxu1 }
 0xb3a   :  { %8075 = vmatprep.subr.mxu0 %v8057_v63 }
 0xb3b   :  { %8071 = vmatpush3.xpose.msk.msra.mxu1 %vm392_vm1, %v2455_v57  ;;  %v2625_v53 = vpop.f32.mrf.mxu1 }
 0xb3d   :  { %v9256_v4 = vpop.f32.mrf.mxu1 }
 0xb3f   :  { %v9262_v45 = vpop.f32.mrf.mxu1 }
 0xbe9   :  { %v8015_v39 = vpop.f32.mrf.mxu0 }
 0xbea   :  { %v9242_v40 = vadd.f32 %v8015_v39, %v1608_v1 }
 0xbeb   :  { %v2351_v41 = vpop.f32.mrf.mxu0 }
 0xbec   :  { %v9246_v34 = vadd.f32 %v2351_v41, %v1603_v5 }
 0xbed   :  { %v8018_v32 = vpop.f32.mrf.mxu0 }
 0xbee   :  { %v9250_v37 = vadd.f32 %v8018_v32, %v1618_v38  ;;  %v7159_v38 = vld [vmem:[%s10099_s3 + $0x18] sm:$0xff] }
 0xbef   :  { %v2361_v42 = vpop.f32.mrf.mxu0  ;;  %8089 = vmatprep.subr.mxu1 %v7159_v38 }
 0xbf0   :  { %v9252_v51 = vadd.f32 %v2361_v42, %v1613_v36 }
 0xbf1   :  { %v8043_v2 = vpop.f32.mrf.mxu0 }
 0xbf3   :  { %v2535_v43 = vpop.f32.mrf.mxu0 }
 0xbf4   :  { %8065 = vmatprep.mubr.msk.f32.mxu0 %vm392_vm1, %v2535_v43  ;;  %v3133_v43 = vsub.s32 4, %v8811_v44 }
 0xbf5   :  { %v8046_v3 = vpop.f32.mrf.mxu0  ;;  %8066 = vmatmul.mubr.msk.f32.vlgmr.msra.gmra.mxu0 %vm392_vm1, %v8043_v2 }
 0xbf6   :  { %8076 = vmatpush3.msra.mxu0 %v8057_v63 }
 0xbf7   :  { %8077 = vmatprep.subr.mxu0 %v2625_v53  ;;  %v2545_v55 = vpop.f32.mrf.mxu0 }
 0xbf8   :  { %8078 = vmatpush3.msra.mxu0 %v2625_v53  ;;  %8072 = vmatprep.mubr.msk.f32.mxu1 %vm392_vm1, %v2545_v55  ;;  %v9294_v55 = vld [vmem:[%s10097_s1] sm:$0xff] }
 0xbf9   :  { %8082 = vmatprep.subr.mxu0 %v9256_v4  ;;  %8073 = vmatmul.mubr.msk.f32.vlgmr.msra.gmra.mxu1 %vm392_vm1, %v8046_v3 }
 0xbfa   :  { %8090 = vmatpush3.msra.mxu1 %v7159_v38  ;;  %v3328_v38 = vld [vmem:[%s10101_s5 + $0x60] sm:$0xff] }
 0xcb5   :  { %v8067_v58 = vpop.f32.mrf.mxu0 }
 0xcb6   :  { %v2728_v6 = vadd.f32 %v8067_v58, %v8936_v33 }
 0xcb7   :  { %v2722_v46 = vpop.f32.mrf.mxu0 }
 0xcb8   :  { %v2723_v48 = vadd.f32 %v2722_v46, %v8938_v35  ;;  %v2821_v50 = vsel %vm567_vm4, %v2728_v6, -inf }
 0xcb9   :  { %v8074_v52 = vpop.f32.mrf.mxu1  ;;  %2822 = vmax.xlane.f32.xlu1 %v2821_v50 }
 0xcba   :  { %v2815_v54 = vadd.f32 %v8074_v52, %v8936_v33  ;;  %v2818_v56 = vsel %vm567_vm4, %v2723_v48, -inf }
 0xcbb   :  { %v2809_v59 = vpop.f32.mrf.mxu1  ;;  %2819 = vmax.xlane.f32.xlu0 %v2818_v56 }
 0xcbc   :  { %v2810_v60 = vadd.f32 %v2809_v59, %v8938_v35  ;;  %v2827_v61 = vsel %vm567_vm4, %v2815_v54, -inf }
 0xcbd   :  { %2828 = vmax.xlane.f32.xlu1 %v2827_v61 }
 0xcbe   :  { %v2824_v62 = vsel %vm567_vm4, %v2810_v60, -inf }
 0xcbf   :  { %2825 = vmax.xlane.f32.xlu0 %v2824_v62 }
 0xd42   :  { %v2823_v0 = vpop.xlane.xlu1 %2822 }
 0xd43   :  { %v2831_v7 = vsub.f32 %v2728_v6, %v2823_v0  ;;  %v8700_v6 = vld [vmem:[%s10096_s0 + $0x8] sm:$0xff] }
 0xd44   :  { %v2820_v8 = vpop.xlane.xlu0 %2819 }
 0xd45   :  { %v2836_v9 = vmul.f32 1.442695, %v2831_v7  ;;  %v2830_v10 = vsub.f32 %v2723_v48, %v2820_v8 }
 0xd46   :  { %v2829_v11 = vpop.xlane.xlu1 %2828 }
 0xd47   :  { %8587 = vpow2.f32 %v2836_v9  ;;  %v2834_v12 = vmul.f32 1.442695, %v2830_v10  ;;  %v2833_v14 = vsub.f32 %v2815_v54, %v2829_v11 }
 0xd48   :  { %v2826_v13 = vpop.xlane.xlu0 %2825 }
 0xd49   :  { %8589 = vpow2.f32 %v2834_v12  ;;  %v2840_v15 = vmul.f32 1.442695, %v2833_v14  ;;  %v2832_v16 = vsub.f32 %v2810_v60, %v2826_v13  ;;  %v8702_v60 = vld [vmem:[%s10096_s0 + $0x18] sm:$0xff] }
 0xd4b   :  { %8591 = vpow2.f32 %v2840_v15  ;;  %v2838_v17 = vmul.f32 1.442695, %v2832_v16 }
 0xd4d   :  { %8593 = vpow2.f32 %v2838_v17 }
 0xd54   :  { %v8588_v18 = vpop.eup %8587 }
 0xd55   :  { %v2845_v19 = vsel %vm567_vm4, %v8588_v18, 0.0 }
 0xd56   :  { %v8590_v20 = vpop.eup %8589  ;;  %2846 = vadd.xlane.f32.xlu1 %v2845_v19 }
 0xd57   :  { %v2842_v21 = vsel %vm567_vm4, %v8590_v20, 0.0 }
 0xd58   :  { %v8592_v22 = vpop.eup %8591  ;;  %2843 = vadd.xlane.f32.xlu0 %v2842_v21 }
 0xd59   :  { %v2851_v23 = vsel %vm567_vm4, %v8592_v22, 0.0 }
 0xd5a   :  { %v8594_v24 = vpop.eup %8593  ;;  %2852 = vadd.xlane.f32.xlu1 %v2851_v23 }
 0xd5b   :  { %v2848_v26 = vsel %vm567_vm4, %v8594_v24, 0.0 }
 0xd5c   :  { %2849 = vadd.xlane.f32.xlu0 %v2848_v26 }
 0xddf   :  { %v2847_v27 = vpop.xlane.xlu1 %2846 }
 0xde0   :  { %8595 = vrcp.f32 %v2847_v27 }
 0xde1   :  { %v2844_v28 = vpop.xlane.xlu0 %2843 }
 0xde2   :  { %8597 = vrcp.f32 %v2844_v28 }
 0xde3   :  { %v2853_v29 = vpop.xlane.xlu1 %2852 }
 0xde4   :  { %8599 = vrcp.f32 %v2853_v29 }
 0xde5   :  { %v2850_v25 = vpop.xlane.xlu0 %2849 }
 0xde6   :  { %8601 = vrcp.f32 %v2850_v25 }
 0xded   :  { %v8596_v30 = vpop.eup %8595 }
 0xdee   :  { %v2857_v63 = vmul.f32 %v8596_v30, %v8588_v18 }
 0xdef   :  { %v8598_v31 = vpop.eup %8597 }
 0xdf0   :  { %v2855_v57 = vmul.f32 %v8598_v31, %v8590_v20  ;;  %v3210_v31 = vld [vmem:[%s10100_s4 + $0x18] sm:$0xff] }
 0xdf1   :  { %v8600_v1 = vpop.eup %8599 }
 0xdf2   :  { %8079 = vmatprep.mubr.msk.f32.mxu0 %vm567_vm4, %v2855_v57  ;;  %v2861_v41 = vmul.f32 %v8600_v1, %v8592_v22  ;;  %v3209_v57 = vld [vmem:[%s10100_s4 + $0x10] sm:$0xff]  ;;  %v3207_v1 = vld [vmem:[%s10100_s4] sm:$0xff] }
 0xdf3   :  { %v8602_v39 = vpop.eup %8601  ;;  %8080 = vmatmul.mubr.msk.f32.vlgmr.msra.gmra.mxu0 %vm567_vm4, %v2857_v63  ;;  %v3208_v63 = vld [vmem:[%s10100_s4 + $0x8] sm:$0xff] }
 0xdf4   :  { %8083 = vmatpush3.msra.mxu0 %v9256_v4  ;;  %v2859_v5 = vmul.f32 %v8602_v39, %v8594_v24  ;;  %v3134_v4 = vrot.slane %v9294_v55, %v3133_v43  ;;  %v3331_v39 = vld [vmem:[%s10101_s5 + $0x78] sm:$0xff] }
 0xdf5   :  { %8084 = vmatprep.subr.mxu0 %v9262_v45  ;;  %8111 = vmatprep.subr.mxu1 %v3331_v39 }
 0xdf6   :  { %8085 = vmatpush3.msra.mxu0 %v9262_v45  ;;  %8086 = vmatprep.mubr.msk.f32.mxu0 %vm567_vm4, %v2859_v5  ;;  %v3330_v5 = vld [vmem:[%s10101_s5 + $0x70] sm:$0xff] }
 0xdf7   :  { %8087 = vmatmul.mubr.msk.f32.vlgmr.msra.gmra.mxu0 %vm567_vm4, %v2861_v41  ;;  %8097 = vmatprep.subr.mxu0 %v3210_v31  ;;  %v3329_v41 = vld [vmem:[%s10101_s5 + $0x68] sm:$0xff] }
 0xdf8   :  { %8098 = vmatpush3.msra.mxu0 %v3210_v31 }
 0xdf9   :  { %8099 = vmatprep.subr.mxu0 %v3209_v57 }
 0xdfa   :  { %8100 = vmatpush3.msra.mxu0 %v3209_v57 }
 0xdfb   :  { %8101 = vmatprep.subr.mxu0 %v3208_v63 }
 0xdfc   :  { %8102 = vmatpush3.msra.mxu0 %v3208_v63 }
 0xdfd   :  { %8103 = vmatprep.subr.mxu0 %v3207_v1 }
 0xdfe   :  { %8104 = vmatpush3.msra.mxu0 %v3207_v1 }
 0xeb3   :  { %v8081_v32 = vpop.f32.mrf.mxu0 }
 0xeb5   :  { %v2934_v36 = vpop.f32.mrf.mxu0 }
 0xeb6   :  { %8091 = vmatprep.mubr.msk.f32.mxu1 %vm392_vm1, %v2934_v36  ;;  %v3326_v36 = vld [vmem:[%s10101_s5 + $0x50] sm:$0xff] }
 0xeb7   :  { %v8088_v42 = vpop.f32.mrf.mxu0  ;;  %8092 = vmatmul.mubr.msk.f32.vlgmr.msra.gmra.mxu1 %vm392_vm1, %v8081_v32  ;;  %v3327_v32 = vld [vmem:[%s10101_s5 + $0x58] sm:$0xff] }
 0xeb8   :  { %8112 = vmatpush3.msra.mxu1 %v3331_v39 }
 0xeb9   :  { %v3015_v2 = vpop.f32.mrf.mxu0  ;;  %8113 = vmatprep.subr.mxu1 %v3330_v5 }
 0xeba   :  { %8094 = vmatprep.mubr.msk.f32.mxu1 %vm392_vm1, %v3015_v2  ;;  %8114 = vmatpush3.msra.mxu1 %v3330_v5  ;;  %v3324_v2 = vld [vmem:[%s10101_s5 + $0x40] sm:$0xff] }
 0xebb   :  { %8095 = vmatmul.mubr.msk.f32.gmra.mxu1 %vm392_vm1, %v8088_v42  ;;  %8115 = vmatprep.subr.mxu1 %v3329_v41  ;;  %v3325_v42 = vld [vmem:[%s10101_s5 + $0x48] sm:$0xff] }
 0xebc   :  { %8116 = vmatpush3.msra.mxu1 %v3329_v41 }
 0xebd   :  { %8117 = vmatprep.subr.mxu1 %v3328_v38 }
 0xebe   :  { %8118 = vmatpush3.msra.mxu1 %v3328_v38 }
 0xebf   :  { %8119 = vmatprep.subr.mxu1 %v3327_v32 }
 0xec0   :  { %8120 = vmatpush3.msra.mxu1 %v3327_v32 }
 0xec1   :  { %8121 = vmatprep.subr.mxu1 %v3326_v36 }
 0xec2   :  { %8122 = vmatpush3.msra.mxu1 %v3326_v36 }
 0xec3   :  { %8123 = vmatprep.subr.mxu1 %v3325_v42 }
 0xec4   :  { %8124 = vmatpush3.msra.mxu1 %v3325_v42 }
 0xec5   :  { %8125 = vmatprep.subr.mxu1 %v3324_v2 }
 0xec6   :  { %8126 = vmatpush3.msra.mxu1 %v3324_v2 }
 0xf77   :  { %v8093_v53 = vpop.f32.mrf.mxu1 }
 0xf78   :  { %v3124_v3 = vadd.f32 %v8093_v53, %v9242_v40  ;;  %v8701_v40 = vld [vmem:[%s10096_s0] sm:$0xff]  ;;  %v3323_v53 = vld [vmem:[%s10101_s5 + $0x38] sm:$0xff] }
 0xf79   :  { %v3104_v58 = vpop.f32.mrf.mxu1  ;;  %8127 = vmatprep.subr.mxu1 %v3323_v53 }
 0xf7a   :  { %v3128_v45 = vadd.f32 %v8700_v6, %v3124_v3  ;;  %v3123_v46 = vadd.f32 %v3104_v58, %v9246_v34  ;;  %v3322_v3 = vld [vmem:[%s10101_s5 + $0x30] sm:$0xff]  ;;  %8128 = vmatpush3.msra.mxu1 %v3323_v53  ;;  %v3320_v58 = vld [vmem:[%s10101_s5 + $0x20] sm:$0xff] }
 0xf7b   :  { %v8096_v48 = vpop.f32.mrf.mxu1  ;;  %8129 = vmatprep.subr.mxu1 %v3322_v3 }
 0xf7c   :  { %v9303_v50 = vadd.f32 %v3134_v4, %v3128_v45  ;;  %v3127_v52 = vadd.f32 %v8701_v40, %v3123_v46  ;;  %v3126_v54 = vadd.f32 %v8096_v48, %v9250_v37  ;;  %v8703_v37 = vld [vmem:[%s10096_s0 + $0x10] sm:$0xff]  ;;  %8130 = vmatpush3.msra.mxu1 %v3322_v3  ;;  %v3334_v3 = vsub.s32 5, %v8811_v44 }
 0xf7d   :  { %v3114_v56 = vpop.f32.mrf.mxu1 }
 0xf7e   :  { %v9309_v59 = vadd.f32 %v3134_v4, %v3127_v52  ;;  %v3130_v61 = vadd.f32 %v8702_v60, %v3126_v54  ;;  %v3125_v34 = vadd.f32 %v3114_v56, %v9252_v51  ;;  %v3142_v62 = vsel %vm41_vm0, %v9303_v50, 0.0 }
 0xf7f   :  { %3143 = vadd.xlane.f32.xlu1 %v3142_v62 }
 0xf80   :  { %v9317_v0 = vadd.f32 %v3134_v4, %v3130_v61  ;;  %v3129_v7 = vadd.f32 %v8703_v37, %v3125_v34  ;;  %v3139_v8 = vsel %vm41_vm0, %v9309_v59, 0.0  ;;  %v9403_v37 = vsub.s32 2, %v8811_v44 }
 0xf81   :  { %3140 = vadd.xlane.f32.xlu0 %v3139_v8 }
 0xf82   :  { %v9324_v9 = vadd.f32 %v3134_v4, %v3129_v7  ;;  %v3148_v51 = vsel %vm41_vm0, %v9317_v0, 0.0  ;;  %v3321_v4 = vld [vmem:[%s10101_s5 + $0x28] sm:$0xff]  ;;  %v3194_v8 = vrot.slane %v9294_v55, %v9403_v37 }
 0xf83   :  { %3149 = vadd.xlane.f32.xlu1 %v3148_v51  ;;  %8131 = vmatprep.subr.mxu1 %v3321_v4  ;;  %v3201_v51 = vsub.s32 3, %v8811_v44 }
 0xf84   :  { %v3145_v10 = vsel %vm41_vm0, %v9324_v9, 0.0  ;;  %8132 = vmatpush3.msra.mxu1 %v3321_v4  ;;  %v3335_v4 = vrot.slane %v9294_v55, %v3334_v3 }
 0xf85   :  { %3146 = vadd.xlane.f32.xlu0 %v3145_v10  ;;  %8133 = vmatprep.subr.mxu1 %v3320_v58 }
 0xf86   :  { %8134 = vmatpush3.msra.mxu1 %v3320_v58 }
0x1008   :  { %v3144_v11 = vpop.xlane.xlu1 %3143 }
0x1009   :  { %v3152_v12 = vmul.f32 0.03125, %v3144_v11 }
0x100a   :  { %v3141_v14 = vpop.xlane.xlu0 %3140 }
0x100b   :  { %v9331_v13 = vsub.f32 %v9303_v50, %v3152_v12  ;;  %v3151_v15 = vmul.f32 0.03125, %v3141_v14 }
0x100c   :  { %v3150_v16 = vpop.xlane.xlu1 %3149 }
0x100d   :  { %v9334_v17 = vsub.f32 %v9309_v59, %v3151_v15  ;;  %v3154_v18 = vmul.f32 0.03125, %v3150_v16  ;;  %v3160_v19 = vmul.f32 %v9331_v13, %v9331_v13  ;;  %v3202_v15 = vrot.slane %v9294_v55, %v3201_v51 }
0x100e   :  { %v3147_v20 = vpop.xlane.xlu0 %3146 }
0x100f   :  { %v9339_v21 = vsub.f32 %v9317_v0, %v3154_v18  ;;  %v3153_v22 = vmul.f32 0.03125, %v3147_v20  ;;  %v3166_v23 = vsel %vm41_vm0, %v3160_v19, 0.0  ;;  %v3159_v24 = vmul.f32 %v9334_v17, %v9334_v17 }
0x1010   :  { %3167 = vadd.xlane.f32.xlu1 %v3166_v23 }
0x1011   :  { %v9345_v26 = vsub.f32 %v9324_v9, %v3153_v22  ;;  %v3163_v27 = vsel %vm41_vm0, %v3159_v24, 0.0  ;;  %v3162_v28 = vmul.f32 %v9339_v21, %v9339_v21 }
0x1012   :  { %3164 = vadd.xlane.f32.xlu0 %v3163_v27 }
0x1013   :  { %v3172_v29 = vsel %vm41_vm0, %v3162_v28, 0.0  ;;  %v3161_v25 = vmul.f32 %v9345_v26, %v9345_v26 }
0x1014   :  { %3173 = vadd.xlane.f32.xlu1 %v3172_v29  ;;  %v3317_v29 = vld [vmem:[%s10101_s5 + $0x8] sm:$0xff] }
0x1015   :  { %v3169_v30 = vsel %vm41_vm0, %v3161_v25, 0.0  ;;  %v3316_v25 = vld [vmem:[%s10101_s5] sm:$0xff] }
0x1016   :  { %3170 = vadd.xlane.f32.xlu0 %v3169_v30  ;;  %v3213_v30 = vsub.s32 6, %v8811_v44 }
0x1018   :  { %v3214_v31 = vrot.slane %v9294_v55, %v3213_v30 }
0x1099   :  { %v3168_v6 = vpop.xlane.xlu1 %3167 }
0x109a   :  { %v3176_v45 = vmul.f32 0.03125, %v3168_v6 }
0x109b   :  { %v3165_v46 = vpop.xlane.xlu0 %3164 }
0x109c   :  { %v3180_v48 = vadd.f32 1e-05, %v3176_v45  ;;  %v3175_v40 = vmul.f32 0.03125, %v3165_v46 }
0x109d   :  { %v3174_v52 = vpop.xlane.xlu1 %3173 }
0x109e   :  { %8603 = vrsqrt.f32 %v3180_v48  ;;  %v3179_v54 = vadd.f32 1e-05, %v3175_v40  ;;  %v3178_v56 = vmul.f32 0.03125, %v3174_v52 }
0x109f   :  { %v3171_v60 = vpop.xlane.xlu0 %3170 }
0x10a0   :  { %8605 = vrsqrt.f32 %v3179_v54  ;;  %v3182_v61 = vadd.f32 1e-05, %v3178_v56  ;;  %v3177_v34 = vmul.f32 0.03125, %v3171_v60 }
0x10a2   :  { %8607 = vrsqrt.f32 %v3182_v61  ;;  %v3181_v62 = vadd.f32 1e-05, %v3177_v34 }
0x10a4   :  { %8609 = vrsqrt.f32 %v3181_v62 }
0x10ab   :  { %v8604_v7 = vpop.eup %8603 }
0x10ac   :  { %v3188_v10 = vmul.f32 %v8604_v7, %v9331_v13 }
0x10ad   :  { %v8606_v11 = vpop.eup %8605 }
0x10ae   :  { %v3187_v12 = vmul.f32 %v8606_v11, %v9334_v17  ;;  %v3196_v16 = vmul.f32 %v3194_v8, %v3188_v10 }
0x10af   :  { %v8608_v14 = vpop.eup %8607 }
0x10b0   :  { %v3195_v18 = vmul.f32 %v3194_v8, %v3187_v12  ;;  %v3190_v19 = vmul.f32 %v8608_v14, %v9339_v21  ;;  %v3204_v24 = vadd.f32 %v3202_v15, %v3196_v16  ;;  %v3319_v21 = vld [vmem:[%s10101_s5 + $0x18] sm:$0xff] }
0x10b1   :  { %v8610_v20 = vpop.eup %8609  ;;  %8135 = vmatprep.subr.mxu1 %v3319_v21 }
0x10b2   :  { %v3203_v22 = vadd.f32 %v3202_v15, %v3195_v18  ;;  %v3189_v23 = vmul.f32 %v8610_v20, %v9345_v26  ;;  %v3198_v27 = vmul.f32 %v3194_v8, %v3190_v19  ;;  %8136 = vmatpush3.msra.mxu1 %v3319_v21  ;;  %v3318_v26 = vld [vmem:[%s10101_s5 + $0x10] sm:$0xff]  ;;  %v7172_v21 = vld [vmem:[%s10098_s2 + $0x198] sm:$0xff] }
0x10b3   :  { %8137 = vmatprep.subr.mxu1 %v3318_v26  ;;  %8149 = vmatprep.subr.mxu0 %v7172_v21 }
0x10b4   :  { %8105 = vmatprep.mubr.msk.f32.mxu0 %vm41_vm0, %v3203_v22  ;;  %v3197_v13 = vmul.f32 %v3194_v8, %v3189_v23  ;;  %v3206_v28 = vadd.f32 %v3202_v15, %v3198_v27  ;;  %8138 = vmatpush3.msra.mxu1 %v3318_v26  ;;  %v7171_v26 = vld [vmem:[%s10098_s2 + $0x190] sm:$0xff] }
0x10b5   :  { %8106 = vmatmul.mubr.msk.f32.vlgmr.msra.gmra.mxu0 %vm41_vm0, %v3204_v24  ;;  %8139 = vmatprep.subr.mxu1 %v3317_v29 }
0x10b6   :  { %v3205_v17 = vadd.f32 %v3202_v15, %v3197_v13  ;;  %8140 = vmatpush3.msra.mxu1 %v3317_v29  ;;  %8150 = vmatpush3.msra.mxu0 %v7172_v21  ;;  %v7170_v29 = vld [vmem:[%s10098_s2 + $0x188] sm:$0xff] }
0x10b7   :  { %8141 = vmatprep.subr.mxu1 %v3316_v25  ;;  %8151 = vmatprep.subr.mxu0 %v7171_v26 }
0x10b8   :  { %8108 = vmatprep.mubr.msk.f32.mxu0 %vm41_vm0, %v3205_v17  ;;  %8142 = vmatpush3.msra.mxu1 %v3316_v25  ;;  %v7169_v25 = vld [vmem:[%s10098_s2 + $0x180] sm:$0xff] }
0x10b9   :  { %8109 = vmatmul.mubr.msk.f32.gmra.mxu0 %vm41_vm0, %v3206_v28 }
0x10ba   :  { %8152 = vmatpush3.msra.mxu0 %v7171_v26 }
0x10bb   :  { %8153 = vmatprep.subr.mxu0 %v7170_v29 }
0x10bc   :  { %8154 = vmatpush3.msra.mxu0 %v7170_v29 }
0x10bd   :  { %8155 = vmatprep.subr.mxu0 %v7169_v25 }
0x10be   :  { %8156 = vmatpush3.msra.mxu0 %v7169_v25 }
0x1175   :  { %v8107_v57 = vpop.f32.mrf.mxu0 }
0x1176   :  { %v3299_v63 = vadd.f32 %v8107_v57, %v3214_v31 }
0x1177   :  { %v3293_v1 = vpop.f32.mrf.mxu0 }
0x1178   :  { %v3294_v39 = vadd.f32 %v3293_v1, %v3214_v31  ;;  %v3313_v38 = vmax.f32 %v3299_v63, 0.0 }
0x1179   :  { %v8110_v5 = vpop.f32.mrf.mxu0 }
0x117a   :  { %v3312_v41 = vmax.f32 %v3294_v39, 0.0  ;;  %v3309_v32 = vadd.f32 %v8110_v5, %v3214_v31 }
0x117b   :  { %v3303_v36 = vpop.f32.mrf.mxu0 }
0x117c   :  { %v3304_v42 = vadd.f32 %v3303_v36, %v3214_v31  ;;  %8143 = vmatprep.mubr.f32.mxu1 %v3312_v41  ;;  %v3315_v53 = vmax.f32 %v3309_v32, 0.0  ;;  %v7180_v31 = vld [vmem:[%s10098_s2 + $0x218] sm:$0xff] }
0x117d   :  { %8144 = vmatmul.mubr.f32.vlgmr.msra.gmra.mxu1 %v3313_v38  ;;  %8163 = vmatprep.subr.mxu0 %v7180_v31 }
0x117e   :  { %v3314_v2 = vmax.f32 %v3304_v42, 0.0 }
0x1180   :  { %8146 = vmatprep.mubr.f32.mxu1 %v3314_v2 }
0x1181   :  { %8147 = vmatmul.mubr.f32.gmra.mxu1 %v3315_v53 }
0x123d   :  { %v8145_v58 = vpop.f32.mrf.mxu1 }
0x123e   :  { %v3408_v6 = vadd.f32 %v8145_v58, %v3335_v4 }
0x123f   :  { %v3402_v45 = vpop.f32.mrf.mxu1 }
0x1240   :  { %v9440_v46 = vadd.f32 %v3408_v6, %v9303_v50  ;;  %v3403_v48 = vadd.f32 %v3402_v45, %v3335_v4 }
0x1241   :  { %v8148_v40 = vpop.f32.mrf.mxu1 }
0x1242   :  { %v9443_v52 = vadd.f32 %v3403_v48, %v9309_v59  ;;  %v3418_v54 = vadd.f32 %v8148_v40, %v3335_v4  ;;  %v3430_v56 = vsel %vm41_vm0, %v9440_v46, 0.0 }
0x1243   :  { %3431 = vadd.xlane.f32.xlu1 %v3430_v56  ;;  %v3412_v60 = vpop.f32.mrf.mxu1 }
0x1244   :  { %v9448_v61 = vadd.f32 %v3418_v54, %v9317_v0  ;;  %v3413_v55 = vadd.f32 %v3412_v60, %v3335_v4  ;;  %v3427_v34 = vsel %vm41_vm0, %v9443_v52, 0.0  ;;  %v7168_v4 = vld [vmem:[%s10097_s1 + $0x8] sm:$0xff] }
0x1245   :  { %3428 = vadd.xlane.f32.xlu0 %v3427_v34  ;;  %v3482_v6 = vrot.slane %v7168_v4, %v8814_v47  ;;  %v3490_v56 = vrot.slane %v7168_v4, %v8820_v49 }
0x1246   :  { %v9453_v50 = vadd.f32 %v3413_v55, %v9324_v9  ;;  %v3436_v59 = vsel %vm41_vm0, %v9448_v61, 0.0 }
0x1247   :  { %3437 = vadd.xlane.f32.xlu1 %v3436_v59 }
0x1248   :  { %v3433_v62 = vsel %vm41_vm0, %v9453_v50, 0.0 }
0x1249   :  { %3434 = vadd.xlane.f32.xlu0 %v3433_v62 }
0x12cc   :  { %v3432_v7 = vpop.xlane.xlu1 %3431 }
0x12cd   :  { %v3440_v8 = vmul.f32 0.03125, %v3432_v7 }
0x12ce   :  { %v3429_v0 = vpop.xlane.xlu0 %3428 }
0x12cf   :  { %v3444_v10 = vsub.f32 %v9440_v46, %v3440_v8  ;;  %v3439_v11 = vmul.f32 0.03125, %v3429_v0 }
0x12d0   :  { %v3438_v12 = vpop.xlane.xlu1 %3437 }
0x12d1   :  { %v3443_v14 = vsub.f32 %v9443_v52, %v3439_v11  ;;  %v3442_v15 = vmul.f32 0.03125, %v3438_v12  ;;  %v3448_v9 = vmul.f32 %v3444_v10, %v3444_v10 }
0x12d2   :  { %v3435_v16 = vpop.xlane.xlu0 %3434 }
0x12d3   :  { %v3446_v18 = vsub.f32 %v9448_v61, %v3442_v15  ;;  %v3441_v19 = vmul.f32 0.03125, %v3435_v16  ;;  %v3454_v20 = vsel %vm41_vm0, %v3448_v9, 0.0  ;;  %v3447_v22 = vmul.f32 %v3443_v14, %v3443_v14  ;;  %v7177_v9 = vld [vmem:[%s10098_s2 + $0x200] sm:$0xff]  ;;  %v7188_v16 = vld [vmem:[%s10098_s2 + $0x298] sm:$0xff] }
0x12d4   :  { %3455 = vadd.xlane.f32.xlu1 %v3454_v20  ;;  %v7185_v20 = vld [vmem:[%s10098_s2 + $0x280] sm:$0xff] }
0x12d5   :  { %v3445_v23 = vsub.f32 %v9453_v50, %v3441_v19  ;;  %v3451_v24 = vsel %vm41_vm0, %v3447_v22, 0.0  ;;  %v3450_v27 = vmul.f32 %v3446_v18, %v3446_v18  ;;  %v7186_v19 = vld [vmem:[%s10098_s2 + $0x288] sm:$0xff] }
0x12d6   :  { %3452 = vadd.xlane.f32.xlu0 %v3451_v24 }
0x12d7   :  { %v3460_v13 = vsel %vm41_vm0, %v3450_v27, 0.0  ;;  %v3449_v17 = vmul.f32 %v3445_v23, %v3445_v23 }
0x12d8   :  { %3461 = vadd.xlane.f32.xlu1 %v3460_v13 }
0x12d9   :  { %v3457_v28 = vsel %vm41_vm0, %v3449_v17, 0.0 }
0x12da   :  { %3458 = vadd.xlane.f32.xlu0 %v3457_v28 }
0x135d   :  { %v3456_v57 = vpop.xlane.xlu1 %3455 }
0x135e   :  { %v3464_v63 = vmul.f32 0.03125, %v3456_v57 }
0x135f   :  { %v3453_v1 = vpop.xlane.xlu0 %3452 }
0x1360   :  { %v3468_v39 = vadd.f32 1e-05, %v3464_v63  ;;  %v3463_v5 = vmul.f32 0.03125, %v3453_v1 }
0x1361   :  { %v3462_v41 = vpop.xlane.xlu1 %3461 }
0x1362   :  { %8611 = vrsqrt.f32 %v3468_v39  ;;  %v3467_v38 = vadd.f32 1e-05, %v3463_v5  ;;  %v3466_v32 = vmul.f32 0.03125, %v3462_v41 }
0x1363   :  { %v3459_v36 = vpop.xlane.xlu0 %3458 }
0x1364   :  { %8613 = vrsqrt.f32 %v3467_v38  ;;  %v3470_v42 = vadd.f32 1e-05, %v3466_v32  ;;  %v3465_v2 = vmul.f32 0.03125, %v3459_v36 }
0x1366   :  { %8615 = vrsqrt.f32 %v3470_v42  ;;  %v3469_v53 = vadd.f32 1e-05, %v3465_v2 }
0x1368   :  { %8617 = vrsqrt.f32 %v3469_v53 }
0x136f   :  { %v8612_v58 = vpop.eup %8611 }
0x1370   :  { %v3476_v45 = vmul.f32 %v8612_v58, %v3444_v10  ;;  %v7179_v10 = vld [vmem:[%s10098_s2 + $0x210] sm:$0xff] }
0x1371   :  { %v8614_v48 = vpop.eup %8613 }
0x1372   :  { %v3475_v40 = vmul.f32 %v8614_v48, %v3443_v14  ;;  %v3484_v60 = vmul.f32 %v3482_v6, %v3476_v45  ;;  %v7178_v14 = vld [vmem:[%s10098_s2 + $0x208] sm:$0xff] }
0x1373   :  { %v8616_v54 = vpop.eup %8615 }
0x1374   :  { %v3483_v55 = vmul.f32 %v3482_v6, %v3475_v40  ;;  %v3478_v34 = vmul.f32 %v8616_v54, %v3446_v18  ;;  %v9489_v8 = vadd.f32 %v3490_v56, %v3484_v60  ;;  %v7187_v18 = vld [vmem:[%s10098_s2 + $0x290] sm:$0xff] }
0x1375   :  { %v8618_v59 = vpop.eup %8617 }
0x1376   :  { %v9487_v62 = vadd.f32 %v3490_v56, %v3483_v55  ;;  %v3477_v7 = vmul.f32 %v8618_v59, %v3445_v23  ;;  %v3486_v0 = vmul.f32 %v3482_v6, %v3478_v34 }
0x1378   :  { %v3485_v11 = vmul.f32 %v3482_v6, %v3477_v7  ;;  %8157 = vmatprep.mubr.msk.f32.mxu0 %vm41_vm0, %v9487_v62  ;;  %v9503_v15 = vadd.f32 %v3490_v56, %v3486_v0 }
0x1379   :  { %8158 = vmatmul.mubr.msk.f32.vlgmr.msra.gmra.mxu0 %vm41_vm0, %v9489_v8 }
0x137a   :  { %v9498_v12 = vadd.f32 %v3490_v56, %v3485_v11  ;;  %8164 = vmatpush3.msra.mxu0 %v7180_v31 }
0x137b   :  { %8165 = vmatprep.subr.mxu0 %v7179_v10 }
0x137c   :  { %8160 = vmatprep.mubr.msk.f32.mxu0 %vm41_vm0, %v9498_v12  ;;  %8166 = vmatpush3.msra.mxu0 %v7179_v10 }
0x137d   :  { %8161 = vmatmul.mubr.msk.f32.gmra.mxu0 %vm41_vm0, %v9503_v15  ;;  %8167 = vmatprep.subr.mxu0 %v7178_v14 }
0x137e   :  { %8168 = vmatpush3.msra.mxu0 %v7178_v14  ;;  %8171 = vmatprep.mubr.msk.f32.mxu0 %vm41_vm0, %v9487_v62 }
0x137f   :  { %8169 = vmatprep.subr.mxu0 %v7177_v9 }
0x1380   :  { %8170 = vmatpush3.msra.mxu0 %v7177_v9 }
0x1381   :  { %8172 = vmatmul.mubr.msk.f32.vlgmr.msra.gmra.mxu0 %vm41_vm0, %v9489_v8  ;;  %8177 = vmatprep.subr.mxu0 %v7188_v16 }
0x1382   :  { %8174 = vmatprep.mubr.msk.f32.mxu0 %vm41_vm0, %v9498_v12  ;;  %8178 = vmatpush3.msra.mxu0 %v7188_v16 }
0x1383   :  { %8179 = vmatprep.subr.mxu0 %v7187_v18 }
0x1384   :  { %8180 = vmatpush3.msra.mxu0 %v7187_v18 }
0x1385   :  { %8175 = vmatmul.mubr.msk.f32.gmra.mxu0 %vm41_vm0, %v9503_v15  ;;  %8181 = vmatprep.subr.mxu0 %v7186_v19 }
0x1386   :  { %8182 = vmatpush3.msra.mxu0 %v7186_v19  ;;  %8185 = vmatprep.mubr.msk.f32.mxu0 %vm41_vm0, %v9487_v62  ;;  %v7209_v19 = vld [vmem:[%s10098_s2 + $0x1b8] sm:$0xff] }
0x1387   :  { %8183 = vmatprep.subr.mxu0 %v7185_v20 }
0x1388   :  { %8184 = vmatpush3.msra.mxu0 %v7185_v20  ;;  %v7217_v20 = vld [vmem:[%s10098_s2 + $0x238] sm:$0xff] }
0x1389   :  { %8186 = vmatmul.mubr.msk.f32.vlgmr.msra.gmra.mxu0 %vm41_vm0, %v9489_v8 }
0x138a   :  { %8188 = vmatprep.mubr.msk.f32.mxu0 %vm41_vm0, %v9498_v12 }
0x138d   :  { %8189 = vmatmul.mubr.msk.f32.gmra.mxu0 %vm41_vm0, %v9503_v15 }
0x1439   :  { %v8159_v22 = vpop.f32.mrf.mxu0 }
0x143a   :  { %8191 = vmatprep.subr.msk.mxu0 %vm392_vm1, %v8159_v22 }
0x143b   :  { %v3578_v23 = vpop.f32.mrf.mxu0  ;;  %8192 = vmatpush3.xpose.msk.msra.mxu0 %vm392_vm1, %v8159_v22 }
0x143c   :  { %8193 = vmatprep.subr.msk.mxu0 %vm392_vm1, %v3578_v23 }
0x143d   :  { %v8162_v24 = vpop.f32.mrf.mxu0 }
0x143e   :  { %8198 = vmatprep.subr.msk.mxu1 %vm392_vm1, %v8162_v24 }
0x143f   :  { %v3588_v27 = vpop.f32.mrf.mxu0  ;;  %8194 = vmatpush3.xpose.msk.msra.mxu0 %vm392_vm1, %v3578_v23  ;;  %8199 = vmatpush3.xpose.msk.msra.mxu1 %vm392_vm1, %v8162_v24 }
0x1440   :  { %8200 = vmatprep.subr.msk.mxu1 %vm392_vm1, %v3588_v27 }
0x1441   :  { %v8173_v13 = vpop.f32.mrf.mxu0 }
0x1443   :  { %v3668_v17 = vpop.f32.mrf.mxu0  ;;  %8201 = vmatpush3.xpose.msk.msra.mxu1 %vm392_vm1, %v3588_v27 }
0x1444   :  { %8195 = vmatprep.mubr.msk.f32.mxu0 %vm392_vm1, %v3668_v17 }
0x1445   :  { %v8176_v28 = vpop.f32.mrf.mxu0  ;;  %8196 = vmatmul.mubr.msk.f32.vlgmr.msra.gmra.mxu0 %vm392_vm1, %v8173_v13 }
0x1447   :  { %v3678_v21 = vpop.f32.mrf.mxu0 }
0x1448   :  { %8202 = vmatprep.mubr.msk.f32.mxu1 %vm392_vm1, %v3678_v21 }
0x1449   :  { %v8187_v26 = vpop.f32.mrf.mxu0  ;;  %8203 = vmatmul.mubr.msk.f32.vlgmr.msra.gmra.mxu1 %vm392_vm1, %v8176_v28 }
0x144a   :  { %8205 = vmatprep.subr.mxu0 %v8187_v26 }
0x144b   :  { %v3758_v29 = vpop.f32.mrf.mxu0  ;;  %8206 = vmatpush3.msra.mxu0 %v8187_v26 }
0x144c   :  { %8207 = vmatprep.subr.mxu0 %v3758_v29 }
0x144d   :  { %v8190_v25 = vpop.f32.mrf.mxu0  ;;  %8208 = vmatpush3.msra.mxu0 %v3758_v29  ;;  %v7208_v29 = vld [vmem:[%s10098_s2 + $0x1b0] sm:$0xff] }
0x144e   :  { %8212 = vmatprep.subr.mxu1 %v8190_v25  ;;  %8219 = vmatprep.subr.mxu0 %v7209_v19 }
0x144f   :  { %v3768_v31 = vpop.f32.mrf.mxu0  ;;  %8213 = vmatpush3.msra.mxu1 %v8190_v25 }
0x1450   :  { %8214 = vmatprep.subr.mxu1 %v3768_v31 }
0x1451   :  { %8215 = vmatpush3.msra.mxu1 %v3768_v31 }
0x1452   :  { %8233 = vmatprep.subr.mxu1 %v7217_v20 }
0x1505   :  { %v8197_v57 = vpop.f32.mrf.mxu0 }
0x1506   :  { %v3861_v63 = vadd.f32 %v8197_v57, %v8936_v33  ;;  %v7207_v57 = vld [vmem:[%s10098_s2 + $0x1a8] sm:$0xff] }
0x1507   :  { %v3855_v1 = vpop.f32.mrf.mxu0 }
0x1508   :  { %v3856_v39 = vadd.f32 %v3855_v1, %v8938_v35  ;;  %v3954_v5 = vsel %vm567_vm4, %v3861_v63, -inf  ;;  %v7206_v1 = vld [vmem:[%s10098_s2 + $0x1a0] sm:$0xff] }
0x1509   :  { %v8204_v41 = vpop.f32.mrf.mxu1  ;;  %3955 = vmax.xlane.f32.xlu1 %v3954_v5  ;;  %v7215_v5 = vld [vmem:[%s10098_s2 + $0x228] sm:$0xff] }
0x150a   :  { %v3948_v38 = vadd.f32 %v8204_v41, %v8936_v33  ;;  %v3951_v32 = vsel %vm567_vm4, %v3856_v39, -inf  ;;  %v7225_v41 = vld [vmem:[%s10098_s2 + $0x2b8] sm:$0xff] }
0x150b   :  { %v3942_v36 = vpop.f32.mrf.mxu1  ;;  %3952 = vmax.xlane.f32.xlu0 %v3951_v32  ;;  %v7224_v32 = vld [vmem:[%s10098_s2 + $0x2b0] sm:$0xff] }
0x150c   :  { %v3943_v42 = vadd.f32 %v3942_v36, %v8938_v35  ;;  %v3960_v2 = vsel %vm567_vm4, %v3948_v38, -inf  ;;  %v7223_v36 = vld [vmem:[%s10098_s2 + $0x2a8] sm:$0xff] }
0x150d   :  { %3961 = vmax.xlane.f32.xlu1 %v3960_v2 }
0x150e   :  { %v3957_v53 = vsel %vm567_vm4, %v3943_v42, -inf }
0x150f   :  { %3958 = vmax.xlane.f32.xlu0 %v3957_v53 }
0x1592   :  { %v3956_v4 = vpop.xlane.xlu1 %3955 }
0x1593   :  { %v3964_v58 = vsub.f32 %v3861_v63, %v3956_v4 }
0x1594   :  { %v3953_v6 = vpop.xlane.xlu0 %3952 }
0x1595   :  { %v3969_v45 = vmul.f32 1.442695, %v3964_v58  ;;  %v3963_v48 = vsub.f32 %v3856_v39, %v3953_v6  ;;  %v7216_v39 = vld [vmem:[%s10098_s2 + $0x230] sm:$0xff] }
0x1596   :  { %v3962_v40 = vpop.xlane.xlu1 %3961 }
0x1597   :  { %8619 = vpow2.f32 %v3969_v45  ;;  %v3967_v54 = vmul.f32 1.442695, %v3963_v48  ;;  %v3966_v56 = vsub.f32 %v3948_v38, %v3962_v40  ;;  %v7214_v38 = vld [vmem:[%s10098_s2 + $0x220] sm:$0xff] }
0x1598   :  { %v3959_v60 = vpop.xlane.xlu0 %3958 }
0x1599   :  { %8621 = vpow2.f32 %v3967_v54  ;;  %v3973_v55 = vmul.f32 1.442695, %v3966_v56  ;;  %v3965_v34 = vsub.f32 %v3943_v42, %v3959_v60  ;;  %v7222_v42 = vld [vmem:[%s10098_s2 + $0x2a0] sm:$0xff] }
0x159b   :  { %8623 = vpow2.f32 %v3973_v55  ;;  %v3971_v59 = vmul.f32 1.442695, %v3965_v34 }
0x159d   :  { %8625 = vpow2.f32 %v3971_v59 }
0x15a4   :  { %v8620_v7 = vpop.eup %8619 }
0x15a5   :  { %v3978_v0 = vsel %vm567_vm4, %v8620_v7, 0.0 }
0x15a6   :  { %v8622_v11 = vpop.eup %8621  ;;  %3979 = vadd.xlane.f32.xlu1 %v3978_v0 }
0x15a7   :  { %v3975_v10 = vsel %vm567_vm4, %v8622_v11, 0.0 }
0x15a8   :  { %v8624_v14 = vpop.eup %8623  ;;  %3976 = vadd.xlane.f32.xlu0 %v3975_v10 }
0x15a9   :  { %v3984_v9 = vsel %vm567_vm4, %v8624_v14, 0.0 }
0x15aa   :  { %v8626_v16 = vpop.eup %8625  ;;  %3985 = vadd.xlane.f32.xlu1 %v3984_v9 }
0x15ab   :  { %v3981_v18 = vsel %vm567_vm4, %v8626_v16, 0.0 }
0x15ac   :  { %3982 = vadd.xlane.f32.xlu0 %v3981_v18 }
0x162f   :  { %v3980_v22 = vpop.xlane.xlu1 %3979 }
0x1630   :  { %8627 = vrcp.f32 %v3980_v22 }
0x1631   :  { %v3977_v23 = vpop.xlane.xlu0 %3976 }
0x1632   :  { %8629 = vrcp.f32 %v3977_v23 }
0x1633   :  { %v3986_v24 = vpop.xlane.xlu1 %3985 }
0x1634   :  { %8631 = vrcp.f32 %v3986_v24 }
0x1635   :  { %v3983_v27 = vpop.xlane.xlu0 %3982 }
0x1636   :  { %8633 = vrcp.f32 %v3983_v27 }
0x163d   :  { %v8628_v13 = vpop.eup %8627 }
0x163e   :  { %v3990_v21 = vmul.f32 %v8628_v13, %v8620_v7 }
0x163f   :  { %v8630_v17 = vpop.eup %8629 }
0x1640   :  { %v3988_v28 = vmul.f32 %v8630_v17, %v8622_v11 }
0x1641   :  { %v8632_v26 = vpop.eup %8631 }
0x1642   :  { %8209 = vmatprep.mubr.msk.f32.mxu0 %vm567_vm4, %v3988_v28  ;;  %v3994_v63 = vmul.f32 %v8632_v26, %v8624_v14 }
0x1643   :  { %v8634_v25 = vpop.eup %8633  ;;  %8210 = vmatmul.mubr.msk.f32.vlgmr.msra.gmra.mxu0 %vm567_vm4, %v3990_v21 }
0x1644   :  { %8220 = vmatpush3.msra.mxu0 %v7209_v19  ;;  %8227 = vmatprep.mubr.msk.f32.mxu0 %vm41_vm0, %v9487_v62  ;;  %v3992_v31 = vmul.f32 %v8634_v25, %v8626_v16 }
0x1645   :  { %8221 = vmatprep.subr.mxu0 %v7208_v29 }
0x1646   :  { %8222 = vmatpush3.msra.mxu0 %v7208_v29  ;;  %8216 = vmatprep.mubr.msk.f32.mxu1 %vm567_vm4, %v3992_v31 }
0x1647   :  { %8223 = vmatprep.subr.mxu0 %v7207_v57  ;;  %8217 = vmatmul.mubr.msk.f32.vlgmr.msra.gmra.mxu1 %vm567_vm4, %v3994_v63 }
0x1648   :  { %8224 = vmatpush3.msra.mxu0 %v7207_v57  ;;  %8234 = vmatpush3.msra.mxu1 %v7217_v20 }
0x1649   :  { %8225 = vmatprep.subr.mxu0 %v7206_v1  ;;  %8235 = vmatprep.subr.mxu1 %v7216_v39 }
0x164a   :  { %8241 = vmatprep.mubr.msk.f32.mxu1 %vm41_vm0, %v9487_v62  ;;  %8226 = vmatpush3.msra.mxu0 %v7206_v1 }
0x164b   :  { %8236 = vmatpush3.msra.mxu1 %v7216_v39  ;;  %8228 = vmatmul.mubr.msk.f32.vlgmr.msra.gmra.mxu0 %vm41_vm0, %v9489_v8 }
0x164c   :  { %8237 = vmatprep.subr.mxu1 %v7215_v5  ;;  %8247 = vmatprep.subr.mxu0 %v7225_v41 }
0x164d   :  { %8230 = vmatprep.mubr.msk.f32.mxu0 %vm41_vm0, %v9498_v12  ;;  %8238 = vmatpush3.msra.mxu1 %v7215_v5 }
0x164e   :  { %8248 = vmatpush3.msra.mxu0 %v7225_v41  ;;  %8239 = vmatprep.subr.mxu1 %v7214_v38 }
0x164f   :  { %8249 = vmatprep.subr.mxu0 %v7224_v32  ;;  %8240 = vmatpush3.msra.mxu1 %v7214_v38 }
0x1650   :  { %8250 = vmatpush3.msra.mxu0 %v7224_v32  ;;  %8242 = vmatmul.mubr.msk.f32.vlgmr.msra.gmra.mxu1 %vm41_vm0, %v9489_v8 }
0x1651   :  { %8231 = vmatmul.mubr.msk.f32.gmra.mxu0 %vm41_vm0, %v9503_v15  ;;  %8251 = vmatprep.subr.mxu0 %v7223_v36 }
0x1652   :  { %8244 = vmatprep.mubr.msk.f32.mxu1 %vm41_vm0, %v9498_v12  ;;  %8252 = vmatpush3.msra.mxu0 %v7223_v36 }
0x1653   :  { %8255 = vmatprep.mubr.msk.f32.mxu0 %vm41_vm0, %v9487_v62  ;;  %8253 = vmatprep.subr.mxu0 %v7222_v42 }
0x1654   :  { %8254 = vmatpush3.msra.mxu0 %v7222_v42  ;;  %8245 = vmatmul.mubr.msk.f32.gmra.mxu1 %vm41_vm0, %v9503_v15 }
0x1655   :  { %8256 = vmatmul.mubr.msk.f32.vlgmr.msra.gmra.mxu0 %vm41_vm0, %v9489_v8 }
0x1656   :  { %8258 = vmatprep.mubr.msk.f32.mxu0 %vm41_vm0, %v9498_v12 }
0x1659   :  { %8259 = vmatmul.mubr.msk.f32.gmra.mxu0 %vm41_vm0, %v9503_v15 }
0x1703   :  { %v9628_v2 = vpop.f32.mrf.mxu0 }
0x1705   :  { %v9630_v53 = vpop.f32.mrf.mxu0 }
0x1707   :  { %v9632_v4 = vpop.f32.mrf.mxu1 }
0x1709   :  { %v9636_v45 = vpop.f32.mrf.mxu1 }
0x170b   :  { %v8229_v58 = vpop.f32.mrf.mxu0 }
0x170c   :  { %8261 = vmatprep.subr.msk.mxu1 %vm392_vm1, %v8229_v58 }
0x170d   :  { %v4230_v6 = vpop.f32.mrf.mxu0  ;;  %8262 = vmatpush3.xpose.msk.msra.mxu1 %vm392_vm1, %v8229_v58 }
0x170e   :  { %8263 = vmatprep.subr.msk.mxu1 %vm392_vm1, %v4230_v6 }
0x1710   :  { %v8243_v48 = vpop.f32.mrf.mxu1 }
0x1711   :  { %v8232_v40 = vpop.f32.mrf.mxu0  ;;  %8264 = vmatpush3.xpose.msk.msra.mxu1 %vm392_vm1, %v4230_v6 }
0x1712   :  { %8268 = vmatprep.subr.msk.mxu0 %vm392_vm1, %v8232_v40  ;;  %v4320_v54 = vpop.f32.mrf.mxu1 }
0x1713   :  { %v4240_v56 = vpop.f32.mrf.mxu0  ;;  %8269 = vmatpush3.xpose.msk.msra.mxu0 %vm392_vm1, %v8232_v40  ;;  %8265 = vmatprep.mubr.msk.f32.mxu1 %vm392_vm1, %v4320_v54 }
0x1714   :  { %8270 = vmatprep.subr.msk.mxu0 %vm392_vm1, %v4240_v56  ;;  %v8246_v60 = vpop.f32.mrf.mxu1  ;;  %8266 = vmatmul.mubr.msk.f32.vlgmr.msra.gmra.mxu1 %vm392_vm1, %v8243_v48 }
0x1715   :  { %v8257_v55 = vpop.f32.mrf.mxu0 }
0x1716   :  { %8275 = vmatprep.subr.mxu1 %v8257_v55  ;;  %v4330_v34 = vpop.f32.mrf.mxu1 }
0x1717   :  { %v4410_v59 = vpop.f32.mrf.mxu0  ;;  %8271 = vmatpush3.xpose.msk.msra.mxu0 %vm392_vm1, %v4240_v56  ;;  %8276 = vmatpush3.msra.mxu1 %v8257_v55 }
0x1718   :  { %8272 = vmatprep.mubr.msk.f32.mxu0 %vm392_vm1, %v4330_v34  ;;  %8277 = vmatprep.subr.mxu1 %v4410_v59 }
0x1719   :  { %v9647_v7 = vpop.f32.mrf.mxu0  ;;  %8278 = vmatpush3.msra.mxu1 %v4410_v59 }
0x171a   :  { %8273 = vmatmul.mubr.msk.f32.vlgmr.msra.gmra.mxu0 %vm392_vm1, %v8246_v60  ;;  %8282 = vmatprep.subr.mxu1 %v9647_v7 }
0x171b   :  { %v4420_v16 = vpop.f32.mrf.mxu0 }
0x17d4   :  { %v8267_v0 = vpop.f32.mrf.mxu1 }
0x17d5   :  { %v4513_v11 = vadd.f32 %v8267_v0, %v8936_v33 }
0x17d6   :  { %v4507_v10 = vpop.f32.mrf.mxu1 }
0x17d7   :  { %v4508_v14 = vadd.f32 %v4507_v10, %v8938_v35  ;;  %v4606_v9 = vsel %vm567_vm4, %v4513_v11, -inf }
0x17d8   :  { %4607 = vmax.xlane.f32.xlu1 %v4606_v9 }
0x17d9   :  { %v4603_v18 = vsel %vm567_vm4, %v4508_v14, -inf }
0x17da   :  { %v8274_v19 = vpop.f32.mrf.mxu0  ;;  %4604 = vmax.xlane.f32.xlu0 %v4603_v18  ;;  %v7262_v18 = vld [vmem:[%s10098_s2 + $0x258] sm:$0xff] }
0x17db   :  { %v4600_v20 = vadd.f32 %v8274_v19, %v8936_v33 }
0x17dc   :  { %v4594_v22 = vpop.f32.mrf.mxu0 }
0x17dd   :  { %v4595_v23 = vadd.f32 %v4594_v22, %v8938_v35  ;;  %v4612_v24 = vsel %vm567_vm4, %v4600_v20, -inf  ;;  %v7252_v22 = vld [vmem:[%s10098_s2 + $0x1c8] sm:$0xff] }
0x17de   :  { %4613 = vmax.xlane.f32.xlu1 %v4612_v24  ;;  %v7251_v24 = vld [vmem:[%s10098_s2 + $0x1c0] sm:$0xff] }
0x17df   :  { %v4609_v27 = vsel %vm567_vm4, %v4595_v23, -inf }
0x17e0   :  { %4610 = vmax.xlane.f32.xlu0 %v4609_v27 }
0x1861   :  { %v4608_v13 = vpop.xlane.xlu1 %4607 }
0x1862   :  { %v4616_v17 = vsub.f32 %v4513_v11, %v4608_v13  ;;  %v7205_v11 = vld [vmem:[%s10099_s3 + $0x20] sm:$0xff]  ;;  %v7270_v13 = vld [vmem:[%s10098_s2 + $0x2d8] sm:$0xff] }
0x1863   :  { %v4605_v28 = vpop.xlane.xlu0 %4604 }
0x1864   :  { %v4621_v21 = vmul.f32 1.442695, %v4616_v17  ;;  %v4615_v26 = vsub.f32 %v4508_v14, %v4605_v28 }
0x1866   :  { %8635 = vpow2.f32 %v4621_v21  ;;  %v4619_v29 = vmul.f32 1.442695, %v4615_v26  ;;  %v7269_v21 = vld [vmem:[%s10098_s2 + $0x2d0] sm:$0xff] }
0x1867   :  { %v4614_v25 = vpop.xlane.xlu1 %4613 }
0x1868   :  { %8637 = vpow2.f32 %v4619_v29  ;;  %v4618_v31 = vsub.f32 %v4600_v20, %v4614_v25  ;;  %v7253_v20 = vld [vmem:[%s10098_s2 + $0x1d0] sm:$0xff]  ;;  %v7268_v29 = vld [vmem:[%s10098_s2 + $0x2c8] sm:$0xff] }
0x1869   :  { %v4611_v57 = vpop.xlane.xlu0 %4610 }
0x186a   :  { %v4625_v63 = vmul.f32 1.442695, %v4618_v31  ;;  %v4617_v1 = vsub.f32 %v4595_v23, %v4611_v57  ;;  %v7267_v31 = vld [vmem:[%s10098_s2 + $0x2c0] sm:$0xff] }
0x186c   :  { %8639 = vpow2.f32 %v4625_v63  ;;  %v4623_v39 = vmul.f32 1.442695, %v4617_v1 }
0x186e   :  { %8641 = vpow2.f32 %v4623_v39 }
0x1873   :  { %v8636_v5 = vpop.eup %8635 }
0x1874   :  { %v4630_v41 = vsel %vm567_vm4, %v8636_v5, 0.0 }
0x1875   :  { %v8638_v38 = vpop.eup %8637  ;;  %4631 = vadd.xlane.f32.xlu1 %v4630_v41 }
0x1876   :  { %v4627_v32 = vsel %vm567_vm4, %v8638_v38, 0.0 }
0x1877   :  { %4628 = vadd.xlane.f32.xlu0 %v4627_v32 }
0x1879   :  { %v8640_v36 = vpop.eup %8639 }
0x187a   :  { %v4636_v42 = vsel %vm567_vm4, %v8640_v36, 0.0 }
0x187b   :  { %v8642_v58 = vpop.eup %8641  ;;  %4637 = vadd.xlane.f32.xlu1 %v4636_v42 }
0x187c   :  { %v4633_v6 = vsel %vm567_vm4, %v8642_v58, 0.0 }
0x187d   :  { %4634 = vadd.xlane.f32.xlu0 %v4633_v6 }
0x18fe   :  { %v4632_v48 = vpop.xlane.xlu1 %4631 }
0x18ff   :  { %8643 = vrcp.f32 %v4632_v48 }
0x1900   :  { %v4629_v40 = vpop.xlane.xlu0 %4628 }
0x1901   :  { %8645 = vrcp.f32 %v4629_v40 }
0x1904   :  { %v4638_v54 = vpop.xlane.xlu1 %4637 }
0x1905   :  { %8647 = vrcp.f32 %v4638_v54 }
0x1906   :  { %v4635_v56 = vpop.xlane.xlu0 %4634 }
0x1907   :  { %8649 = vrcp.f32 %v4635_v56 }
0x190c   :  { %v8644_v60 = vpop.eup %8643 }
0x190d   :  { %v4642_v59 = vmul.f32 %v8644_v60, %v8636_v5 }
0x190e   :  { %v8646_v55 = vpop.eup %8645 }
0x190f   :  { %v4640_v34 = vmul.f32 %v8646_v55, %v8638_v38 }
0x1911   :  { %8279 = vmatprep.mubr.msk.f32.mxu1 %vm567_vm4, %v4640_v34 }
0x1912   :  { %8280 = vmatmul.mubr.msk.f32.vlgmr.msra.gmra.mxu1 %vm567_vm4, %v4642_v59  ;;  %v8648_v0 = vpop.eup %8647 }
0x1913   :  { %8283 = vmatpush3.msra.mxu1 %v9647_v7  ;;  %v4646_v9 = vmul.f32 %v8648_v0, %v8640_v36  ;;  %v7261_v7 = vld [vmem:[%s10098_s2 + $0x250] sm:$0xff] }
0x1914   :  { %v8650_v10 = vpop.eup %8649  ;;  %8284 = vmatprep.subr.mxu1 %v4420_v16 }
0x1915   :  { %8285 = vmatpush3.msra.mxu1 %v4420_v16  ;;  %v4644_v14 = vmul.f32 %v8650_v10, %v8642_v58  ;;  %v7260_v16 = vld [vmem:[%s10098_s2 + $0x248] sm:$0xff] }
0x1916   :  { %8297 = vmatprep.subr.mxu1 %v7205_v11 }
0x1917   :  { %8286 = vmatprep.mubr.msk.f32.mxu1 %vm567_vm4, %v4644_v14 }
0x1918   :  { %8287 = vmatmul.mubr.msk.f32.vlgmr.msra.gmra.mxu1 %vm567_vm4, %v4646_v9 }
0x1919   :  { %8299 = vmatprep.mubr.msk.f32.mxu1 %vm392_vm1, %v9630_v53  ;;  %8298 = vmatpush3.msra.mxu1 %v7205_v11  ;;  %v7259_v53 = vld [vmem:[%s10098_s2 + $0x240] sm:$0xff] }
0x191a   :  { %8319 = vmatprep.subr.mxu1 %v7262_v18 }
0x191c   :  { %8300 = vmatmul.mubr.msk.f32.vlgmr.msra.gmra.mxu1 %vm392_vm1, %v9628_v2  ;;  %v7242_v2 = vld [vmem:[%s10099_s3 + $0x28] sm:$0xff] }
0x191d   :  { %8302 = vmatprep.mubr.msk.f32.mxu1 %vm392_vm1, %v9636_v45  ;;  %8320 = vmatpush3.msra.mxu1 %v7262_v18 }
0x191e   :  { %8321 = vmatprep.subr.mxu1 %v7261_v7  ;;  %8289 = vmatprep.subr.mxu0 %v7242_v2 }
0x191f   :  { %8322 = vmatpush3.msra.mxu1 %v7261_v7  ;;  %8290 = vmatpush3.msra.mxu0 %v7242_v2 }
0x1920   :  { %8303 = vmatmul.mubr.msk.f32.gmra.mxu1 %vm392_vm1, %v9632_v4  ;;  %8323 = vmatprep.subr.mxu1 %v7260_v16  ;;  %v7254_v4 = vld [vmem:[%s10098_s2 + $0x1d8] sm:$0xff] }
0x1921   :  { %8324 = vmatpush3.msra.mxu1 %v7260_v16  ;;  %8327 = vmatprep.mubr.msk.f32.mxu1 %vm41_vm0, %v9487_v62 }
0x1922   :  { %8325 = vmatprep.subr.mxu1 %v7259_v53  ;;  %8305 = vmatprep.subr.mxu0 %v7254_v4 }
0x1923   :  { %8326 = vmatpush3.msra.mxu1 %v7259_v53 }
0x1924   :  { %8328 = vmatmul.mubr.msk.f32.vlgmr.msra.gmra.mxu1 %vm41_vm0, %v9489_v8 }
0x1925   :  { %8330 = vmatprep.mubr.msk.f32.mxu1 %vm41_vm0, %v9498_v12 }
0x1928   :  { %8331 = vmatmul.mubr.msk.f32.gmra.mxu1 %vm41_vm0, %v9503_v15 }
0x19d2   :  { %v8281_v45 = vpop.f32.mrf.mxu1 }
0x19d4   :  { %v4719_v19 = vpop.f32.mrf.mxu1 }
0x19d5   :  { %8291 = vmatprep.mubr.msk.f32.mxu0 %vm392_vm1, %v4719_v19 }
0x19d6   :  { %8292 = vmatmul.mubr.msk.f32.vlgmr.msra.gmra.mxu0 %vm392_vm1, %v8281_v45 }
0x19d7   :  { %8306 = vmatpush3.msra.mxu0 %v7254_v4 }
0x19d8   :  { %v8288_v23 = vpop.f32.mrf.mxu1  ;;  %8307 = vmatprep.subr.mxu0 %v7253_v20 }
0x19d9   :  { %8308 = vmatpush3.msra.mxu0 %v7253_v20 }
0x19da   :  { %v4800_v27 = vpop.f32.mrf.mxu1  ;;  %8309 = vmatprep.subr.mxu0 %v7252_v22 }
0x19db   :  { %8294 = vmatprep.mubr.msk.f32.mxu0 %vm392_vm1, %v4800_v27  ;;  %8310 = vmatpush3.msra.mxu0 %v7252_v22 }
0x19dc   :  { %8295 = vmatmul.mubr.msk.f32.gmra.mxu0 %vm392_vm1, %v8288_v23  ;;  %v9721_v17 = vpop.f32.mrf.mxu1  ;;  %8311 = vmatprep.subr.mxu0 %v7251_v24 }
0x19dd   :  { %8313 = vmatprep.mubr.msk.f32.mxu0 %vm41_vm0, %v9487_v62  ;;  %8312 = vmatpush3.msra.mxu0 %v7251_v24 }
0x19de   :  { %v9725_v28 = vpop.f32.mrf.mxu1  ;;  %8333 = vmatprep.subr.mxu0 %v7270_v13 }
0x19e0   :  { %v9730_v26 = vpop.f32.mrf.mxu1  ;;  %8314 = vmatmul.mubr.msk.f32.vlgmr.msra.gmra.mxu0 %vm41_vm0, %v9489_v8 }
0x19e1   :  { %8316 = vmatprep.mubr.msk.f32.mxu0 %vm41_vm0, %v9498_v12  ;;  %8334 = vmatpush3.msra.mxu0 %v7270_v13 }
0x19e2   :  { %v9739_v25 = vpop.f32.mrf.mxu1  ;;  %8335 = vmatprep.subr.mxu0 %v7269_v21 }
0x19e3   :  { %8336 = vmatpush3.msra.mxu0 %v7269_v21 }
0x19e4   :  { %8317 = vmatmul.mubr.msk.f32.gmra.mxu0 %vm41_vm0, %v9503_v15  ;;  %v8329_v57 = vpop.f32.mrf.mxu1  ;;  %8337 = vmatprep.subr.mxu0 %v7268_v29 }
0x19e5   :  { %8338 = vmatpush3.msra.mxu0 %v7268_v29  ;;  %8341 = vmatprep.mubr.msk.f32.mxu0 %vm41_vm0, %v9487_v62 }
0x19e6   :  { %v5166_v63 = vpop.f32.mrf.mxu1  ;;  %8339 = vmatprep.subr.mxu0 %v7267_v31 }
0x19e7   :  { %8340 = vmatpush3.msra.mxu0 %v7267_v31  ;;  %8351 = vmatprep.mubr.msk.f32.mxu1 %vm392_vm1, %v5166_v63 }
0x19e8   :  { %v8332_v1 = vpop.f32.mrf.mxu1  ;;  %8342 = vmatmul.mubr.msk.f32.vlgmr.msra.gmra.mxu0 %vm41_vm0, %v9489_v8 }
0x19e9   :  { %8344 = vmatprep.mubr.msk.f32.mxu0 %vm41_vm0, %v9498_v12 }
0x19ea   :  { %v5176_v39 = vpop.f32.mrf.mxu1 }
0x19ec   :  { %8345 = vmatmul.mubr.msk.f32.gmra.mxu0 %vm41_vm0, %v9503_v15 }
0x19ed   :  { %8358 = vmatprep.mubr.msk.f32.mxu0 %vm392_vm1, %v5176_v39 }
0x1a96   :  { %v9756_v5 = vpop.f32.mrf.mxu0 }
0x1a98   :  { %v9758_v41 = vpop.f32.mrf.mxu0 }
0x1a9c   :  { %v9760_v38 = vpop.f32.mrf.mxu0 }
0x1a9e   :  { %v9762_v32 = vpop.f32.mrf.mxu0 }
0x1aa0   :  { %v8315_v36 = vpop.f32.mrf.mxu0 }
0x1aa1   :  { %8347 = vmatprep.subr.msk.mxu1 %vm392_vm1, %v8315_v36 }
0x1aa2   :  { %v5076_v42 = vpop.f32.mrf.mxu0  ;;  %8348 = vmatpush3.xpose.msk.msra.mxu1 %vm392_vm1, %v8315_v36 }
0x1aa3   :  { %8349 = vmatprep.subr.msk.mxu1 %vm392_vm1, %v5076_v42 }
0x1aa4   :  { %v8318_v58 = vpop.f32.mrf.mxu0 }
0x1aa5   :  { %8354 = vmatprep.subr.msk.mxu0 %vm392_vm1, %v8318_v58 }
0x1aa6   :  { %v5086_v6 = vpop.f32.mrf.mxu0  ;;  %8350 = vmatpush3.xpose.msk.msra.mxu1 %vm392_vm1, %v5076_v42  ;;  %8355 = vmatpush3.xpose.msk.msra.mxu0 %vm392_vm1, %v8318_v58 }
0x1aa7   :  { %8356 = vmatprep.subr.msk.mxu0 %vm392_vm1, %v5086_v6 }
0x1aa8   :  { %v8343_v48 = vpop.f32.mrf.mxu0 }
0x1aa9   :  { %8352 = vmatmul.mubr.msk.f32.vlgmr.msra.gmra.mxu1 %vm392_vm1, %v8329_v57  ;;  %8361 = vmatprep.subr.mxu1 %v8343_v48 }
0x1aaa   :  { %v5256_v40 = vpop.f32.mrf.mxu0  ;;  %8357 = vmatpush3.xpose.msk.msra.mxu0 %vm392_vm1, %v5086_v6  ;;  %8362 = vmatpush3.msra.mxu1 %v8343_v48 }
0x1aab   :  { %8363 = vmatprep.subr.mxu1 %v5256_v40 }
0x1aac   :  { %v9773_v54 = vpop.f32.mrf.mxu0  ;;  %8364 = vmatpush3.msra.mxu1 %v5256_v40 }
0x1aad   :  { %8359 = vmatmul.mubr.msk.f32.vlgmr.msra.gmra.mxu0 %vm392_vm1, %v8332_v1  ;;  %8368 = vmatprep.subr.mxu1 %v9773_v54 }
0x1aae   :  { %v9778_v55 = vpop.f32.mrf.mxu0 }
0x1b69   :  { %v8353_v56 = vpop.f32.mrf.mxu1 }
0x1b6a   :  { %v5359_v60 = vadd.f32 %v8353_v56, %v8936_v33 }
0x1b6b   :  { %v5353_v34 = vpop.f32.mrf.mxu1 }
0x1b6c   :  { %v5354_v59 = vadd.f32 %v5353_v34, %v8938_v35  ;;  %v5452_v0 = vsel %vm567_vm4, %v5359_v60, -inf }
0x1b6d   :  { %5453 = vmax.xlane.f32.xlu1 %v5452_v0  ;;  %v8360_v11 = vpop.f32.mrf.mxu0 }
0x1b6e   :  { %v5446_v10 = vadd.f32 %v8360_v11, %v8936_v33  ;;  %v5449_v14 = vsel %vm567_vm4, %v5354_v59, -inf }
0x1b6f   :  { %5450 = vmax.xlane.f32.xlu0 %v5449_v14  ;;  %v5440_v9 = vpop.f32.mrf.mxu0  ;;  %v7295_v14 = vld [vmem:[%s10098_s2 + $0x1f8] sm:$0xff] }
0x1b70   :  { %v5441_v18 = vadd.f32 %v5440_v9, %v8938_v35  ;;  %v5458_v7 = vsel %vm567_vm4, %v5446_v10, -inf }
0x1b71   :  { %5459 = vmax.xlane.f32.xlu1 %v5458_v7  ;;  %v7311_v7 = vld [vmem:[%s10098_s2 + $0x2f8] sm:$0xff] }
0x1b72   :  { %v5455_v16 = vsel %vm567_vm4, %v5441_v18, -inf }
0x1b73   :  { %5456 = vmax.xlane.f32.xlu0 %v5455_v16  ;;  %v7310_v16 = vld [vmem:[%s10098_s2 + $0x2f0] sm:$0xff] }
0x1bf6   :  { %v5454_v53 = vpop.xlane.xlu1 %5453 }
0x1bf7   :  { %v5462_v2 = vsub.f32 %v5359_v60, %v5454_v53  ;;  %v7309_v53 = vld [vmem:[%s10098_s2 + $0x2e8] sm:$0xff] }
0x1bf8   :  { %v5451_v4 = vpop.xlane.xlu0 %5450 }
0x1bf9   :  { %v5467_v45 = vmul.f32 1.442695, %v5462_v2  ;;  %v5461_v19 = vsub.f32 %v5354_v59, %v5451_v4  ;;  %v7308_v2 = vld [vmem:[%s10098_s2 + $0x2e0] sm:$0xff]  ;;  %v7287_v4 = vld [vmem:[%s10099_s3 + $0x30] sm:$0xff] }
0x1bfa   :  { %v5460_v20 = vpop.xlane.xlu1 %5459  ;;  %8375 = vmatprep.subr.mxu0 %v7287_v4 }
0x1bfb   :  { %8651 = vpow2.f32 %v5467_v45  ;;  %v5465_v22 = vmul.f32 1.442695, %v5461_v19  ;;  %v5464_v23 = vsub.f32 %v5446_v10, %v5460_v20  ;;  %8376 = vmatpush3.msra.mxu0 %v7287_v4  ;;  %v7303_v45 = vld [vmem:[%s10098_s2 + $0x278] sm:$0xff] }
0x1bfc   :  { %v5457_v24 = vpop.xlane.xlu0 %5456  ;;  %8397 = vmatprep.subr.mxu0 %v7303_v45 }
0x1bfd   :  { %8653 = vpow2.f32 %v5465_v22  ;;  %v5471_v27 = vmul.f32 1.442695, %v5464_v23  ;;  %v5463_v13 = vsub.f32 %v5441_v18, %v5457_v24  ;;  %v7294_v18 = vld [vmem:[%s10098_s2 + $0x1f0] sm:$0xff]  ;;  %v7301_v24 = vld [vmem:[%s10098_s2 + $0x268] sm:$0xff] }
0x1bfe   :  { %v7302_v22 = vld [vmem:[%s10098_s2 + $0x270] sm:$0xff] }
0x1bff   :  { %8655 = vpow2.f32 %v5471_v27  ;;  %v5469_v21 = vmul.f32 1.442695, %v5463_v13  ;;  %v7300_v13 = vld [vmem:[%s10098_s2 + $0x260] sm:$0xff] }
0x1c01   :  { %8657 = vpow2.f32 %v5469_v21 }
0x1c08   :  { %v8652_v29 = vpop.eup %8651 }
0x1c09   :  { %v5476_v31 = vsel %vm567_vm4, %v8652_v29, 0.0 }
0x1c0a   :  { %v8654_v57 = vpop.eup %8653  ;;  %5477 = vadd.xlane.f32.xlu1 %v5476_v31 }
0x1c0b   :  { %v5473_v63 = vsel %vm567_vm4, %v8654_v57, 0.0 }
0x1c0c   :  { %v8656_v1 = vpop.eup %8655  ;;  %5474 = vadd.xlane.f32.xlu0 %v5473_v63 }
0x1c0d   :  { %v5482_v39 = vsel %vm567_vm4, %v8656_v1, 0.0 }
0x1c0e   :  { %v8658_v36 = vpop.eup %8657  ;;  %5483 = vadd.xlane.f32.xlu1 %v5482_v39  ;;  %v5002_v39 = vadd.f32 %v9730_v26, %v9760_v38 }
0x1c0f   :  { %v5479_v42 = vsel %vm567_vm4, %v8658_v36, 0.0 }
0x1c10   :  { %5480 = vadd.xlane.f32.xlu0 %v5479_v42 }
0x1c93   :  { %v5478_v58 = vpop.xlane.xlu1 %5477 }
0x1c94   :  { %8659 = vrcp.f32 %v5478_v58  ;;  %v4997_v58 = vadd.f32 %v9739_v25, %v9762_v32 }
0x1c95   :  { %v5475_v6 = vpop.xlane.xlu0 %5474 }
0x1c96   :  { %8661 = vrcp.f32 %v5475_v6 }
0x1c97   :  { %v5484_v48 = vpop.xlane.xlu1 %5483 }
0x1c98   :  { %8663 = vrcp.f32 %v5484_v48 }
0x1c99   :  { %v5481_v40 = vpop.xlane.xlu0 %5480 }
0x1c9a   :  { %8665 = vrcp.f32 %v5481_v40 }
0x1ca1   :  { %v8660_v56 = vpop.eup %8659 }
0x1ca2   :  { %v5488_v59 = vmul.f32 %v8660_v56, %v8652_v29 }
0x1ca3   :  { %v8662_v60 = vpop.eup %8661 }
0x1ca4   :  { %v5486_v34 = vmul.f32 %v8662_v60, %v8654_v57 }
0x1ca5   :  { %v8664_v0 = vpop.eup %8663 }
0x1ca6   :  { %8365 = vmatprep.mubr.msk.f32.mxu1 %vm567_vm4, %v5486_v34  ;;  %v5492_v9 = vmul.f32 %v8664_v0, %v8656_v1 }
0x1ca7   :  { %v8666_v11 = vpop.eup %8665  ;;  %8366 = vmatmul.mubr.msk.f32.vlgmr.msra.gmra.mxu1 %vm567_vm4, %v5488_v59 }
0x1ca8   :  { %8369 = vmatpush3.msra.mxu1 %v9773_v54  ;;  %v5490_v10 = vmul.f32 %v8666_v11, %v8658_v36  ;;  %v7293_v54 = vld [vmem:[%s10098_s2 + $0x1e8] sm:$0xff] }
0x1ca9   :  { %8370 = vmatprep.subr.mxu1 %v9778_v55 }
0x1caa   :  { %8371 = vmatpush3.msra.mxu1 %v9778_v55  ;;  %8372 = vmatprep.mubr.msk.f32.mxu1 %vm567_vm4, %v5490_v10  ;;  %v7292_v55 = vld [vmem:[%s10098_s2 + $0x1e0] sm:$0xff] }
0x1cab   :  { %8383 = vmatprep.subr.mxu1 %v7295_v14  ;;  %8373 = vmatmul.mubr.msk.f32.vlgmr.msra.gmra.mxu1 %vm567_vm4, %v5492_v9 }
0x1cac   :  { %8384 = vmatpush3.msra.mxu1 %v7295_v14  ;;  %8391 = vmatprep.mubr.msk.f32.mxu1 %vm41_vm0, %v9487_v62 }
0x1cad   :  { %8385 = vmatprep.subr.mxu1 %v7294_v18 }
0x1cae   :  { %8386 = vmatpush3.msra.mxu1 %v7294_v18 }
0x1caf   :  { %8387 = vmatprep.subr.mxu1 %v7293_v54 }
0x1cb0   :  { %8388 = vmatpush3.msra.mxu1 %v7293_v54 }
0x1cb1   :  { %8389 = vmatprep.subr.mxu1 %v7292_v55 }
0x1cb2   :  { %8390 = vmatpush3.msra.mxu1 %v7292_v55 }
0x1cb3   :  { %8392 = vmatmul.mubr.msk.f32.vlgmr.msra.gmra.mxu1 %vm41_vm0, %v9489_v8  ;;  %8411 = vmatprep.subr.mxu1 %v7311_v7 }
0x1cb4   :  { %8394 = vmatprep.mubr.msk.f32.mxu1 %vm41_vm0, %v9498_v12  ;;  %8412 = vmatpush3.msra.mxu1 %v7311_v7 }
0x1cb5   :  { %8413 = vmatprep.subr.mxu1 %v7310_v16 }
0x1cb6   :  { %8414 = vmatpush3.msra.mxu1 %v7310_v16 }
0x1cb7   :  { %8395 = vmatmul.mubr.msk.f32.gmra.mxu1 %vm41_vm0, %v9503_v15  ;;  %8415 = vmatprep.subr.mxu1 %v7309_v53 }
0x1cb8   :  { %8416 = vmatpush3.msra.mxu1 %v7309_v53  ;;  %8419 = vmatprep.mubr.msk.f32.mxu1 %vm41_vm0, %v9487_v62 }
0x1cb9   :  { %8417 = vmatprep.subr.mxu1 %v7308_v2 }
0x1cba   :  { %8418 = vmatpush3.msra.mxu1 %v7308_v2 }
0x1cbb   :  { %8420 = vmatmul.mubr.msk.f32.vlgmr.msra.gmra.mxu1 %vm41_vm0, %v9489_v8 }
0x1cbc   :  { %8422 = vmatprep.mubr.msk.f32.mxu1 %vm41_vm0, %v9498_v12 }
0x1cbf   :  { %8423 = vmatmul.mubr.msk.f32.gmra.mxu1 %vm41_vm0, %v9503_v15 }
0x1d67   :  { %v8367_v19 = vpop.f32.mrf.mxu1 }
0x1d69   :  { %v5565_v20 = vpop.f32.mrf.mxu1 }
0x1d6a   :  { %8377 = vmatprep.mubr.msk.f32.mxu0 %vm392_vm1, %v5565_v20 }
0x1d6b   :  { %v8374_v23 = vpop.f32.mrf.mxu1  ;;  %8378 = vmatmul.mubr.msk.f32.vlgmr.msra.gmra.mxu0 %vm392_vm1, %v8367_v19 }
0x1d6c   :  { %8398 = vmatpush3.msra.mxu0 %v7303_v45 }
0x1d6d   :  { %v5646_v27 = vpop.f32.mrf.mxu1  ;;  %8399 = vmatprep.subr.mxu0 %v7302_v22 }
0x1d6e   :  { %8380 = vmatprep.mubr.msk.f32.mxu0 %vm392_vm1, %v5646_v27  ;;  %8400 = vmatpush3.msra.mxu0 %v7302_v22 }
0x1d6f   :  { %8381 = vmatmul.mubr.msk.f32.gmra.mxu0 %vm392_vm1, %v8374_v23  ;;  %8401 = vmatprep.subr.mxu0 %v7301_v24 }
0x1d70   :  { %8402 = vmatpush3.msra.mxu0 %v7301_v24  ;;  %8405 = vmatprep.mubr.msk.f32.mxu0 %vm41_vm0, %v9487_v62 }
0x1d71   :  { %8403 = vmatprep.subr.mxu0 %v7300_v13 }
0x1d72   :  { %8404 = vmatpush3.msra.mxu0 %v7300_v13 }
0x1d73   :  { %v8393_v21 = vpop.f32.mrf.mxu1  ;;  %8406 = vmatmul.mubr.msk.f32.vlgmr.msra.gmra.mxu0 %vm41_vm0, %v9489_v8 }
0x1d74   :  { %8425 = vmatprep.subr.msk.mxu0 %vm392_vm1, %v8393_v21  ;;  %8408 = vmatprep.mubr.msk.f32.mxu0 %vm41_vm0, %v9498_v12  ;;  %v4992_v12 = vadd.f32 %v9721_v17, %v9756_v5 }
0x1d75   :  { %v5829_v29 = vpop.f32.mrf.mxu1  ;;  %8426 = vmatpush3.xpose.msk.msra.mxu0 %vm392_vm1, %v8393_v21 }
0x1d76   :  { %8427 = vmatprep.subr.msk.mxu0 %vm392_vm1, %v5829_v29 }
0x1d77   :  { %v8396_v31 = vpop.f32.mrf.mxu1  ;;  %8409 = vmatmul.mubr.msk.f32.gmra.mxu0 %vm41_vm0, %v9503_v15  ;;  %v4987_v15 = vadd.f32 %v9725_v28, %v9758_v41 }
0x1d78   :  { %8432 = vmatprep.subr.msk.mxu1 %vm392_vm1, %v8396_v31 }
0x1d79   :  { %v5839_v62 = vpop.f32.mrf.mxu1  ;;  %8428 = vmatpush3.xpose.msk.msra.mxu0 %vm392_vm1, %v5829_v29  ;;  %8433 = vmatpush3.xpose.msk.msra.mxu1 %vm392_vm1, %v8396_v31 }
0x1d7a   :  { %8434 = vmatprep.subr.msk.mxu1 %vm392_vm1, %v5839_v62 }
0x1d7b   :  { %v8421_v8 = vpop.f32.mrf.mxu1 }
0x1d7c   :  { %8439 = vmatprep.subr.mxu0 %v8421_v8 }
0x1d7d   :  { %8435 = vmatpush3.xpose.msk.msra.mxu1 %vm392_vm1, %v5839_v62  ;;  %v6009_v28 = vpop.f32.mrf.mxu1 }
0x1d7f   :  { %v9891_v38 = vpop.f32.mrf.mxu1 }
0x1d81   :  { %v9897_v56 = vpop.f32.mrf.mxu1 }
0x1e2b   :  { %v8379_v57 = vpop.f32.mrf.mxu0 }
0x1e2c   :  { %v9877_v63 = vadd.f32 %v8379_v57, %v4992_v12 }
0x1e2d   :  { %v5735_v1 = vpop.f32.mrf.mxu0 }
0x1e2e   :  { %v9881_v36 = vadd.f32 %v5735_v1, %v4987_v15 }
0x1e2f   :  { %v8382_v42 = vpop.f32.mrf.mxu0 }
0x1e30   :  { %v9885_v6 = vadd.f32 %v8382_v42, %v5002_v39 }
0x1e31   :  { %v5745_v48 = vpop.f32.mrf.mxu0 }
0x1e32   :  { %v9887_v17 = vadd.f32 %v5745_v48, %v4997_v58 }
0x1e33   :  { %v8407_v5 = vpop.f32.mrf.mxu0 }
0x1e35   :  { %v5919_v40 = vpop.f32.mrf.mxu0 }
0x1e36   :  { %8429 = vmatprep.mubr.msk.f32.mxu0 %vm392_vm1, %v5919_v40 }
0x1e37   :  { %v8410_v41 = vpop.f32.mrf.mxu0  ;;  %8430 = vmatmul.mubr.msk.f32.vlgmr.msra.gmra.mxu0 %vm392_vm1, %v8407_v5 }
0x1e38   :  { %8440 = vmatpush3.msra.mxu0 %v8421_v8 }
0x1e39   :  { %8441 = vmatprep.subr.mxu0 %v6009_v28  ;;  %v5929_v26 = vpop.f32.mrf.mxu0 }
0x1e3a   :  { %8442 = vmatpush3.msra.mxu0 %v6009_v28  ;;  %8436 = vmatprep.mubr.msk.f32.mxu1 %vm392_vm1, %v5929_v26 }
0x1e3b   :  { %8446 = vmatprep.subr.mxu0 %v9891_v38  ;;  %8437 = vmatmul.mubr.msk.f32.vlgmr.msra.gmra.mxu1 %vm392_vm1, %v8410_v41  ;;  %v7328_v41 = vld [vmem:[%s10099_s3 + $0x38] sm:$0xff] }
0x1e3c   :  { %8453 = vmatprep.subr.mxu1 %v7328_v41 }
0x1e3d   :  { %8454 = vmatpush3.msra.mxu1 %v7328_v41  ;;  %v7350_v41 = vld [vmem:[%s10101_s5 + $0xc8] sm:$0xff] }
0x1ef7   :  { %v8431_v25 = vpop.f32.mrf.mxu0 }
0x1ef8   :  { %v6112_v32 = vadd.f32 %v8431_v25, %v8936_v33 }
0x1ef9   :  { %v6106_v60 = vpop.f32.mrf.mxu0 }
0x1efa   :  { %v6107_v34 = vadd.f32 %v6106_v60, %v8938_v35  ;;  %v6205_v59 = vsel %vm567_vm4, %v6112_v32, -inf }
0x1efb   :  { %v8438_v0 = vpop.f32.mrf.mxu1  ;;  %6206 = vmax.xlane.f32.xlu1 %v6205_v59 }
0x1efc   :  { %v6199_v11 = vadd.f32 %v8438_v0, %v8936_v33  ;;  %v6202_v10 = vsel %vm567_vm4, %v6107_v34, -inf }
0x1efd   :  { %v6193_v14 = vpop.f32.mrf.mxu1  ;;  %6203 = vmax.xlane.f32.xlu0 %v6202_v10 }
0x1efe   :  { %v6194_v9 = vadd.f32 %v6193_v14, %v8938_v35  ;;  %v6211_v18 = vsel %vm567_vm4, %v6199_v11, -inf }
0x1eff   :  { %6212 = vmax.xlane.f32.xlu1 %v6211_v18 }
0x1f00   :  { %v6208_v54 = vsel %vm567_vm4, %v6194_v9, -inf }
0x1f01   :  { %6209 = vmax.xlane.f32.xlu0 %v6208_v54 }
0x1f84   :  { %v6207_v55 = vpop.xlane.xlu1 %6206 }
0x1f85   :  { %v6215_v7 = vsub.f32 %v6112_v32, %v6207_v55 }
0x1f86   :  { %v6204_v16 = vpop.xlane.xlu0 %6203 }
0x1f87   :  { %v6220_v53 = vmul.f32 1.442695, %v6215_v7  ;;  %v6214_v2 = vsub.f32 %v6107_v34, %v6204_v16  ;;  %v9928_v34 = vld [vmem:[%s10097_s1 + $0x8] sm:$0xff] }
0x1f88   :  { %v6213_v4 = vpop.xlane.xlu1 %6212  ;;  %v6518_v59 = vrot.slane %v9928_v34, %v3133_v43 }
0x1f89   :  { %8667 = vpow2.f32 %v6220_v53  ;;  %v6218_v33 = vmul.f32 1.442695, %v6214_v2  ;;  %v6217_v45 = vsub.f32 %v6199_v11, %v6213_v4 }
0x1f8a   :  { %v6210_v19 = vpop.xlane.xlu0 %6209 }
0x1f8b   :  { %8669 = vpow2.f32 %v6218_v33  ;;  %v6224_v20 = vmul.f32 1.442695, %v6217_v45  ;;  %v6216_v22 = vsub.f32 %v6194_v9, %v6210_v19 }
0x1f8d   :  { %8671 = vpow2.f32 %v6224_v20  ;;  %v6222_v35 = vmul.f32 1.442695, %v6216_v22 }
0x1f8f   :  { %8673 = vpow2.f32 %v6222_v35 }
0x1f96   :  { %v8668_v23 = vpop.eup %8667 }
0x1f97   :  { %v6229_v24 = vsel %vm567_vm4, %v8668_v23, 0.0 }
0x1f98   :  { %v8670_v27 = vpop.eup %8669  ;;  %6230 = vadd.xlane.f32.xlu1 %v6229_v24 }
0x1f99   :  { %v6226_v13 = vsel %vm567_vm4, %v8670_v27, 0.0 }
0x1f9a   :  { %v8672_v21 = vpop.eup %8671  ;;  %6227 = vadd.xlane.f32.xlu0 %v6226_v13 }
0x1f9b   :  { %v6235_v29 = vsel %vm567_vm4, %v8672_v21, 0.0 }
0x1f9c   :  { %v8674_v31 = vpop.eup %8673  ;;  %6236 = vadd.xlane.f32.xlu1 %v6235_v29 }
0x1f9d   :  { %v6232_v62 = vsel %vm567_vm4, %v8674_v31, 0.0 }
0x1f9e   :  { %6233 = vadd.xlane.f32.xlu0 %v6232_v62 }
0x2021   :  { %v6231_v8 = vpop.xlane.xlu1 %6230 }
0x2022   :  { %8675 = vrcp.f32 %v6231_v8 }
0x2023   :  { %v6228_v12 = vpop.xlane.xlu0 %6227 }
0x2024   :  { %8677 = vrcp.f32 %v6228_v12 }
0x2025   :  { %v6237_v57 = vpop.xlane.xlu1 %6236 }
0x2026   :  { %8679 = vrcp.f32 %v6237_v57  ;;  %v7336_v57 = vld [vmem:[%s10100_s4 + $0x38] sm:$0xff] }
0x2027   :  { %v6234_v15 = vpop.xlane.xlu0 %6233 }
0x2028   :  { %8681 = vrcp.f32 %v6234_v15  ;;  %v7335_v15 = vld [vmem:[%s10100_s4 + $0x30] sm:$0xff] }
0x202f   :  { %v8676_v1 = vpop.eup %8675 }
0x2030   :  { %v6241_v58 = vmul.f32 %v8676_v1, %v8668_v23  ;;  %v7334_v1 = vld [vmem:[%s10100_s4 + $0x28] sm:$0xff] }
0x2031   :  { %v8678_v39 = vpop.eup %8677 }
0x2032   :  { %v6239_v42 = vmul.f32 %v8678_v39, %v8670_v27  ;;  %v7333_v39 = vld [vmem:[%s10100_s4 + $0x20] sm:$0xff] }
0x2033   :  { %v8680_v48 = vpop.eup %8679 }
0x2034   :  { %8443 = vmatprep.mubr.msk.f32.mxu0 %vm567_vm4, %v6239_v42  ;;  %v6245_v28 = vmul.f32 %v8680_v48, %v8672_v21  ;;  %v7356_v42 = vld [vmem:[%s10101_s5 + $0xf8] sm:$0xff]  ;;  %v7354_v48 = vld [vmem:[%s10101_s5 + $0xe8] sm:$0xff] }
0x2035   :  { %v8682_v5 = vpop.eup %8681  ;;  %8444 = vmatmul.mubr.msk.f32.vlgmr.msra.gmra.mxu0 %vm567_vm4, %v6241_v58  ;;  %v7355_v58 = vld [vmem:[%s10101_s5 + $0xf0] sm:$0xff]  ;;  %8475 = vmatprep.subr.mxu1 %v7356_v42 }
0x2036   :  { %8447 = vmatpush3.msra.mxu0 %v9891_v38  ;;  %v6243_v40 = vmul.f32 %v8682_v5, %v8674_v31  ;;  %v7353_v5 = vld [vmem:[%s10101_s5 + $0xe0] sm:$0xff] }
0x2037   :  { %8448 = vmatprep.subr.mxu0 %v9897_v56 }
0x2038   :  { %8449 = vmatpush3.msra.mxu0 %v9897_v56  ;;  %8450 = vmatprep.mubr.msk.f32.mxu0 %vm567_vm4, %v6243_v40  ;;  %v7352_v40 = vld [vmem:[%s10101_s5 + $0xd8] sm:$0xff] }
0x2039   :  { %8451 = vmatmul.mubr.msk.f32.vlgmr.msra.gmra.mxu0 %vm567_vm4, %v6245_v28  ;;  %8461 = vmatprep.subr.mxu0 %v7336_v57  ;;  %v7351_v28 = vld [vmem:[%s10101_s5 + $0xd0] sm:$0xff] }
0x203a   :  { %8462 = vmatpush3.msra.mxu0 %v7336_v57 }
0x203b   :  { %8463 = vmatprep.subr.mxu0 %v7335_v15 }
0x203c   :  { %8464 = vmatpush3.msra.mxu0 %v7335_v15 }
0x203d   :  { %8465 = vmatprep.subr.mxu0 %v7334_v1 }
0x203e   :  { %8466 = vmatpush3.msra.mxu0 %v7334_v1 }
0x203f   :  { %8467 = vmatprep.subr.mxu0 %v7333_v39 }
0x2040   :  { %8468 = vmatpush3.msra.mxu0 %v7333_v39 }
0x20f5   :  { %v8445_v26 = vpop.f32.mrf.mxu0 }
0x20f7   :  { %v6318_v25 = vpop.f32.mrf.mxu0 }
0x20f8   :  { %8455 = vmatprep.mubr.msk.f32.mxu1 %vm392_vm1, %v6318_v25  ;;  %v7348_v25 = vld [vmem:[%s10101_s5 + $0xb8] sm:$0xff] }
0x20f9   :  { %v8452_v38 = vpop.f32.mrf.mxu0  ;;  %8456 = vmatmul.mubr.msk.f32.vlgmr.msra.gmra.mxu1 %vm392_vm1, %v8445_v26  ;;  %v7349_v26 = vld [vmem:[%s10101_s5 + $0xc0] sm:$0xff] }
0x20fa   :  { %8476 = vmatpush3.msra.mxu1 %v7356_v42 }
0x20fb   :  { %v6399_v32 = vpop.f32.mrf.mxu0  ;;  %8477 = vmatprep.subr.mxu1 %v7355_v58 }
0x20fc   :  { %8458 = vmatprep.mubr.msk.f32.mxu1 %vm392_vm1, %v6399_v32  ;;  %8478 = vmatpush3.msra.mxu1 %v7355_v58  ;;  %v7346_v32 = vld [vmem:[%s10101_s5 + $0xa8] sm:$0xff] }
0x20fd   :  { %8459 = vmatmul.mubr.msk.f32.gmra.mxu1 %vm392_vm1, %v8452_v38  ;;  %8479 = vmatprep.subr.mxu1 %v7354_v48  ;;  %v7347_v38 = vld [vmem:[%s10101_s5 + $0xb0] sm:$0xff] }
0x20fe   :  { %8480 = vmatpush3.msra.mxu1 %v7354_v48 }
0x20ff   :  { %8481 = vmatprep.subr.mxu1 %v7353_v5 }
0x2100   :  { %8482 = vmatpush3.msra.mxu1 %v7353_v5 }
0x2101   :  { %8483 = vmatprep.subr.mxu1 %v7352_v40 }
0x2102   :  { %8484 = vmatpush3.msra.mxu1 %v7352_v40 }
0x2103   :  { %8485 = vmatprep.subr.mxu1 %v7351_v28 }
0x2104   :  { %8486 = vmatpush3.msra.mxu1 %v7351_v28 }
0x2105   :  { %8487 = vmatprep.subr.mxu1 %v7350_v41 }
0x2106   :  { %8488 = vmatpush3.msra.mxu1 %v7350_v41 }
0x2107   :  { %8489 = vmatprep.subr.mxu1 %v7349_v26 }
0x2108   :  { %8490 = vmatpush3.msra.mxu1 %v7349_v26 }
0x2109   :  { %8491 = vmatprep.subr.mxu1 %v7348_v25 }
0x210a   :  { %8492 = vmatpush3.msra.mxu1 %v7348_v25 }
0x210b   :  { %8493 = vmatprep.subr.mxu1 %v7347_v38 }
0x210c   :  { %8494 = vmatpush3.msra.mxu1 %v7347_v38 }
0x210d   :  { %8495 = vmatprep.subr.mxu1 %v7346_v32 }
0x210e   :  { %8496 = vmatpush3.msra.mxu1 %v7346_v32 }
0x21b9   :  { %v8457_v56 = vpop.f32.mrf.mxu1 }
0x21ba   :  { %v6508_v60 = vadd.f32 %v8457_v56, %v9877_v63  ;;  %v7345_v56 = vld [vmem:[%s10101_s5 + $0xa0] sm:$0xff] }
0x21bb   :  { %v6488_v0 = vpop.f32.mrf.mxu1  ;;  %8497 = vmatprep.subr.mxu1 %v7345_v56 }
0x21bc   :  { %v6512_v11 = vadd.f32 %v6508_v60, %v9440_v46  ;;  %v6507_v10 = vadd.f32 %v6488_v0, %v9881_v36  ;;  %8498 = vmatpush3.msra.mxu1 %v7345_v56 }
0x21bd   :  { %v8460_v14 = vpop.f32.mrf.mxu1 }
0x21be   :  { %v9935_v9 = vadd.f32 %v6518_v59, %v6512_v11  ;;  %v6511_v18 = vadd.f32 %v6507_v10, %v9443_v52  ;;  %v6510_v63 = vadd.f32 %v8460_v14, %v9885_v6 }
0x21bf   :  { %v6498_v54 = vpop.f32.mrf.mxu1 }
0x21c0   :  { %v9939_v55 = vadd.f32 %v6518_v59, %v6511_v18  ;;  %v6514_v7 = vadd.f32 %v6510_v63, %v9448_v61  ;;  %v6509_v16 = vadd.f32 %v6498_v54, %v9887_v17  ;;  %v6526_v43 = vsel %vm41_vm0, %v9935_v9, 0.0 }
0x21c1   :  { %6527 = vadd.xlane.f32.xlu1 %v6526_v43 }
0x21c2   :  { %v9945_v46 = vadd.f32 %v6518_v59, %v6514_v7  ;;  %v6513_v36 = vadd.f32 %v6509_v16, %v9453_v50  ;;  %v6523_v52 = vsel %vm41_vm0, %v9939_v55, 0.0 }
0x21c3   :  { %6524 = vadd.xlane.f32.xlu0 %v6523_v52  ;;  %v6578_v52 = vrot.slane %v9928_v34, %v9403_v37 }
0x21c4   :  { %v9950_v6 = vadd.f32 %v6518_v59, %v6513_v36  ;;  %v6532_v53 = vsel %vm41_vm0, %v9945_v46, 0.0 }
0x21c5   :  { %6533 = vadd.xlane.f32.xlu1 %v6532_v53 }
0x21c6   :  { %v6529_v61 = vsel %vm41_vm0, %v9950_v6, 0.0 }
0x21c7   :  { %6530 = vadd.xlane.f32.xlu0 %v6529_v61 }
0x224a   :  { %v6528_v17 = vpop.xlane.xlu1 %6527 }
0x224b   :  { %v6536_v2 = vmul.f32 0.03125, %v6528_v17 }
0x224c   :  { %v6525_v4 = vpop.xlane.xlu0 %6524 }
0x224d   :  { %v9957_v33 = vsub.f32 %v9935_v9, %v6536_v2  ;;  %v6535_v50 = vmul.f32 0.03125, %v6525_v4  ;;  %v6586_v4 = vrot.slane %v9928_v34, %v3201_v51  ;;  %v7344_v51 = vld [vmem:[%s10101_s5 + $0x98] sm:$0xff] }
0x224e   :  { %v6534_v45 = vpop.xlane.xlu1 %6533  ;;  %8499 = vmatprep.subr.mxu1 %v7344_v51 }
0x224f   :  { %v9960_v19 = vsub.f32 %v9939_v55, %v6535_v50  ;;  %v6538_v20 = vmul.f32 0.03125, %v6534_v45  ;;  %v6544_v22 = vmul.f32 %v9957_v33, %v9957_v33  ;;  %8500 = vmatpush3.msra.mxu1 %v7344_v51 }
0x2250   :  { %v6531_v35 = vpop.xlane.xlu0 %6530 }
0x2251   :  { %v9965_v23 = vsub.f32 %v9945_v46, %v6538_v20  ;;  %v6537_v24 = vmul.f32 0.03125, %v6531_v35  ;;  %v6550_v27 = vsel %vm41_vm0, %v6544_v22, 0.0  ;;  %v6543_v13 = vmul.f32 %v9960_v19, %v9960_v19 }
0x2252   :  { %6551 = vadd.xlane.f32.xlu1 %v6550_v27 }
0x2253   :  { %v9971_v21 = vsub.f32 %v9950_v6, %v6537_v24  ;;  %v6547_v29 = vsel %vm41_vm0, %v6543_v13, 0.0  ;;  %v6546_v31 = vmul.f32 %v9965_v23, %v9965_v23 }
0x2254   :  { %6548 = vadd.xlane.f32.xlu0 %v6547_v29 }
0x2255   :  { %v6556_v62 = vsel %vm41_vm0, %v6546_v31, 0.0  ;;  %v6545_v8 = vmul.f32 %v9971_v21, %v9971_v21  ;;  %v7341_v31 = vld [vmem:[%s10101_s5 + $0x80] sm:$0xff] }
0x2256   :  { %6557 = vadd.xlane.f32.xlu1 %v6556_v62  ;;  %v6599_v62 = vrot.slane %v9928_v34, %v3213_v30  ;;  %v6721_v30 = vrot.slane %v9928_v34, %v3334_v3 }
0x2257   :  { %v6553_v12 = vsel %vm41_vm0, %v6545_v8, 0.0 }
0x2258   :  { %6554 = vadd.xlane.f32.xlu0 %v6553_v12 }
0x22db   :  { %v6552_v60 = vpop.xlane.xlu1 %6551 }
0x22dc   :  { %v6560_v59 = vmul.f32 0.03125, %v6552_v60 }
0x22dd   :  { %v6549_v0 = vpop.xlane.xlu0 %6548 }
0x22de   :  { %v6564_v11 = vadd.f32 1e-05, %v6560_v59  ;;  %v6559_v10 = vmul.f32 0.03125, %v6549_v0 }
0x22df   :  { %v6558_v14 = vpop.xlane.xlu1 %6557 }
0x22e0   :  { %8683 = vrsqrt.f32 %v6564_v11  ;;  %v6563_v18 = vadd.f32 1e-05, %v6559_v10  ;;  %v6562_v63 = vmul.f32 0.03125, %v6558_v14 }
0x22e1   :  { %v6555_v54 = vpop.xlane.xlu0 %6554 }
0x22e2   :  { %8685 = vrsqrt.f32 %v6563_v18  ;;  %v6566_v7 = vadd.f32 1e-05, %v6562_v63  ;;  %v6561_v16 = vmul.f32 0.03125, %v6555_v54 }
0x22e4   :  { %8687 = vrsqrt.f32 %v6566_v7  ;;  %v6565_v43 = vadd.f32 1e-05, %v6561_v16 }
0x22e6   :  { %8689 = vrsqrt.f32 %v6565_v43 }
0x22ed   :  { %v8684_v36 = vpop.eup %8683 }
0x22ee   :  { %v6572_v53 = vmul.f32 %v8684_v36, %v9957_v33 }
0x22ef   :  { %v8686_v61 = vpop.eup %8685 }
0x22f0   :  { %v6571_v17 = vmul.f32 %v8686_v61, %v9960_v19  ;;  %v6580_v50 = vmul.f32 %v6578_v52, %v6572_v53 }
0x22f1   :  { %v8688_v2 = vpop.eup %8687 }
0x22f2   :  { %v6574_v45 = vmul.f32 %v8688_v2, %v9965_v23  ;;  %v6579_v20 = vmul.f32 %v6578_v52, %v6571_v17  ;;  %v6588_v27 = vadd.f32 %v6586_v4, %v6580_v50  ;;  %v7343_v23 = vld [vmem:[%s10101_s5 + $0x90] sm:$0xff] }
0x22f3   :  { %v8690_v22 = vpop.eup %8689  ;;  %8501 = vmatprep.subr.mxu1 %v7343_v23 }
0x22f4   :  { %v6587_v35 = vadd.f32 %v6586_v4, %v6579_v20  ;;  %v6573_v24 = vmul.f32 %v8690_v22, %v9971_v21  ;;  %v6582_v13 = vmul.f32 %v6578_v52, %v6574_v45  ;;  %8502 = vmatpush3.msra.mxu1 %v7343_v23  ;;  %v7342_v21 = vld [vmem:[%s10101_s5 + $0x88] sm:$0xff] }
0x22f5   :  { %8503 = vmatprep.subr.mxu1 %v7342_v21 }
0x22f6   :  { %8469 = vmatprep.mubr.msk.f32.mxu0 %vm41_vm0, %v6587_v35  ;;  %v6581_v33 = vmul.f32 %v6578_v52, %v6573_v24  ;;  %v6590_v29 = vadd.f32 %v6586_v4, %v6582_v13  ;;  %8504 = vmatpush3.msra.mxu1 %v7342_v21  ;;  %v6814_v35 = vld [vmem:[%s10102_s6 + $0x18] sm:$0xff]  ;;  %v6813_v24 = vld [vmem:[%s10102_s6 + $0x10] sm:$0xff]  ;;  %v6811_v13 = vld [vmem:[%s10102_s6] sm:$0xff] }
0x22f7   :  { %8470 = vmatmul.mubr.msk.f32.vlgmr.msra.gmra.mxu0 %vm41_vm0, %v6588_v27  ;;  %8505 = vmatprep.subr.mxu1 %v7341_v31  ;;  %v6812_v27 = vld [vmem:[%s10102_s6 + $0x8] sm:$0xff] }
0x22f8   :  { %v6589_v19 = vadd.f32 %v6586_v4, %v6581_v33  ;;  %8506 = vmatpush3.msra.mxu1 %v7341_v31  ;;  %8513 = vmatprep.subr.mxu0 %v6814_v35 }
0x22f9   :  { %8514 = vmatpush3.msra.mxu0 %v6814_v35 }
0x22fa   :  { %8472 = vmatprep.mubr.msk.f32.mxu0 %vm41_vm0, %v6589_v19  ;;  %8515 = vmatprep.subr.mxu0 %v6813_v24 }
0x22fb   :  { %8473 = vmatmul.mubr.msk.f32.gmra.mxu0 %vm41_vm0, %v6590_v29 }
0x22fc   :  { %8516 = vmatpush3.msra.mxu0 %v6813_v24 }
0x22fd   :  { %8517 = vmatprep.subr.mxu0 %v6812_v27 }
0x22fe   :  { %8518 = vmatpush3.msra.mxu0 %v6812_v27 }
0x22ff   :  { %8519 = vmatprep.subr.mxu0 %v6811_v13 }
0x2300   :  { %8520 = vmatpush3.msra.mxu0 %v6811_v13 }
0x23b7   :  { %v8471_v8 = vpop.f32.mrf.mxu0 }
0x23b8   :  { %v6684_v12 = vadd.f32 %v8471_v8, %v6599_v62 }
0x23b9   :  { %v6678_v57 = vpop.f32.mrf.mxu0 }
0x23ba   :  { %v6679_v15 = vadd.f32 %v6678_v57, %v6599_v62  ;;  %v6698_v42 = vmax.f32 %v6684_v12, 0.0 }
0x23bb   :  { %v8474_v1 = vpop.f32.mrf.mxu0 }
0x23bc   :  { %v6697_v39 = vmax.f32 %v6679_v15, 0.0  ;;  %v6694_v58 = vadd.f32 %v8474_v1, %v6599_v62  ;;  %v6815_v1 = vld [vmem:[%s10102_s6 + $0x20] sm:$0xff]  ;;  %s8728_s6 = smov [#allocation2]  }
0x23bd   :  { %v6688_v48 = vpop.f32.mrf.mxu0  ;;  %s6994_s30 = sshll.u32 %s8728_s6, 4  ;;  %s6995_s30 = int_to_ptr.vmem [resolvable:$true] %s6994_s30 }
0x23be   :  { %v6689_v5 = vadd.f32 %v6688_v48, %v6599_v62  ;;  %8507 = vmatprep.mubr.f32.mxu1 %v6697_v39  ;;  %v6700_v28 = vmax.f32 %v6694_v58, 0.0  ;;  %s8705_s8 = scalar_lea.vmem %s6995_s30, 512  ;;  %p8710_p1 = scmp.lt.s32.totalorder %s6995_s30, %s6995_s30 }
0x23bf   :  { %8508 = vmatmul.mubr.f32.vlgmr.msra.gmra.mxu1 %v6698_v42  ;;  %v6871_v42 = vrot.slane %v6815_v1, %v8814_v47  ;;  %p8706_p0 = scmp.ne.s32.totalorder %s6995_s30, %s8705_s8  ;;  %p8711_p2 = scmp.lt.s32.totalorder %s8705_s8, %s8705_s8 }
0x23c0   :  { %v6699_v40 = vmax.f32 %v6689_v5, 0.0 }
0x23c1   :  { %p8712_p3 = por %p8711_p2, %p8710_p1 }
0x23c2   :  { %8510 = vmatprep.mubr.f32.mxu1 %v6699_v40 }
0x23c3   :  { %8511 = vmatmul.mubr.f32.gmra.mxu1 %v6700_v28  ;;  %p8713_p4 = pnand %p8712_p3, %p8706_p0 }
0x247f   :  { %v8509_v41 = vpop.f32.mrf.mxu1 }
0x2480   :  { %v6794_v26 = vadd.f32 %v8509_v41, %v6721_v30 }
0x2481   :  { %v6788_v25 = vpop.f32.mrf.mxu1 }
0x2482   :  { %v6789_v38 = vadd.f32 %v6788_v25, %v6721_v30  ;;  %v6808_v32 = vadd.f32 %v6794_v26, %v9935_v9 }
0x2483   :  { %v8512_v56 = vpop.f32.mrf.mxu1 }
0x2484   :  { %v6804_v60 = vadd.f32 %v8512_v56, %v6721_v30  ;;  %v6819_v59 = vsel %vm41_vm0, %v6808_v32, 0.0  ;;  %v6807_v0 = vadd.f32 %v6789_v38, %v9939_v55 }
0x2485   :  { %6820 = vadd.xlane.f32.xlu1 %v6819_v59  ;;  %v6798_v11 = vpop.f32.mrf.mxu1 }
0x2486   :  { %v6810_v10 = vadd.f32 %v6804_v60, %v9945_v46  ;;  %v6799_v14 = vadd.f32 %v6798_v11, %v6721_v30  ;;  %v6816_v44 = vsel %vm41_vm0, %v6807_v0, 0.0  ;;  %v6879_v30 = vrot.slane %v6815_v1, %v8820_v49 }
0x2487   :  { %6817 = vadd.xlane.f32.xlu0 %v6816_v44  ;;  %v6887_v49 = vrot.slane %v6815_v1, %v9403_v37 }
0x2488   :  { %v6809_v3 = vadd.f32 %v6799_v14, %v9950_v6  ;;  %v6825_v34 = vsel %vm41_vm0, %v6810_v10, 0.0 }
0x2489   :  { %6826 = vadd.xlane.f32.xlu1 %v6825_v34 }
0x248a   :  { %v6822_v9 = vsel %vm41_vm0, %v6809_v3, 0.0 }
0x248b   :  { %6823 = vadd.xlane.f32.xlu0 %v6822_v9 }
0x250e   :  { %v6821_v18 = vpop.xlane.xlu1 %6820 }
0x250f   :  { %v6829_v63 = vmul.f32 0.03125, %v6821_v18 }
0x2510   :  { %v6818_v54 = vpop.xlane.xlu0 %6817 }
0x2511   :  { %v6833_v55 = vsub.f32 %v6808_v32, %v6829_v63  ;;  %v6828_v7 = vmul.f32 0.03125, %v6818_v54 }
0x2512   :  { %v6827_v16 = vpop.xlane.xlu1 %6826 }
0x2513   :  { %v6832_v43 = vsub.f32 %v6807_v0, %v6828_v7  ;;  %v6831_v46 = vmul.f32 0.03125, %v6827_v16  ;;  %v6837_v36 = vmul.f32 %v6833_v55, %v6833_v55 }
0x2514   :  { %v6824_v52 = vpop.xlane.xlu0 %6823 }
0x2515   :  { %v6835_v53 = vsub.f32 %v6810_v10, %v6831_v46  ;;  %v6830_v61 = vmul.f32 0.03125, %v6824_v52  ;;  %v6843_v6 = vsel %vm41_vm0, %v6837_v36, 0.0  ;;  %v6836_v17 = vmul.f32 %v6832_v43, %v6832_v43 }
0x2516   :  { %6844 = vadd.xlane.f32.xlu1 %v6843_v6 }
0x2517   :  { %v6834_v2 = vsub.f32 %v6809_v3, %v6830_v61  ;;  %v6840_v4 = vsel %vm41_vm0, %v6836_v17, 0.0  ;;  %v6839_v50 = vmul.f32 %v6835_v53, %v6835_v53 }
0x2518   :  { %6841 = vadd.xlane.f32.xlu0 %v6840_v4 }
0x2519   :  { %v6849_v45 = vsel %vm41_vm0, %v6839_v50, 0.0  ;;  %v6838_v20 = vmul.f32 %v6834_v2, %v6834_v2 }
0x251a   :  { %6850 = vadd.xlane.f32.xlu1 %v6849_v45 }
0x251b   :  { %v6846_v22 = vsel %vm41_vm0, %v6838_v20, 0.0 }
0x251c   :  { %6847 = vadd.xlane.f32.xlu0 %v6846_v22 }
0x259f   :  { %v6845_v33 = vpop.xlane.xlu1 %6844 }
0x25a0   :  { %v6853_v19 = vmul.f32 0.03125, %v6845_v33 }
0x25a1   :  { %v6842_v29 = vpop.xlane.xlu0 %6841 }
0x25a2   :  { %v6857_v51 = vadd.f32 1e-05, %v6853_v19  ;;  %v6852_v23 = vmul.f32 0.03125, %v6842_v29 }
0x25a3   :  { %v6851_v21 = vpop.xlane.xlu1 %6850 }
0x25a4   :  { %8691 = vrsqrt.f32 %v6857_v51  ;;  %v6856_v31 = vadd.f32 1e-05, %v6852_v23  ;;  %v6855_v62 = vmul.f32 0.03125, %v6851_v21 }
0x25a5   :  { %v6848_v8 = vpop.xlane.xlu0 %6847 }
0x25a6   :  { %8693 = vrsqrt.f32 %v6856_v31  ;;  %v6859_v12 = vadd.f32 1e-05, %v6855_v62  ;;  %v6854_v57 = vmul.f32 0.03125, %v6848_v8 }
0x25a8   :  { %8695 = vrsqrt.f32 %v6859_v12  ;;  %v6858_v15 = vadd.f32 1e-05, %v6854_v57 }
0x25aa   :  { %8697 = vrsqrt.f32 %v6858_v15 }
0x25b1   :  { %v8692_v39 = vpop.eup %8691 }
0x25b2   :  { %v6865_v58 = vmul.f32 %v8692_v39, %v6833_v55 }
0x25b3   :  { %v8694_v48 = vpop.eup %8693 }
0x25b4   :  { %v6864_v5 = vmul.f32 %v8694_v48, %v6832_v43  ;;  %v6873_v28 = vmul.f32 %v6871_v42, %v6865_v58 }
0x25b5   :  { %v8696_v40 = vpop.eup %8695 }
0x25b6   :  { %v6867_v41 = vmul.f32 %v8696_v40, %v6835_v53  ;;  %v6872_v26 = vmul.f32 %v6871_v42, %v6864_v5  ;;  %v6881_v56 = vadd.f32 %v6879_v30, %v6873_v28 }
0x25b7   :  { %v8698_v25 = vpop.eup %8697 }
0x25b8   :  { %v6880_v38 = vadd.f32 %v6879_v30, %v6872_v26  ;;  %v6866_v32 = vmul.f32 %v8698_v25, %v6834_v2  ;;  %v6875_v60 = vmul.f32 %v6871_v42, %v6867_v41 }
0x25ba   :  { %8521 = vmatprep.mubr.msk.f32.mxu0 %vm41_vm0, %v6880_v38  ;;  %v6874_v59 = vmul.f32 %v6871_v42, %v6866_v32  ;;  %v6883_v0 = vadd.f32 %v6879_v30, %v6875_v60 }
0x25bb   :  { %8522 = vmatmul.mubr.msk.f32.vlgmr.msra.gmra.mxu0 %vm41_vm0, %v6881_v56 }
0x25bc   :  { %v6882_v47 = vadd.f32 %v6879_v30, %v6874_v59 }
0x25be   :  { %8524 = vmatprep.mubr.msk.f32.mxu0 %vm41_vm0, %v6882_v47 }
0x25bf   :  { %8525 = vmatmul.mubr.msk.f32.gmra.mxu0 %vm41_vm0, %v6883_v0 }
0x267b   :  { %v8523_v11 = vpop.f32.mrf.mxu0 }
0x267c   :  { %v6972_v10 = vadd.f32 %v8523_v11, %v6887_v49 }
0x267d   :  { %v6966_v14 = vpop.f32.mrf.mxu0 }
0x267e   :  { %6986 = vst [vmem:[#allocation2 + $0x8] sm:$0xff] %v6972_v10  ;;  %v6967_v44 = vadd.f32 %v6966_v14, %v6887_v49 }
0x267f   :  { %v8526_v3 = vpop.f32.mrf.mxu0 }
0x2680   :  { %6985 = vst [vmem:[#allocation2] sm:$0xff] %v6967_v44  ;;  %v6982_v34 = vadd.f32 %v8526_v3, %v6887_v49 }
0x2681   :  { %v6976_v9 = vpop.f32.mrf.mxu0 }
0x2682   :  { %6988 = vst [vmem:[#allocation2 + $0x18] sm:$0xff] %v6982_v34  ;;  %v6977_v18 = vadd.f32 %v6976_v9, %v6887_v49 }
0x2684   :  { %6987 = vst [vmem:[#allocation2 + $0x10] sm:$0xff] %v6977_v18 }
0x2685   :  { %8716 = shalt.err (!%p8713_p4)
}
0x2686   :  { %s8729_s9 = smov 128   ;;  %s8730_s2 = smov 8  }
0x2687   :  { %7000 = dma.vmem_to_hbm [thread:$0]  %s6995_s30, 512, %s10103_s7, [#allocation3], %s8729_s9, %s8729_s9, %s8730_s2  }
0x2688   :  { %8725 = dma.done.wait [#allocation3], 512  }
0x2689   :  { %8726 = vsyncadd [#allocation3], 4294966784 }
0x268a   :  { %7004 = vsyncpa [#allocation3], 1 }

</bundles_post_ra>
